<compile_context>
chip_gen: v7x
topology: tpu7x:2x2x1
jax: 0.10.0
libtpu: 0.0.40
codegen_flags: <defaults>
</compile_context>

<pallas_src>
import math

import jax
import jax.numpy as jnp
from jax.experimental import pallas as pl
from jax.experimental.pallas import tpu as pltpu

INPUT_DIMS = 32           # d_model (divisible by n_heads)
N_HEADS = 4
HEAD_DIM = INPUT_DIMS // N_HEADS
N_LAYERS = 2
D_FF = 2048               # PyTorch TransformerEncoderLayer default dim_feedforward
STATIC_DIMS = 1
N_ACTIONS = 4
H1, H2 = 512, 256
LN_EPS = 1e-5
LEAKY_SLOPE = 0.01        # nn.LeakyReLU default negative_slope
MAX_POS = 128

FFN_ROW_CHUNK = 512       # caps the f32 (rows, 2048) FFN hidden at ~4 MB per chunk
MIN_ROWS_PER_BLOCK = 2048 # only split the grid across cores when blocks are this big
VMEM_LIMIT_BYTES = 48 * 1024 * 1024   # above all scoped defaults, below v7x physical 64 MiB

_N_LAYER_REFS = 12        # weights per encoder layer
_N_HEAD_REFS = 9          # weights of the fused head


# ---------------------------------------------------------------------------
# In-kernel helpers (operate on traced values, not Refs).
# ---------------------------------------------------------------------------
def _layernorm(x, gamma, beta):
    mu = jnp.mean(x, axis=-1, keepdims=True)
    var = jnp.mean((x - mu) ** 2, axis=-1, keepdims=True)
    return (x - mu) * jax.lax.rsqrt(var + LN_EPS) * gamma + beta


def _attention(x, w_in, b_in, w_o, b_o):
    """Multi-head self attention on a (bb, S, D) fp32 block.

    1/sqrt(HEAD_DIM) is folded into the Q columns of w_in/b_in at init.
    All matmuls take bf16 inputs with f32 accumulation.
    """
    bb, S, D = x.shape
    xr = x.reshape(bb * S, D)
    qkv = jnp.dot(xr.astype(jnp.bfloat16), w_in,
                  preferred_element_type=jnp.float32) + b_in            # (bb*S, 3D) f32

    def heads(t2d):
        # (bb*S, D) -> (bb*H, S, Hd): heads on a leading batch axis, no per-head lane slices.
        t = t2d.astype(jnp.bfloat16).reshape(bb, S, N_HEADS, HEAD_DIM)
        return t.transpose(0, 2, 1, 3).reshape(bb * N_HEADS, S, HEAD_DIM)

    qh = heads(qkv[:, 0:D])
    kh = heads(qkv[:, D:2 * D])
    vh = heads(qkv[:, 2 * D:3 * D])

    s = jnp.einsum('nqd,nkd->nqk', qh, kh,
                   preferred_element_type=jnp.float32)                  # (bb*H, S, S) f32
    s = s - jnp.max(s, axis=-1, keepdims=True)
    p = jnp.exp(s)
    # approx reciprocal (EUP slot): tiny deviation from exact softmax, fine for inference.
    p = p * pl.reciprocal(jnp.sum(p, axis=-1, keepdims=True), approx=True)
    pv = jnp.einsum('nqk,nkd->nqd', p.astype(jnp.bfloat16), vh,
                    preferred_element_type=jnp.float32)                 # (bb*H, S, Hd) f32

    # Re-pack heads lane-contiguously once, then ONE K=D matmul against full W_o (bf16).
    pv = (pv.astype(jnp.bfloat16)
            .reshape(bb, N_HEADS, S, HEAD_DIM)
            .transpose(0, 2, 1, 3)
            .reshape(bb * S, D))
    out = jnp.dot(pv, w_o, preferred_element_type=jnp.float32) + b_o
    return out.reshape(bb, S, D)


def _ffn_rows(yr, w1, b1, w2, b2):
    h = jnp.dot(yr.astype(jnp.bfloat16), w1, preferred_element_type=jnp.float32) + b1
    h = jnp.maximum(h, 0.0)                          # default activation = relu
    return jnp.dot(h.astype(jnp.bfloat16), w2, preferred_element_type=jnp.float32) + b2


def _ffn(y, w1, b1, w2, b2):
    """FFN with row chunking so the f32 (rows, 2048) hidden stays VMEM-bounded."""
    bb, S, D = y.shape
    rows = bb * S
    yr = y.reshape(rows, D)
    if rows <= FFN_ROW_CHUNK:
        out = _ffn_rows(yr, w1, b1, w2, b2)
    else:
        chunks = []
        for r0 in range(0, rows, FFN_ROW_CHUNK):
            r1 = min(r0 + FFN_ROW_CHUNK, rows)
            chunks.append(_ffn_rows(yr[r0:r1], w1, b1, w2, b2))
        out = jnp.concatenate(chunks, axis=0)
    return out.reshape(bb, S, D)


def _encoder_layer(x, w_in, b_in, w_o, b_o, g1, be1, w1, b1, w2, b2, g2, be2):
    y = _layernorm(x + _attention(x, w_in, b_in, w_o, b_o), g1, be1)    # post-norm
    z = _layernorm(y + _ffn(y, w1, b1, w2, b2), g2, be2)
    return z


def _leaky(x):
    return jnp.where(x >= 0, x, LEAKY_SLOPE * x)


# ---------------------------------------------------------------------------
# Fused kernel: pos-enc add + 2 encoder layers + static encoding + head + softmax.
# grid = (1,) by default; 2-way "parallel" batch split only for large batches.
# ---------------------------------------------------------------------------
def fused_actor_kernel(*refs):
    x_ref, s_ref, pos_ref = refs[0], refs[1], refs[2]
    layer_refs = refs[3:3 + _N_LAYER_REFS * N_LAYERS]
    (ws_ref, bs_ref, w1a_ref, w1b_ref, b1_ref,
     w2_ref, b2_ref, w3_ref, b3_ref) = refs[3 + _N_LAYER_REFS * N_LAYERS:
                                            3 + _N_LAYER_REFS * N_LAYERS + _N_HEAD_REFS]
    out_ref = refs[-1]

    bb, S, D = x_ref.shape
    x = x_ref[...].astype(jnp.float32) + pos_ref[...].astype(jnp.float32)   # (bb, S, D)

    for l in range(N_LAYERS):                       # static unroll over 2 layers
        lw = [r[...] for r in layer_refs[_N_LAYER_REFS * l:_N_LAYER_REFS * (l + 1)]]
        x = _encoder_layer(x, *lw)

    last = x[:, S - 1, :]                                                   # (bb, D)

    # fc_static with static_input_dims == 1: Linear(1, D) == broadcast multiply.
    st = s_ref[:, 0, :].astype(jnp.float32)                                 # (bb, 1)
    se = st * ws_ref[...] + bs_ref[...]                                     # (bb, D)

    # fc1 split into two halves -> no (bb, 2D) concatenate.
    h = (jnp.dot(last.astype(jnp.bfloat16), w1a_ref[...],
                 preferred_element_type=jnp.float32)
         + jnp.dot(se.astype(jnp.bfloat16), w1b_ref[...],
                   preferred_element_type=jnp.float32)
         + b1_ref[...])
    h = _leaky(h)
    h = jnp.dot(h.astype(jnp.bfloat16), w2_ref[...],
                preferred_element_type=jnp.float32) + b2_ref[...]
    h = _leaky(h)
    logits = jnp.dot(h, w3_ref[...], preferred_element_type=jnp.float32) + b3_ref[...]

    logits = logits - jnp.max(logits, axis=-1, keepdims=True)
    e = jnp.exp(logits)
    probs = e / jnp.sum(e, axis=-1, keepdims=True)                          # (bb, A)
    out_ref[...] = probs[:, None, :].astype(out_ref.dtype)                  # (bb, 1, A)


# ---------------------------------------------------------------------------
# Wrapper: single pallas_call; grid split only when each block has enough rows
# to amortize the per-step overhead / duplicated weight DMA (v7x cross-TC).
# ---------------------------------------------------------------------------
@jax.jit
def actor_forward(params, dynamic_state, static_state):
    B, S, D = dynamic_state.shape
    assert D == INPUT_DIMS and S <= MAX_POS
    n_actions = params['fc3_b'].shape[-1]

    if B % 2 == 0 and (B // 2) * S >= MIN_ROWS_PER_BLOCK:
        bb, n_blk = B // 2, 2
    else:
        bb, n_blk = B, 1

    pos = params['pos_enc'][0, :S, :]                       # (S, D) static slice
    static3 = static_state.reshape(B, 1, STATIC_DIMS)       # keep batch off minor-2 dims

    layer_ws = []
    for lp in params['layers']:
        layer_ws += [lp[k] for k in ('w_in_t', 'b_in', 'w_o_t', 'b_o',
                                     'ln1_g', 'ln1_b',
                                     'w1_t', 'b1', 'w2_t', 'b2',
                                     'ln2_g', 'ln2_b')]
    head_ws = [params['ws_t'], params['bs'],
               params['fc1a_w_t'], params['fc1b_w_t'], params['fc1_b'],
               params['fc2_w_t'], params['fc2_b'],
               params['fc3_w_t'], params['fc3_b']]
    weights = layer_ws + head_ws

    def full_spec(a):
        nd = a.ndim
        return pl.BlockSpec(a.shape, lambda i, _nd=nd: (0,) * _nd)

    out = pl.pallas_call(
        fused_actor_kernel,
        out_shape=jax.ShapeDtypeStruct((B, 1, n_actions), jnp.float32),
        grid=(n_blk,),
        in_specs=[pl.BlockSpec((bb, S, D), lambda i: (i, 0, 0)),
                  pl.BlockSpec((bb, 1, STATIC_DIMS), lambda i: (i, 0, 0)),
                  pl.BlockSpec((S, D), lambda i: (0, 0))]
                 + [full_spec(w) for w in weights],
        out_specs=pl.BlockSpec((bb, 1, n_actions), lambda i: (i, 0, 0)),
        compiler_params=pltpu.CompilerParams(
            dimension_semantics=("parallel",),
            vmem_limit_bytes=VMEM_LIMIT_BYTES),
    )(dynamic_state, static3, pos, *weights)
    return out.reshape(B, n_actions)


# ---------------------------------------------------------------------------
# Parameter init (deterministic, shapes from the PyTorch __init__).
# Big matmul weights stored bf16; biases / LN params / tiny weights f32.
# The attention 1/sqrt(head_dim) scale is folded into the Q columns of the
# in-projection weights/bias at init.
# ---------------------------------------------------------------------------
def init_params(key, n_actions=N_ACTIONS):
    keys = iter(jax.random.split(key, 64))

    def lin_t(fan_in, fan_out):
        bound = 1.0 / math.sqrt(fan_in)
        w_t = jax.random.uniform(next(keys), (fan_in, fan_out), jnp.float32, -bound, bound)
        b = jax.random.uniform(next(keys), (1, fan_out), jnp.float32, -bound, bound)
        return w_t, b

    params = {
        # nn.Parameter(torch.zeros(1, 128, D))
        'pos_enc': jnp.zeros((1, MAX_POS, INPUT_DIMS), jnp.float32),
    }
    q_scale = 1.0 / math.sqrt(HEAD_DIM)
    layers = []
    for _ in range(N_LAYERS):
        w_in_t, b_in = lin_t(INPUT_DIMS, 3 * INPUT_DIMS)                 # MHA in_proj
        w_in_t = w_in_t.at[:, :INPUT_DIMS].multiply(q_scale)             # fold scale into Q
        b_in = b_in.at[:, :INPUT_DIMS].multiply(q_scale)
        w_o_t, b_o = lin_t(INPUT_DIMS, INPUT_DIMS)                       # MHA out_proj
        w1_t, b1 = lin_t(INPUT_DIMS, D_FF)                               # FFN linear1
        w2_t, b2 = lin_t(D_FF, INPUT_DIMS)                               # FFN linear2
        layers.append(dict(
            w_in_t=w_in_t.astype(jnp.bfloat16), b_in=b_in,
            w_o_t=w_o_t.astype(jnp.bfloat16), b_o=b_o,
            ln1_g=jnp.ones((1, INPUT_DIMS), jnp.float32),
            ln1_b=jnp.zeros((1, INPUT_DIMS), jnp.float32),
            w1_t=w1_t.astype(jnp.bfloat16), b1=b1,
            w2_t=w2_t.astype(jnp.bfloat16), b2=b2,
            ln2_g=jnp.ones((1, INPUT_DIMS), jnp.float32),
            ln2_b=jnp.zeros((1, INPUT_DIMS), jnp.float32),
        ))
    params['layers'] = layers

    params['ws_t'], params['bs'] = lin_t(STATIC_DIMS, INPUT_DIMS)        # fc_static (f32)
    fc1_w_t, params['fc1_b'] = lin_t(2 * INPUT_DIMS, H1)
    # split fc1 into the transformer-half and static-half (cat order of the reference)
    params['fc1a_w_t'] = fc1_w_t[:INPUT_DIMS, :].astype(jnp.bfloat16)
    params['fc1b_w_t'] = fc1_w_t[INPUT_DIMS:, :].astype(jnp.bfloat16)
    fc2_w_t, params['fc2_b'] = lin_t(H1, H2)
    params['fc2_w_t'] = fc2_w_t.astype(jnp.bfloat16)
    params['fc3_w_t'], params['fc3_b'] = lin_t(H2, n_actions)            # f32 (tiny)
    return params


# ---------------------------------------------------------------------------
# Pure-JAX f32 reference (same params, scale already folded into Q weights).
# ---------------------------------------------------------------------------
def _ref_ln(x, g, b):
    mu = jnp.mean(x, axis=-1, keepdims=True)
    var = jnp.mean((x - mu) ** 2, axis=-1, keepdims=True)
    return (x - mu) / jnp.sqrt(var + LN_EPS) * g + b


def reference_forward(params, dynamic_state, static_state):
    B, S, D = dynamic_state.shape
    x = dynamic_state + params['pos_enc'][:, :S, :]
    for lp in params['layers']:
        w_in = lp['w_in_t'].astype(jnp.float32)
        w_o = lp['w_o_t'].astype(jnp.float32)
        qkv = x @ w_in + lp['b_in']                                    # (B,S,3D)
        q, k, v = qkv[..., :D], qkv[..., D:2 * D], qkv[..., 2 * D:]

        def hsplit(t):
            return t.reshape(B, S, N_HEADS, HEAD_DIM).transpose(0, 2, 1, 3)

        qh, kh, vh = hsplit(q), hsplit(k), hsplit(v)                   # (B,H,S,Hd)
        s = qh @ kh.transpose(0, 1, 3, 2)                              # scale pre-folded
        p = jax.nn.softmax(s, axis=-1)
        a = (p @ vh).transpose(0, 2, 1, 3).reshape(B, S, D)
        a = a @ w_o + lp['b_o']
        x = _ref_ln(x + a, lp['ln1_g'], lp['ln1_b'])
        h = jnp.maximum(x @ lp['w1_t'].astype(jnp.float32) + lp['b1'], 0.0)
        f = h @ lp['w2_t'].astype(jnp.float32) + lp['b2']
        x = _ref_ln(x + f, lp['ln2_g'], lp['ln2_b'])

    last = x[:, -1, :]
    se = static_state @ params['ws_t'] + params['bs']
    h = (last @ params['fc1a_w_t'].astype(jnp.float32)
         + se @ params['fc1b_w_t'].astype(jnp.float32) + params['fc1_b'])
    h = jax.nn.leaky_relu(h, LEAKY_SLOPE)
    h = jax.nn.leaky_relu(h @ params['fc2_w_t'].astype(jnp.float32) + params['fc2_b'],
                          LEAKY_SLOPE)
    logits = h @ params['fc3_w_t'] + params['fc3_b']
    return jax.nn.softmax(logits, axis=-1)


if __name__ == "__main__":
    key = jax.random.PRNGKey(0)
    kp, kd, ks = jax.random.split(key, 3)
    params = init_params(kp, n_actions=N_ACTIONS)

    B, S = 2, 8
    dynamic_state = jax.random.normal(kd, (B, S, INPUT_DIMS), jnp.float32)
    static_state = jax.random.normal(ks, (B, STATIC_DIMS), jnp.float32)

    out = actor_forward(params, dynamic_state, static_state)
    jax.block_until_ready(out)
    assert out.shape == (B, N_ACTIONS) and out.dtype == jnp.float32
    assert bool(jnp.all(jnp.isfinite(out)))
    # softmax output: rows sum to ~1
    assert bool(jnp.all(jnp.abs(jnp.sum(out, axis=-1) - 1.0) < 1e-3))

    # Numerics vs. pure-JAX f32 reference (bf16 activation casts + approx reciprocal
    # inside attention give small deviations; loose tolerance catches real bugs).
    ref = reference_forward(params, dynamic_state, static_state)
    max_diff = float(jnp.max(jnp.abs(out - ref)))
    assert max_diff < 5e-2, f"kernel vs reference mismatch: {max_diff}"

    print("KERNEL_OK")
</pallas_src>

<mosaic_0001>
module attributes {stable_mosaic.version = 11 : i64} {
  func.func @fused_actor_kernel(%arg0: i32, %arg1: memref<2x8x32xf32, #tpu.memory_space<vmem>>, %arg2: memref<2x1x1xf32, #tpu.memory_space<vmem>>, %arg3: memref<8x32xf32, #tpu.memory_space<vmem>>, %arg4: memref<32x96xbf16, #tpu.memory_space<vmem>>, %arg5: memref<1x96xf32, #tpu.memory_space<vmem>>, %arg6: memref<32x32xbf16, #tpu.memory_space<vmem>>, %arg7: memref<1x32xf32, #tpu.memory_space<vmem>>, %arg8: memref<1x32xf32, #tpu.memory_space<vmem>>, %arg9: memref<1x32xf32, #tpu.memory_space<vmem>>, %arg10: memref<32x2048xbf16, #tpu.memory_space<vmem>>, %arg11: memref<1x2048xf32, #tpu.memory_space<vmem>>, %arg12: memref<2048x32xbf16, #tpu.memory_space<vmem>>, %arg13: memref<1x32xf32, #tpu.memory_space<vmem>>, %arg14: memref<1x32xf32, #tpu.memory_space<vmem>>, %arg15: memref<1x32xf32, #tpu.memory_space<vmem>>, %arg16: memref<32x96xbf16, #tpu.memory_space<vmem>>, %arg17: memref<1x96xf32, #tpu.memory_space<vmem>>, %arg18: memref<32x32xbf16, #tpu.memory_space<vmem>>, %arg19: memref<1x32xf32, #tpu.memory_space<vmem>>, %arg20: memref<1x32xf32, #tpu.memory_space<vmem>>, %arg21: memref<1x32xf32, #tpu.memory_space<vmem>>, %arg22: memref<32x2048xbf16, #tpu.memory_space<vmem>>, %arg23: memref<1x2048xf32, #tpu.memory_space<vmem>>, %arg24: memref<2048x32xbf16, #tpu.memory_space<vmem>>, %arg25: memref<1x32xf32, #tpu.memory_space<vmem>>, %arg26: memref<1x32xf32, #tpu.memory_space<vmem>>, %arg27: memref<1x32xf32, #tpu.memory_space<vmem>>, %arg28: memref<1x32xf32, #tpu.memory_space<vmem>>, %arg29: memref<1x32xf32, #tpu.memory_space<vmem>>, %arg30: memref<32x512xbf16, #tpu.memory_space<vmem>>, %arg31: memref<32x512xbf16, #tpu.memory_space<vmem>>, %arg32: memref<1x512xf32, #tpu.memory_space<vmem>>, %arg33: memref<512x256xbf16, #tpu.memory_space<vmem>>, %arg34: memref<1x256xf32, #tpu.memory_space<vmem>>, %arg35: memref<256x4xf32, #tpu.memory_space<vmem>>, %arg36: memref<1x4xf32, #tpu.memory_space<vmem>>, %arg37: memref<2x1x4xf32, #tpu.memory_space<vmem>>) attributes {dimension_semantics = [#tpu.dimension_semantics<parallel>], iteration_bounds = array<i64: 1>, scalar_prefetch = 0 : i64, scratch_operands = 0 : i64, tpu.core_type = #tpu.core_type<tc>, window_params = [{transform_indices = @transform_0, window_bounds = array<i64: 2, 8, 32>}, {transform_indices = @transform_1, window_bounds = array<i64: 2, 1, 1>}, {pipeline_mode = #tpu.pipeline_mode<synchronous>, transform_indices = @transform_2, window_bounds = array<i64: 8, 32>}, {pipeline_mode = #tpu.pipeline_mode<synchronous>, transform_indices = @transform_3, window_bounds = array<i64: 32, 96>}, {pipeline_mode = #tpu.pipeline_mode<synchronous>, transform_indices = @transform_4, window_bounds = array<i64: 1, 96>}, {pipeline_mode = #tpu.pipeline_mode<synchronous>, transform_indices = @transform_5, window_bounds = array<i64: 32, 32>}, {pipeline_mode = #tpu.pipeline_mode<synchronous>, transform_indices = @transform_6, window_bounds = array<i64: 1, 32>}, {pipeline_mode = #tpu.pipeline_mode<synchronous>, transform_indices = @transform_7, window_bounds = array<i64: 1, 32>}, {pipeline_mode = #tpu.pipeline_mode<synchronous>, transform_indices = @transform_8, window_bounds = array<i64: 1, 32>}, {pipeline_mode = #tpu.pipeline_mode<synchronous>, transform_indices = @transform_9, window_bounds = array<i64: 32, 2048>}, {pipeline_mode = #tpu.pipeline_mode<synchronous>, transform_indices = @transform_10, window_bounds = array<i64: 1, 2048>}, {pipeline_mode = #tpu.pipeline_mode<synchronous>, transform_indices = @transform_11, window_bounds = array<i64: 2048, 32>}, {pipeline_mode = #tpu.pipeline_mode<synchronous>, transform_indices = @transform_12, window_bounds = array<i64: 1, 32>}, {pipeline_mode = #tpu.pipeline_mode<synchronous>, transform_indices = @transform_13, window_bounds = array<i64: 1, 32>}, {pipeline_mode = #tpu.pipeline_mode<synchronous>, transform_indices = @transform_14, window_bounds = array<i64: 1, 32>}, {pipeline_mode = #tpu.pipeline_mode<synchronous>, transform_indices = @transform_15, window_bounds = array<i64: 32, 96>}, {pipeline_mode = #tpu.pipeline_mode<synchronous>, transform_indices = @transform_16, window_bounds = array<i64: 1, 96>}, {pipeline_mode = #tpu.pipeline_mode<synchronous>, transform_indices = @transform_17, window_bounds = array<i64: 32, 32>}, {pipeline_mode = #tpu.pipeline_mode<synchronous>, transform_indices = @transform_18, window_bounds = array<i64: 1, 32>}, {pipeline_mode = #tpu.pipeline_mode<synchronous>, transform_indices = @transform_19, window_bounds = array<i64: 1, 32>}, {pipeline_mode = #tpu.pipeline_mode<synchronous>, transform_indices = @transform_20, window_bounds = array<i64: 1, 32>}, {pipeline_mode = #tpu.pipeline_mode<synchronous>, transform_indices = @transform_21, window_bounds = array<i64: 32, 2048>}, {pipeline_mode = #tpu.pipeline_mode<synchronous>, transform_indices = @transform_22, window_bounds = array<i64: 1, 2048>}, {pipeline_mode = #tpu.pipeline_mode<synchronous>, transform_indices = @transform_23, window_bounds = array<i64: 2048, 32>}, {pipeline_mode = #tpu.pipeline_mode<synchronous>, transform_indices = @transform_24, window_bounds = array<i64: 1, 32>}, {pipeline_mode = #tpu.pipeline_mode<synchronous>, transform_indices = @transform_25, window_bounds = array<i64: 1, 32>}, {pipeline_mode = #tpu.pipeline_mode<synchronous>, transform_indices = @transform_26, window_bounds = array<i64: 1, 32>}, {pipeline_mode = #tpu.pipeline_mode<synchronous>, transform_indices = @transform_27, window_bounds = array<i64: 1, 32>}, {pipeline_mode = #tpu.pipeline_mode<synchronous>, transform_indices = @transform_28, window_bounds = array<i64: 1, 32>}, {pipeline_mode = #tpu.pipeline_mode<synchronous>, transform_indices = @transform_29, window_bounds = array<i64: 32, 512>}, {pipeline_mode = #tpu.pipeline_mode<synchronous>, transform_indices = @transform_30, window_bounds = array<i64: 32, 512>}, {pipeline_mode = #tpu.pipeline_mode<synchronous>, transform_indices = @transform_31, window_bounds = array<i64: 1, 512>}, {pipeline_mode = #tpu.pipeline_mode<synchronous>, transform_indices = @transform_32, window_bounds = array<i64: 512, 256>}, {pipeline_mode = #tpu.pipeline_mode<synchronous>, transform_indices = @transform_33, window_bounds = array<i64: 1, 256>}, {pipeline_mode = #tpu.pipeline_mode<synchronous>, transform_indices = @transform_34, window_bounds = array<i64: 256, 4>}, {pipeline_mode = #tpu.pipeline_mode<synchronous>, transform_indices = @transform_35, window_bounds = array<i64: 1, 4>}, {transform_indices = @transform_36, window_bounds = array<i64: 2, 1, 4>}]} {
    %c0 = arith.constant 0 : index
    %c0_0 = arith.constant 0 : index
    %c0_1 = arith.constant 0 : index
    %0 = vector.load %arg1[%c0, %c0_0, %c0_1] : memref<2x8x32xf32, #tpu.memory_space<vmem>>, vector<2x8x32xf32>
    %c0_2 = arith.constant 0 : index
    %c0_3 = arith.constant 0 : index
    %1 = vector.load %arg3[%c0_2, %c0_3] : memref<8x32xf32, #tpu.memory_space<vmem>>, vector<8x32xf32>
    %2 = vector.shape_cast %1 : vector<8x32xf32> to vector<1x8x32xf32>
    %3 = vector.broadcast %2 : vector<1x8x32xf32> to vector<2x8x32xf32>
    %4 = arith.addf %0, %3 : vector<2x8x32xf32>
    %c0_4 = arith.constant 0 : index
    %c0_5 = arith.constant 0 : index
    %5 = vector.load %arg4[%c0_4, %c0_5] : memref<32x96xbf16, #tpu.memory_space<vmem>>, vector<32x96xbf16>
    %c0_6 = arith.constant 0 : index
    %c0_7 = arith.constant 0 : index
    %6 = vector.load %arg5[%c0_6, %c0_7] : memref<1x96xf32, #tpu.memory_space<vmem>>, vector<1x96xf32>
    %c0_8 = arith.constant 0 : index
    %c0_9 = arith.constant 0 : index
    %7 = vector.load %arg6[%c0_8, %c0_9] : memref<32x32xbf16, #tpu.memory_space<vmem>>, vector<32x32xbf16>
    %c0_10 = arith.constant 0 : index
    %c0_11 = arith.constant 0 : index
    %8 = vector.load %arg7[%c0_10, %c0_11] : memref<1x32xf32, #tpu.memory_space<vmem>>, vector<1x32xf32>
    %c0_12 = arith.constant 0 : index
    %c0_13 = arith.constant 0 : index
    %9 = vector.load %arg8[%c0_12, %c0_13] : memref<1x32xf32, #tpu.memory_space<vmem>>, vector<1x32xf32>
    %c0_14 = arith.constant 0 : index
    %c0_15 = arith.constant 0 : index
    %10 = vector.load %arg9[%c0_14, %c0_15] : memref<1x32xf32, #tpu.memory_space<vmem>>, vector<1x32xf32>
    %c0_16 = arith.constant 0 : index
    %c0_17 = arith.constant 0 : index
    %11 = vector.load %arg10[%c0_16, %c0_17] : memref<32x2048xbf16, #tpu.memory_space<vmem>>, vector<32x2048xbf16>
    %c0_18 = arith.constant 0 : index
    %c0_19 = arith.constant 0 : index
    %12 = vector.load %arg11[%c0_18, %c0_19] : memref<1x2048xf32, #tpu.memory_space<vmem>>, vector<1x2048xf32>
    %c0_20 = arith.constant 0 : index
    %c0_21 = arith.constant 0 : index
    %13 = vector.load %arg12[%c0_20, %c0_21] : memref<2048x32xbf16, #tpu.memory_space<vmem>>, vector<2048x32xbf16>
    %c0_22 = arith.constant 0 : index
    %c0_23 = arith.constant 0 : index
    %14 = vector.load %arg13[%c0_22, %c0_23] : memref<1x32xf32, #tpu.memory_space<vmem>>, vector<1x32xf32>
    %c0_24 = arith.constant 0 : index
    %c0_25 = arith.constant 0 : index
    %15 = vector.load %arg14[%c0_24, %c0_25] : memref<1x32xf32, #tpu.memory_space<vmem>>, vector<1x32xf32>
    %c0_26 = arith.constant 0 : index
    %c0_27 = arith.constant 0 : index
    %16 = vector.load %arg15[%c0_26, %c0_27] : memref<1x32xf32, #tpu.memory_space<vmem>>, vector<1x32xf32>
    %17 = vector.shape_cast %4 : vector<2x8x32xf32> to vector<16x32xf32>
    %18 = arith.truncf %17 : vector<16x32xf32> to vector<16x32xbf16>
    %cst = arith.constant dense<0.000000e+00> : vector<16x96xf32>
    %19 = tpu.matmul %18, %5, %cst {dimension_numbers = #tpu.dot_dimension_numbers<[1], [0], [0], [1], [0, 0, 1, 1], [], []>} : vector<16x32xbf16>, vector<32x96xbf16>, vector<16x96xf32> -> vector<16x96xf32>
    %20 = vector.broadcast %6 : vector<1x96xf32> to vector<16x96xf32>
    %21 = arith.addf %19, %20 : vector<16x96xf32>
    %22 = vector.extract_strided_slice %21 {offsets = [0, 0], sizes = [16, 32], strides = [1, 1]} : vector<16x96xf32> to vector<16x32xf32>
    %23 = arith.truncf %22 : vector<16x32xf32> to vector<16x32xbf16>
    %24 = vector.shape_cast %23 : vector<16x32xbf16> to vector<2x8x4x8xbf16>
    %25 = tpu.transpose %24, [0, 2, 1, 3] : vector<2x8x4x8xbf16> -> vector<2x4x8x8xbf16>
    %26 = vector.shape_cast %25 : vector<2x4x8x8xbf16> to vector<8x8x8xbf16>
    %27 = vector.extract_strided_slice %21 {offsets = [0, 32], sizes = [16, 32], strides = [1, 1]} : vector<16x96xf32> to vector<16x32xf32>
    %28 = arith.truncf %27 : vector<16x32xf32> to vector<16x32xbf16>
    %29 = vector.shape_cast %28 : vector<16x32xbf16> to vector<2x8x4x8xbf16>
    %30 = tpu.transpose %29, [0, 2, 1, 3] : vector<2x8x4x8xbf16> -> vector<2x4x8x8xbf16>
    %31 = vector.shape_cast %30 : vector<2x4x8x8xbf16> to vector<8x8x8xbf16>
    %32 = vector.extract_strided_slice %21 {offsets = [0, 64], sizes = [16, 32], strides = [1, 1]} : vector<16x96xf32> to vector<16x32xf32>
    %33 = arith.truncf %32 : vector<16x32xf32> to vector<16x32xbf16>
    %34 = vector.shape_cast %33 : vector<16x32xbf16> to vector<2x8x4x8xbf16>
    %35 = tpu.transpose %34, [0, 2, 1, 3] : vector<2x8x4x8xbf16> -> vector<2x4x8x8xbf16>
    %36 = vector.shape_cast %35 : vector<2x4x8x8xbf16> to vector<8x8x8xbf16>
    "tpu.trace_start"() <{level = 10 : i32, message = "nqd,nkd->nqk"}> : () -> ()
    %cst_28 = arith.constant dense<0.000000e+00> : vector<8x8x8xf32>
    %37 = tpu.matmul %26, %31, %cst_28 {dimension_numbers = #tpu.dot_dimension_numbers<[2], [2], [1], [1], [0, 0, 0, 1, 1, 1], [0], [0]>} : vector<8x8x8xbf16>, vector<8x8x8xbf16>, vector<8x8x8xf32> -> vector<8x8x8xf32>
    "tpu.trace_stop"() : () -> ()
    %cst_29 = arith.constant dense<0xFF800000> : vector<8x8xf32>
    %38 = vector.multi_reduction <maximumf>, %37, %cst_29 [2] : vector<8x8x8xf32> to vector<8x8xf32>
    %39 = vector.shape_cast %38 : vector<8x8xf32> to vector<8x8x1xf32>
    %40 = vector.broadcast %39 : vector<8x8x1xf32> to vector<8x8x8xf32>
    %41 = arith.subf %37, %40 : vector<8x8x8xf32>
    %42 = math.exp %41 : vector<8x8x8xf32>
    %cst_30 = arith.constant dense<0.000000e+00> : vector<8x8xf32>
    %43 = vector.multi_reduction <add>, %42, %cst_30 [2] : vector<8x8x8xf32> to vector<8x8xf32>
    %44 = vector.shape_cast %43 : vector<8x8xf32> to vector<8x8x1xf32>
    %45 = tpu.reciprocal %44 {approx = true} : vector<8x8x1xf32> -> vector<8x8x1xf32>
    %46 = vector.broadcast %45 : vector<8x8x1xf32> to vector<8x8x8xf32>
    %47 = arith.mulf %42, %46 : vector<8x8x8xf32>
    %48 = arith.truncf %47 : vector<8x8x8xf32> to vector<8x8x8xbf16>
    "tpu.trace_start"() <{level = 10 : i32, message = "nqk,nkd->nqd"}> : () -> ()
    %cst_31 = arith.constant dense<0.000000e+00> : vector<8x8x8xf32>
    %49 = tpu.matmul %48, %36, %cst_31 {dimension_numbers = #tpu.dot_dimension_numbers<[2], [1], [1], [2], [0, 0, 0, 1, 1, 2], [0], [0]>} : vector<8x8x8xbf16>, vector<8x8x8xbf16>, vector<8x8x8xf32> -> vector<8x8x8xf32>
    "tpu.trace_stop"() : () -> ()
    %50 = arith.truncf %49 : vector<8x8x8xf32> to vector<8x8x8xbf16>
    %51 = vector.shape_cast %50 : vector<8x8x8xbf16> to vector<2x4x8x8xbf16>
    %52 = tpu.transpose %51, [0, 2, 1, 3] : vector<2x4x8x8xbf16> -> vector<2x8x4x8xbf16>
    %53 = vector.shape_cast %52 : vector<2x8x4x8xbf16> to vector<16x32xbf16>
    %cst_32 = arith.constant dense<0.000000e+00> : vector<16x32xf32>
    %54 = tpu.matmul %53, %7, %cst_32 {dimension_numbers = #tpu.dot_dimension_numbers<[1], [0], [0], [1], [0, 0, 1, 1], [], []>} : vector<16x32xbf16>, vector<32x32xbf16>, vector<16x32xf32> -> vector<16x32xf32>
    %55 = vector.broadcast %8 : vector<1x32xf32> to vector<16x32xf32>
    %56 = arith.addf %54, %55 : vector<16x32xf32>
    %57 = vector.shape_cast %56 : vector<16x32xf32> to vector<2x8x32xf32>
    %58 = arith.addf %4, %57 : vector<2x8x32xf32>
    %cst_33 = arith.constant dense<0.000000e+00> : vector<2x8xf32>
    %59 = vector.multi_reduction <add>, %58, %cst_33 [2] : vector<2x8x32xf32> to vector<2x8xf32>
    %60 = vector.shape_cast %59 : vector<2x8xf32> to vector<2x8x1xf32>
    %cst_34 = arith.constant 3.200000e+01 : f32
    %61 = vector.broadcast %cst_34 : f32 to vector<2x8x1xf32>
    %62 = arith.divf %60, %61 : vector<2x8x1xf32>
    %63 = vector.broadcast %62 : vector<2x8x1xf32> to vector<2x8x32xf32>
    %64 = arith.subf %58, %63 : vector<2x8x32xf32>
    %65 = arith.mulf %64, %64 : vector<2x8x32xf32>
    %cst_35 = arith.constant dense<0.000000e+00> : vector<2x8xf32>
    %66 = vector.multi_reduction <add>, %65, %cst_35 [2] : vector<2x8x32xf32> to vector<2x8xf32>
    %67 = vector.shape_cast %66 : vector<2x8xf32> to vector<2x8x1xf32>
    %cst_36 = arith.constant 3.200000e+01 : f32
    %68 = vector.broadcast %cst_36 : f32 to vector<2x8x1xf32>
    %69 = arith.divf %67, %68 : vector<2x8x1xf32>
    %70 = vector.broadcast %62 : vector<2x8x1xf32> to vector<2x8x32xf32>
    %71 = arith.subf %58, %70 : vector<2x8x32xf32>
    %cst_37 = arith.constant 9.99999974E-6 : f32
    %72 = vector.broadcast %cst_37 : f32 to vector<2x8x1xf32>
    %73 = arith.addf %69, %72 : vector<2x8x1xf32>
    %74 = math.rsqrt %73 : vector<2x8x1xf32>
    %75 = vector.broadcast %74 : vector<2x8x1xf32> to vector<2x8x32xf32>
    %76 = arith.mulf %71, %75 : vector<2x8x32xf32>
    %77 = vector.shape_cast %9 : vector<1x32xf32> to vector<1x1x32xf32>
    %78 = vector.broadcast %77 : vector<1x1x32xf32> to vector<2x8x32xf32>
    %79 = arith.mulf %76, %78 : vector<2x8x32xf32>
    %80 = vector.shape_cast %10 : vector<1x32xf32> to vector<1x1x32xf32>
    %81 = vector.broadcast %80 : vector<1x1x32xf32> to vector<2x8x32xf32>
    %82 = arith.addf %79, %81 : vector<2x8x32xf32>
    %83 = vector.shape_cast %82 : vector<2x8x32xf32> to vector<16x32xf32>
    %84 = arith.truncf %83 : vector<16x32xf32> to vector<16x32xbf16>
    %cst_38 = arith.constant dense<0.000000e+00> : vector<16x2048xf32>
    %85 = tpu.matmul %84, %11, %cst_38 {dimension_numbers = #tpu.dot_dimension_numbers<[1], [0], [0], [1], [0, 0, 1, 1], [], []>} : vector<16x32xbf16>, vector<32x2048xbf16>, vector<16x2048xf32> -> vector<16x2048xf32>
    %86 = vector.broadcast %12 : vector<1x2048xf32> to vector<16x2048xf32>
    %87 = arith.addf %85, %86 : vector<16x2048xf32>
    %cst_39 = arith.constant 0.000000e+00 : f32
    %88 = vector.broadcast %cst_39 : f32 to vector<16x2048xf32>
    %89 = arith.maximumf %87, %88 : vector<16x2048xf32>
    %90 = arith.truncf %89 : vector<16x2048xf32> to vector<16x2048xbf16>
    %cst_40 = arith.constant dense<0.000000e+00> : vector<16x32xf32>
    %91 = tpu.matmul %90, %13, %cst_40 {dimension_numbers = #tpu.dot_dimension_numbers<[1], [0], [0], [1], [0, 0, 1, 1], [], []>} : vector<16x2048xbf16>, vector<2048x32xbf16>, vector<16x32xf32> -> vector<16x32xf32>
    %92 = vector.broadcast %14 : vector<1x32xf32> to vector<16x32xf32>
    %93 = arith.addf %91, %92 : vector<16x32xf32>
    %94 = vector.shape_cast %93 : vector<16x32xf32> to vector<2x8x32xf32>
    %95 = arith.addf %82, %94 : vector<2x8x32xf32>
    %cst_41 = arith.constant dense<0.000000e+00> : vector<2x8xf32>
    %96 = vector.multi_reduction <add>, %95, %cst_41 [2] : vector<2x8x32xf32> to vector<2x8xf32>
    %97 = vector.shape_cast %96 : vector<2x8xf32> to vector<2x8x1xf32>
    %cst_42 = arith.constant 3.200000e+01 : f32
    %98 = vector.broadcast %cst_42 : f32 to vector<2x8x1xf32>
    %99 = arith.divf %97, %98 : vector<2x8x1xf32>
    %100 = vector.broadcast %99 : vector<2x8x1xf32> to vector<2x8x32xf32>
    %101 = arith.subf %95, %100 : vector<2x8x32xf32>
    %102 = arith.mulf %101, %101 : vector<2x8x32xf32>
    %cst_43 = arith.constant dense<0.000000e+00> : vector<2x8xf32>
    %103 = vector.multi_reduction <add>, %102, %cst_43 [2] : vector<2x8x32xf32> to vector<2x8xf32>
    %104 = vector.shape_cast %103 : vector<2x8xf32> to vector<2x8x1xf32>
    %cst_44 = arith.constant 3.200000e+01 : f32
    %105 = vector.broadcast %cst_44 : f32 to vector<2x8x1xf32>
    %106 = arith.divf %104, %105 : vector<2x8x1xf32>
    %107 = vector.broadcast %99 : vector<2x8x1xf32> to vector<2x8x32xf32>
    %108 = arith.subf %95, %107 : vector<2x8x32xf32>
    %cst_45 = arith.constant 9.99999974E-6 : f32
    %109 = vector.broadcast %cst_45 : f32 to vector<2x8x1xf32>
    %110 = arith.addf %106, %109 : vector<2x8x1xf32>
    %111 = math.rsqrt %110 : vector<2x8x1xf32>
    %112 = vector.broadcast %111 : vector<2x8x1xf32> to vector<2x8x32xf32>
    %113 = arith.mulf %108, %112 : vector<2x8x32xf32>
    %114 = vector.shape_cast %15 : vector<1x32xf32> to vector<1x1x32xf32>
    %115 = vector.broadcast %114 : vector<1x1x32xf32> to vector<2x8x32xf32>
    %116 = arith.mulf %113, %115 : vector<2x8x32xf32>
    %117 = vector.shape_cast %16 : vector<1x32xf32> to vector<1x1x32xf32>
    %118 = vector.broadcast %117 : vector<1x1x32xf32> to vector<2x8x32xf32>
    %119 = arith.addf %116, %118 : vector<2x8x32xf32>
    %c0_46 = arith.constant 0 : index
    %c0_47 = arith.constant 0 : index
    %120 = vector.load %arg16[%c0_46, %c0_47] : memref<32x96xbf16, #tpu.memory_space<vmem>>, vector<32x96xbf16>
    %c0_48 = arith.constant 0 : index
    %c0_49 = arith.constant 0 : index
    %121 = vector.load %arg17[%c0_48, %c0_49] : memref<1x96xf32, #tpu.memory_space<vmem>>, vector<1x96xf32>
    %c0_50 = arith.constant 0 : index
    %c0_51 = arith.constant 0 : index
    %122 = vector.load %arg18[%c0_50, %c0_51] : memref<32x32xbf16, #tpu.memory_space<vmem>>, vector<32x32xbf16>
    %c0_52 = arith.constant 0 : index
    %c0_53 = arith.constant 0 : index
    %123 = vector.load %arg19[%c0_52, %c0_53] : memref<1x32xf32, #tpu.memory_space<vmem>>, vector<1x32xf32>
    %c0_54 = arith.constant 0 : index
    %c0_55 = arith.constant 0 : index
    %124 = vector.load %arg20[%c0_54, %c0_55] : memref<1x32xf32, #tpu.memory_space<vmem>>, vector<1x32xf32>
    %c0_56 = arith.constant 0 : index
    %c0_57 = arith.constant 0 : index
    %125 = vector.load %arg21[%c0_56, %c0_57] : memref<1x32xf32, #tpu.memory_space<vmem>>, vector<1x32xf32>
    %c0_58 = arith.constant 0 : index
    %c0_59 = arith.constant 0 : index
    %126 = vector.load %arg22[%c0_58, %c0_59] : memref<32x2048xbf16, #tpu.memory_space<vmem>>, vector<32x2048xbf16>
    %c0_60 = arith.constant 0 : index
    %c0_61 = arith.constant 0 : index
    %127 = vector.load %arg23[%c0_60, %c0_61] : memref<1x2048xf32, #tpu.memory_space<vmem>>, vector<1x2048xf32>
    %c0_62 = arith.constant 0 : index
    %c0_63 = arith.constant 0 : index
    %128 = vector.load %arg24[%c0_62, %c0_63] : memref<2048x32xbf16, #tpu.memory_space<vmem>>, vector<2048x32xbf16>
    %c0_64 = arith.constant 0 : index
    %c0_65 = arith.constant 0 : index
    %129 = vector.load %arg25[%c0_64, %c0_65] : memref<1x32xf32, #tpu.memory_space<vmem>>, vector<1x32xf32>
    %c0_66 = arith.constant 0 : index
    %c0_67 = arith.constant 0 : index
    %130 = vector.load %arg26[%c0_66, %c0_67] : memref<1x32xf32, #tpu.memory_space<vmem>>, vector<1x32xf32>
    %c0_68 = arith.constant 0 : index
    %c0_69 = arith.constant 0 : index
    %131 = vector.load %arg27[%c0_68, %c0_69] : memref<1x32xf32, #tpu.memory_space<vmem>>, vector<1x32xf32>
    %132 = vector.shape_cast %119 : vector<2x8x32xf32> to vector<16x32xf32>
    %133 = arith.truncf %132 : vector<16x32xf32> to vector<16x32xbf16>
    %cst_70 = arith.constant dense<0.000000e+00> : vector<16x96xf32>
    %134 = tpu.matmul %133, %120, %cst_70 {dimension_numbers = #tpu.dot_dimension_numbers<[1], [0], [0], [1], [0, 0, 1, 1], [], []>} : vector<16x32xbf16>, vector<32x96xbf16>, vector<16x96xf32> -> vector<16x96xf32>
    %135 = vector.broadcast %121 : vector<1x96xf32> to vector<16x96xf32>
    %136 = arith.addf %134, %135 : vector<16x96xf32>
    %137 = vector.extract_strided_slice %136 {offsets = [0, 0], sizes = [16, 32], strides = [1, 1]} : vector<16x96xf32> to vector<16x32xf32>
    %138 = arith.truncf %137 : vector<16x32xf32> to vector<16x32xbf16>
    %139 = vector.shape_cast %138 : vector<16x32xbf16> to vector<2x8x4x8xbf16>
    %140 = tpu.transpose %139, [0, 2, 1, 3] : vector<2x8x4x8xbf16> -> vector<2x4x8x8xbf16>
    %141 = vector.shape_cast %140 : vector<2x4x8x8xbf16> to vector<8x8x8xbf16>
    %142 = vector.extract_strided_slice %136 {offsets = [0, 32], sizes = [16, 32], strides = [1, 1]} : vector<16x96xf32> to vector<16x32xf32>
    %143 = arith.truncf %142 : vector<16x32xf32> to vector<16x32xbf16>
    %144 = vector.shape_cast %143 : vector<16x32xbf16> to vector<2x8x4x8xbf16>
    %145 = tpu.transpose %144, [0, 2, 1, 3] : vector<2x8x4x8xbf16> -> vector<2x4x8x8xbf16>
    %146 = vector.shape_cast %145 : vector<2x4x8x8xbf16> to vector<8x8x8xbf16>
    %147 = vector.extract_strided_slice %136 {offsets = [0, 64], sizes = [16, 32], strides = [1, 1]} : vector<16x96xf32> to vector<16x32xf32>
    %148 = arith.truncf %147 : vector<16x32xf32> to vector<16x32xbf16>
    %149 = vector.shape_cast %148 : vector<16x32xbf16> to vector<2x8x4x8xbf16>
    %150 = tpu.transpose %149, [0, 2, 1, 3] : vector<2x8x4x8xbf16> -> vector<2x4x8x8xbf16>
    %151 = vector.shape_cast %150 : vector<2x4x8x8xbf16> to vector<8x8x8xbf16>
    "tpu.trace_start"() <{level = 10 : i32, message = "nqd,nkd->nqk"}> : () -> ()
    %cst_71 = arith.constant dense<0.000000e+00> : vector<8x8x8xf32>
    %152 = tpu.matmul %141, %146, %cst_71 {dimension_numbers = #tpu.dot_dimension_numbers<[2], [2], [1], [1], [0, 0, 0, 1, 1, 1], [0], [0]>} : vector<8x8x8xbf16>, vector<8x8x8xbf16>, vector<8x8x8xf32> -> vector<8x8x8xf32>
    "tpu.trace_stop"() : () -> ()
    %cst_72 = arith.constant dense<0xFF800000> : vector<8x8xf32>
    %153 = vector.multi_reduction <maximumf>, %152, %cst_72 [2] : vector<8x8x8xf32> to vector<8x8xf32>
    %154 = vector.shape_cast %153 : vector<8x8xf32> to vector<8x8x1xf32>
    %155 = vector.broadcast %154 : vector<8x8x1xf32> to vector<8x8x8xf32>
    %156 = arith.subf %152, %155 : vector<8x8x8xf32>
    %157 = math.exp %156 : vector<8x8x8xf32>
    %cst_73 = arith.constant dense<0.000000e+00> : vector<8x8xf32>
    %158 = vector.multi_reduction <add>, %157, %cst_73 [2] : vector<8x8x8xf32> to vector<8x8xf32>
    %159 = vector.shape_cast %158 : vector<8x8xf32> to vector<8x8x1xf32>
    %160 = tpu.reciprocal %159 {approx = true} : vector<8x8x1xf32> -> vector<8x8x1xf32>
    %161 = vector.broadcast %160 : vector<8x8x1xf32> to vector<8x8x8xf32>
    %162 = arith.mulf %157, %161 : vector<8x8x8xf32>
    %163 = arith.truncf %162 : vector<8x8x8xf32> to vector<8x8x8xbf16>
    "tpu.trace_start"() <{level = 10 : i32, message = "nqk,nkd->nqd"}> : () -> ()
    %cst_74 = arith.constant dense<0.000000e+00> : vector<8x8x8xf32>
    %164 = tpu.matmul %163, %151, %cst_74 {dimension_numbers = #tpu.dot_dimension_numbers<[2], [1], [1], [2], [0, 0, 0, 1, 1, 2], [0], [0]>} : vector<8x8x8xbf16>, vector<8x8x8xbf16>, vector<8x8x8xf32> -> vector<8x8x8xf32>
    "tpu.trace_stop"() : () -> ()
    %165 = arith.truncf %164 : vector<8x8x8xf32> to vector<8x8x8xbf16>
    %166 = vector.shape_cast %165 : vector<8x8x8xbf16> to vector<2x4x8x8xbf16>
    %167 = tpu.transpose %166, [0, 2, 1, 3] : vector<2x4x8x8xbf16> -> vector<2x8x4x8xbf16>
    %168 = vector.shape_cast %167 : vector<2x8x4x8xbf16> to vector<16x32xbf16>
    %cst_75 = arith.constant dense<0.000000e+00> : vector<16x32xf32>
    %169 = tpu.matmul %168, %122, %cst_75 {dimension_numbers = #tpu.dot_dimension_numbers<[1], [0], [0], [1], [0, 0, 1, 1], [], []>} : vector<16x32xbf16>, vector<32x32xbf16>, vector<16x32xf32> -> vector<16x32xf32>
    %170 = vector.broadcast %123 : vector<1x32xf32> to vector<16x32xf32>
    %171 = arith.addf %169, %170 : vector<16x32xf32>
    %172 = vector.shape_cast %171 : vector<16x32xf32> to vector<2x8x32xf32>
    %173 = arith.addf %119, %172 : vector<2x8x32xf32>
    %cst_76 = arith.constant dense<0.000000e+00> : vector<2x8xf32>
    %174 = vector.multi_reduction <add>, %173, %cst_76 [2] : vector<2x8x32xf32> to vector<2x8xf32>
    %175 = vector.shape_cast %174 : vector<2x8xf32> to vector<2x8x1xf32>
    %cst_77 = arith.constant 3.200000e+01 : f32
    %176 = vector.broadcast %cst_77 : f32 to vector<2x8x1xf32>
    %177 = arith.divf %175, %176 : vector<2x8x1xf32>
    %178 = vector.broadcast %177 : vector<2x8x1xf32> to vector<2x8x32xf32>
    %179 = arith.subf %173, %178 : vector<2x8x32xf32>
    %180 = arith.mulf %179, %179 : vector<2x8x32xf32>
    %cst_78 = arith.constant dense<0.000000e+00> : vector<2x8xf32>
    %181 = vector.multi_reduction <add>, %180, %cst_78 [2] : vector<2x8x32xf32> to vector<2x8xf32>
    %182 = vector.shape_cast %181 : vector<2x8xf32> to vector<2x8x1xf32>
    %cst_79 = arith.constant 3.200000e+01 : f32
    %183 = vector.broadcast %cst_79 : f32 to vector<2x8x1xf32>
    %184 = arith.divf %182, %183 : vector<2x8x1xf32>
    %185 = vector.broadcast %177 : vector<2x8x1xf32> to vector<2x8x32xf32>
    %186 = arith.subf %173, %185 : vector<2x8x32xf32>
    %cst_80 = arith.constant 9.99999974E-6 : f32
    %187 = vector.broadcast %cst_80 : f32 to vector<2x8x1xf32>
    %188 = arith.addf %184, %187 : vector<2x8x1xf32>
    %189 = math.rsqrt %188 : vector<2x8x1xf32>
    %190 = vector.broadcast %189 : vector<2x8x1xf32> to vector<2x8x32xf32>
    %191 = arith.mulf %186, %190 : vector<2x8x32xf32>
    %192 = vector.shape_cast %124 : vector<1x32xf32> to vector<1x1x32xf32>
    %193 = vector.broadcast %192 : vector<1x1x32xf32> to vector<2x8x32xf32>
    %194 = arith.mulf %191, %193 : vector<2x8x32xf32>
    %195 = vector.shape_cast %125 : vector<1x32xf32> to vector<1x1x32xf32>
    %196 = vector.broadcast %195 : vector<1x1x32xf32> to vector<2x8x32xf32>
    %197 = arith.addf %194, %196 : vector<2x8x32xf32>
    %198 = vector.shape_cast %197 : vector<2x8x32xf32> to vector<16x32xf32>
    %199 = arith.truncf %198 : vector<16x32xf32> to vector<16x32xbf16>
    %cst_81 = arith.constant dense<0.000000e+00> : vector<16x2048xf32>
    %200 = tpu.matmul %199, %126, %cst_81 {dimension_numbers = #tpu.dot_dimension_numbers<[1], [0], [0], [1], [0, 0, 1, 1], [], []>} : vector<16x32xbf16>, vector<32x2048xbf16>, vector<16x2048xf32> -> vector<16x2048xf32>
    %201 = vector.broadcast %127 : vector<1x2048xf32> to vector<16x2048xf32>
    %202 = arith.addf %200, %201 : vector<16x2048xf32>
    %cst_82 = arith.constant 0.000000e+00 : f32
    %203 = vector.broadcast %cst_82 : f32 to vector<16x2048xf32>
    %204 = arith.maximumf %202, %203 : vector<16x2048xf32>
    %205 = arith.truncf %204 : vector<16x2048xf32> to vector<16x2048xbf16>
    %cst_83 = arith.constant dense<0.000000e+00> : vector<16x32xf32>
    %206 = tpu.matmul %205, %128, %cst_83 {dimension_numbers = #tpu.dot_dimension_numbers<[1], [0], [0], [1], [0, 0, 1, 1], [], []>} : vector<16x2048xbf16>, vector<2048x32xbf16>, vector<16x32xf32> -> vector<16x32xf32>
    %207 = vector.broadcast %129 : vector<1x32xf32> to vector<16x32xf32>
    %208 = arith.addf %206, %207 : vector<16x32xf32>
    %209 = vector.shape_cast %208 : vector<16x32xf32> to vector<2x8x32xf32>
    %210 = arith.addf %197, %209 : vector<2x8x32xf32>
    %cst_84 = arith.constant dense<0.000000e+00> : vector<2x8xf32>
    %211 = vector.multi_reduction <add>, %210, %cst_84 [2] : vector<2x8x32xf32> to vector<2x8xf32>
    %212 = vector.shape_cast %211 : vector<2x8xf32> to vector<2x8x1xf32>
    %cst_85 = arith.constant 3.200000e+01 : f32
    %213 = vector.broadcast %cst_85 : f32 to vector<2x8x1xf32>
    %214 = arith.divf %212, %213 : vector<2x8x1xf32>
    %215 = vector.broadcast %214 : vector<2x8x1xf32> to vector<2x8x32xf32>
    %216 = arith.subf %210, %215 : vector<2x8x32xf32>
    %217 = arith.mulf %216, %216 : vector<2x8x32xf32>
    %cst_86 = arith.constant dense<0.000000e+00> : vector<2x8xf32>
    %218 = vector.multi_reduction <add>, %217, %cst_86 [2] : vector<2x8x32xf32> to vector<2x8xf32>
    %219 = vector.shape_cast %218 : vector<2x8xf32> to vector<2x8x1xf32>
    %cst_87 = arith.constant 3.200000e+01 : f32
    %220 = vector.broadcast %cst_87 : f32 to vector<2x8x1xf32>
    %221 = arith.divf %219, %220 : vector<2x8x1xf32>
    %222 = vector.broadcast %214 : vector<2x8x1xf32> to vector<2x8x32xf32>
    %223 = arith.subf %210, %222 : vector<2x8x32xf32>
    %cst_88 = arith.constant 9.99999974E-6 : f32
    %224 = vector.broadcast %cst_88 : f32 to vector<2x8x1xf32>
    %225 = arith.addf %221, %224 : vector<2x8x1xf32>
    %226 = math.rsqrt %225 : vector<2x8x1xf32>
    %227 = vector.broadcast %226 : vector<2x8x1xf32> to vector<2x8x32xf32>
    %228 = arith.mulf %223, %227 : vector<2x8x32xf32>
    %229 = vector.shape_cast %130 : vector<1x32xf32> to vector<1x1x32xf32>
    %230 = vector.broadcast %229 : vector<1x1x32xf32> to vector<2x8x32xf32>
    %231 = arith.mulf %228, %230 : vector<2x8x32xf32>
    %232 = vector.shape_cast %131 : vector<1x32xf32> to vector<1x1x32xf32>
    %233 = vector.broadcast %232 : vector<1x1x32xf32> to vector<2x8x32xf32>
    %234 = arith.addf %231, %233 : vector<2x8x32xf32>
    %235 = vector.extract_strided_slice %234 {offsets = [0, 7, 0], sizes = [2, 1, 32], strides = [1, 1, 1]} : vector<2x8x32xf32> to vector<2x1x32xf32>
    %236 = vector.shape_cast %235 : vector<2x1x32xf32> to vector<2x32xf32>
    %c0_89 = arith.constant 0 : index
    %c0_90 = arith.constant 0 : index
    %c0_91 = arith.constant 0 : index
    %237 = vector.load %arg2[%c0_89, %c0_90, %c0_91] : memref<2x1x1xf32, #tpu.memory_space<vmem>>, vector<2x1x1xf32>
    %238 = vector.shape_cast %237 : vector<2x1x1xf32> to vector<2x1xf32>
    %c0_92 = arith.constant 0 : index
    %c0_93 = arith.constant 0 : index
    %239 = vector.load %arg28[%c0_92, %c0_93] : memref<1x32xf32, #tpu.memory_space<vmem>>, vector<1x32xf32>
    %240 = vector.broadcast %238 : vector<2x1xf32> to vector<2x32xf32>
    %241 = vector.broadcast %239 : vector<1x32xf32> to vector<2x32xf32>
    %242 = arith.mulf %240, %241 : vector<2x32xf32>
    %c0_94 = arith.constant 0 : index
    %c0_95 = arith.constant 0 : index
    %243 = vector.load %arg29[%c0_94, %c0_95] : memref<1x32xf32, #tpu.memory_space<vmem>>, vector<1x32xf32>
    %244 = vector.broadcast %243 : vector<1x32xf32> to vector<2x32xf32>
    %245 = arith.addf %242, %244 : vector<2x32xf32>
    %246 = arith.truncf %236 : vector<2x32xf32> to vector<2x32xbf16>
    %c0_96 = arith.constant 0 : index
    %c0_97 = arith.constant 0 : index
    %247 = vector.load %arg30[%c0_96, %c0_97] : memref<32x512xbf16, #tpu.memory_space<vmem>>, vector<32x512xbf16>
    %cst_98 = arith.constant dense<0.000000e+00> : vector<2x512xf32>
    %248 = tpu.matmul %246, %247, %cst_98 {dimension_numbers = #tpu.dot_dimension_numbers<[1], [0], [0], [1], [0, 0, 1, 1], [], []>} : vector<2x32xbf16>, vector<32x512xbf16>, vector<2x512xf32> -> vector<2x512xf32>
    %249 = arith.truncf %245 : vector<2x32xf32> to vector<2x32xbf16>
    %c0_99 = arith.constant 0 : index
    %c0_100 = arith.constant 0 : index
    %250 = vector.load %arg31[%c0_99, %c0_100] : memref<32x512xbf16, #tpu.memory_space<vmem>>, vector<32x512xbf16>
    %cst_101 = arith.constant dense<0.000000e+00> : vector<2x512xf32>
    %251 = tpu.matmul %249, %250, %cst_101 {dimension_numbers = #tpu.dot_dimension_numbers<[1], [0], [0], [1], [0, 0, 1, 1], [], []>} : vector<2x32xbf16>, vector<32x512xbf16>, vector<2x512xf32> -> vector<2x512xf32>
    %252 = arith.addf %248, %251 : vector<2x512xf32>
    %c0_102 = arith.constant 0 : index
    %c0_103 = arith.constant 0 : index
    %253 = vector.load %arg32[%c0_102, %c0_103] : memref<1x512xf32, #tpu.memory_space<vmem>>, vector<1x512xf32>
    %254 = vector.broadcast %253 : vector<1x512xf32> to vector<2x512xf32>
    %255 = arith.addf %252, %254 : vector<2x512xf32>
    %cst_104 = arith.constant 0.000000e+00 : f32
    %256 = vector.broadcast %cst_104 : f32 to vector<2x512xf32>
    %257 = arith.cmpf oge, %255, %256 : vector<2x512xf32>
    %cst_105 = arith.constant 0.00999999977 : f32
    %258 = vector.broadcast %cst_105 : f32 to vector<2x512xf32>
    %259 = arith.mulf %258, %255 : vector<2x512xf32>
    %260 = arith.select %257, %255, %259 : vector<2x512xi1>, vector<2x512xf32>
    %261 = arith.truncf %260 : vector<2x512xf32> to vector<2x512xbf16>
    %c0_106 = arith.constant 0 : index
    %c0_107 = arith.constant 0 : index
    %262 = vector.load %arg33[%c0_106, %c0_107] : memref<512x256xbf16, #tpu.memory_space<vmem>>, vector<512x256xbf16>
    %cst_108 = arith.constant dense<0.000000e+00> : vector<2x256xf32>
    %263 = tpu.matmul %261, %262, %cst_108 {dimension_numbers = #tpu.dot_dimension_numbers<[1], [0], [0], [1], [0, 0, 1, 1], [], []>} : vector<2x512xbf16>, vector<512x256xbf16>, vector<2x256xf32> -> vector<2x256xf32>
    %c0_109 = arith.constant 0 : index
    %c0_110 = arith.constant 0 : index
    %264 = vector.load %arg34[%c0_109, %c0_110] : memref<1x256xf32, #tpu.memory_space<vmem>>, vector<1x256xf32>
    %265 = vector.broadcast %264 : vector<1x256xf32> to vector<2x256xf32>
    %266 = arith.addf %263, %265 : vector<2x256xf32>
    %cst_111 = arith.constant 0.000000e+00 : f32
    %267 = vector.broadcast %cst_111 : f32 to vector<2x256xf32>
    %268 = arith.cmpf oge, %266, %267 : vector<2x256xf32>
    %cst_112 = arith.constant 0.00999999977 : f32
    %269 = vector.broadcast %cst_112 : f32 to vector<2x256xf32>
    %270 = arith.mulf %269, %266 : vector<2x256xf32>
    %271 = arith.select %268, %266, %270 : vector<2x256xi1>, vector<2x256xf32>
    %c0_113 = arith.constant 0 : index
    %c0_114 = arith.constant 0 : index
    %272 = vector.load %arg35[%c0_113, %c0_114] : memref<256x4xf32, #tpu.memory_space<vmem>>, vector<256x4xf32>
    %cst_115 = arith.constant dense<0.000000e+00> : vector<2x4xf32>
    %273 = tpu.matmul %271, %272, %cst_115 {dimension_numbers = #tpu.dot_dimension_numbers<[1], [0], [0], [1], [0, 0, 1, 1], [], []>} : vector<2x256xf32>, vector<256x4xf32>, vector<2x4xf32> -> vector<2x4xf32>
    %c0_116 = arith.constant 0 : index
    %c0_117 = arith.constant 0 : index
    %274 = vector.load %arg36[%c0_116, %c0_117] : memref<1x4xf32, #tpu.memory_space<vmem>>, vector<1x4xf32>
    %275 = vector.broadcast %274 : vector<1x4xf32> to vector<2x4xf32>
    %276 = arith.addf %273, %275 : vector<2x4xf32>
    %cst_118 = arith.constant dense<0xFF800000> : vector<2xf32>
    %277 = vector.multi_reduction <maximumf>, %276, %cst_118 [1] : vector<2x4xf32> to vector<2xf32>
    %278 = vector.shape_cast %277 : vector<2xf32> to vector<2x1xf32>
    %279 = vector.broadcast %278 : vector<2x1xf32> to vector<2x4xf32>
    %280 = arith.subf %276, %279 : vector<2x4xf32>
    %281 = math.exp %280 : vector<2x4xf32>
    %cst_119 = arith.constant dense<0.000000e+00> : vector<2xf32>
    %282 = vector.multi_reduction <add>, %281, %cst_119 [1] : vector<2x4xf32> to vector<2xf32>
    %283 = vector.shape_cast %282 : vector<2xf32> to vector<2x1xf32>
    %284 = vector.broadcast %283 : vector<2x1xf32> to vector<2x4xf32>
    %285 = arith.divf %281, %284 : vector<2x4xf32>
    %286 = vector.shape_cast %285 : vector<2x4xf32> to vector<2x1x4xf32>
    %c0_120 = arith.constant 0 : index
    %c0_121 = arith.constant 0 : index
    %c0_122 = arith.constant 0 : index
    %287 = vector.load %arg37[%c0_120, %c0_121, %c0_122] : memref<2x1x4xf32, #tpu.memory_space<vmem>>, vector<2x1x4xf32>
    tpu.vector_store %arg37[%c0_120, %c0_121, %c0_122], %286 {strides = array<i32>} : memref<2x1x4xf32, #tpu.memory_space<vmem>>, vector<2x1x4xf32>,
    return
  }
  func.func @transform_0(%arg0: i32) -> (i32, i32, i32) {
    %c0_i32 = arith.constant 0 : i32
    %c0_i32_0 = arith.constant 0 : i32
    %c0_i32_1 = arith.constant 0 : i32
    return %arg0, %c0_i32, %c0_i32_0 : i32, i32, i32
  }
  func.func @transform_1(%arg0: i32) -> (i32, i32, i32) {
    %c0_i32 = arith.constant 0 : i32
    %c0_i32_0 = arith.constant 0 : i32
    %c0_i32_1 = arith.constant 0 : i32
    return %arg0, %c0_i32, %c0_i32_0 : i32, i32, i32
  }
  func.func @transform_2(%arg0: i32) -> (i32, i32) {
    %c0_i32 = arith.constant 0 : i32
    %c0_i32_0 = arith.constant 0 : i32
    %c0_i32_1 = arith.constant 0 : i32
    return %c0_i32, %c0_i32_0 : i32, i32
  }
  func.func @transform_3(%arg0: i32) -> (i32, i32) {
    %c0_i32 = arith.constant 0 : i32
    %c0_i32_0 = arith.constant 0 : i32
    %c0_i32_1 = arith.constant 0 : i32
    return %c0_i32, %c0_i32_0 : i32, i32
  }
  func.func @transform_4(%arg0: i32) -> (i32, i32) {
    %c0_i32 = arith.constant 0 : i32
    %c0_i32_0 = arith.constant 0 : i32
    %c0_i32_1 = arith.constant 0 : i32
    return %c0_i32, %c0_i32_0 : i32, i32
  }
  func.func @transform_5(%arg0: i32) -> (i32, i32) {
    %c0_i32 = arith.constant 0 : i32
    %c0_i32_0 = arith.constant 0 : i32
    %c0_i32_1 = arith.constant 0 : i32
    return %c0_i32, %c0_i32_0 : i32, i32
  }
  func.func @transform_6(%arg0: i32) -> (i32, i32) {
    %c0_i32 = arith.constant 0 : i32
    %c0_i32_0 = arith.constant 0 : i32
    %c0_i32_1 = arith.constant 0 : i32
    return %c0_i32, %c0_i32_0 : i32, i32
  }
  func.func @transform_7(%arg0: i32) -> (i32, i32) {
    %c0_i32 = arith.constant 0 : i32
    %c0_i32_0 = arith.constant 0 : i32
    %c0_i32_1 = arith.constant 0 : i32
    return %c0_i32, %c0_i32_0 : i32, i32
  }
  func.func @transform_8(%arg0: i32) -> (i32, i32) {
    %c0_i32 = arith.constant 0 : i32
    %c0_i32_0 = arith.constant 0 : i32
    %c0_i32_1 = arith.constant 0 : i32
    return %c0_i32, %c0_i32_0 : i32, i32
  }
  func.func @transform_9(%arg0: i32) -> (i32, i32) {
    %c0_i32 = arith.constant 0 : i32
    %c0_i32_0 = arith.constant 0 : i32
    %c0_i32_1 = arith.constant 0 : i32
    return %c0_i32, %c0_i32_0 : i32, i32
  }
  func.func @transform_10(%arg0: i32) -> (i32, i32) {
    %c0_i32 = arith.constant 0 : i32
    %c0_i32_0 = arith.constant 0 : i32
    %c0_i32_1 = arith.constant 0 : i32
    return %c0_i32, %c0_i32_0 : i32, i32
  }
  func.func @transform_11(%arg0: i32) -> (i32, i32) {
    %c0_i32 = arith.constant 0 : i32
    %c0_i32_0 = arith.constant 0 : i32
    %c0_i32_1 = arith.constant 0 : i32
    return %c0_i32, %c0_i32_0 : i32, i32
  }
  func.func @transform_12(%arg0: i32) -> (i32, i32) {
    %c0_i32 = arith.constant 0 : i32
    %c0_i32_0 = arith.constant 0 : i32
    %c0_i32_1 = arith.constant 0 : i32
    return %c0_i32, %c0_i32_0 : i32, i32
  }
  func.func @transform_13(%arg0: i32) -> (i32, i32) {
    %c0_i32 = arith.constant 0 : i32
    %c0_i32_0 = arith.constant 0 : i32
    %c0_i32_1 = arith.constant 0 : i32
    return %c0_i32, %c0_i32_0 : i32, i32
  }
  func.func @transform_14(%arg0: i32) -> (i32, i32) {
    %c0_i32 = arith.constant 0 : i32
    %c0_i32_0 = arith.constant 0 : i32
    %c0_i32_1 = arith.constant 0 : i32
    return %c0_i32, %c0_i32_0 : i32, i32
  }
  func.func @transform_15(%arg0: i32) -> (i32, i32) {
    %c0_i32 = arith.constant 0 : i32
    %c0_i32_0 = arith.constant 0 : i32
    %c0_i32_1 = arith.constant 0 : i32
    return %c0_i32, %c0_i32_0 : i32, i32
  }
  func.func @transform_16(%arg0: i32) -> (i32, i32) {
    %c0_i32 = arith.constant 0 : i32
    %c0_i32_0 = arith.constant 0 : i32
    %c0_i32_1 = arith.constant 0 : i32
    return %c0_i32, %c0_i32_0 : i32, i32
  }
  func.func @transform_17(%arg0: i32) -> (i32, i32) {
    %c0_i32 = arith.constant 0 : i32
    %c0_i32_0 = arith.constant 0 : i32
    %c0_i32_1 = arith.constant 0 : i32
    return %c0_i32, %c0_i32_0 : i32, i32
  }
  func.func @transform_18(%arg0: i32) -> (i32, i32) {
    %c0_i32 = arith.constant 0 : i32
    %c0_i32_0 = arith.constant 0 : i32
    %c0_i32_1 = arith.constant 0 : i32
    return %c0_i32, %c0_i32_0 : i32, i32
  }
  func.func @transform_19(%arg0: i32) -> (i32, i32) {
    %c0_i32 = arith.constant 0 : i32
    %c0_i32_0 = arith.constant 0 : i32
    %c0_i32_1 = arith.constant 0 : i32
    return %c0_i32, %c0_i32_0 : i32, i32
  }
  func.func @transform_20(%arg0: i32) -> (i32, i32) {
    %c0_i32 = arith.constant 0 : i32
    %c0_i32_0 = arith.constant 0 : i32
    %c0_i32_1 = arith.constant 0 : i32
    return %c0_i32, %c0_i32_0 : i32, i32
  }
  func.func @transform_21(%arg0: i32) -> (i32, i32) {
    %c0_i32 = arith.constant 0 : i32
    %c0_i32_0 = arith.constant 0 : i32
    %c0_i32_1 = arith.constant 0 : i32
    return %c0_i32, %c0_i32_0 : i32, i32
  }
  func.func @transform_22(%arg0: i32) -> (i32, i32) {
    %c0_i32 = arith.constant 0 : i32
    %c0_i32_0 = arith.constant 0 : i32
    %c0_i32_1 = arith.constant 0 : i32
    return %c0_i32, %c0_i32_0 : i32, i32
  }
  func.func @transform_23(%arg0: i32) -> (i32, i32) {
    %c0_i32 = arith.constant 0 : i32
    %c0_i32_0 = arith.constant 0 : i32
    %c0_i32_1 = arith.constant 0 : i32
    return %c0_i32, %c0_i32_0 : i32, i32
  }
  func.func @transform_24(%arg0: i32) -> (i32, i32) {
    %c0_i32 = arith.constant 0 : i32
    %c0_i32_0 = arith.constant 0 : i32
    %c0_i32_1 = arith.constant 0 : i32
    return %c0_i32, %c0_i32_0 : i32, i32
  }
  func.func @transform_25(%arg0: i32) -> (i32, i32) {
    %c0_i32 = arith.constant 0 : i32
    %c0_i32_0 = arith.constant 0 : i32
    %c0_i32_1 = arith.constant 0 : i32
    return %c0_i32, %c0_i32_0 : i32, i32
  }
  func.func @transform_26(%arg0: i32) -> (i32, i32) {
    %c0_i32 = arith.constant 0 : i32
    %c0_i32_0 = arith.constant 0 : i32
    %c0_i32_1 = arith.constant 0 : i32
    return %c0_i32, %c0_i32_0 : i32, i32
  }
  func.func @transform_27(%arg0: i32) -> (i32, i32) {
    %c0_i32 = arith.constant 0 : i32
    %c0_i32_0 = arith.constant 0 : i32
    %c0_i32_1 = arith.constant 0 : i32
    return %c0_i32, %c0_i32_0 : i32, i32
  }
  func.func @transform_28(%arg0: i32) -> (i32, i32) {
    %c0_i32 = arith.constant 0 : i32
    %c0_i32_0 = arith.constant 0 : i32
    %c0_i32_1 = arith.constant 0 : i32
    return %c0_i32, %c0_i32_0 : i32, i32
  }
  func.func @transform_29(%arg0: i32) -> (i32, i32) {
    %c0_i32 = arith.constant 0 : i32
    %c0_i32_0 = arith.constant 0 : i32
    %c0_i32_1 = arith.constant 0 : i32
    return %c0_i32, %c0_i32_0 : i32, i32
  }
  func.func @transform_30(%arg0: i32) -> (i32, i32) {
    %c0_i32 = arith.constant 0 : i32
    %c0_i32_0 = arith.constant 0 : i32
    %c0_i32_1 = arith.constant 0 : i32
    return %c0_i32, %c0_i32_0 : i32, i32
  }
  func.func @transform_31(%arg0: i32) -> (i32, i32) {
    %c0_i32 = arith.constant 0 : i32
    %c0_i32_0 = arith.constant 0 : i32
    %c0_i32_1 = arith.constant 0 : i32
    return %c0_i32, %c0_i32_0 : i32, i32
  }
  func.func @transform_32(%arg0: i32) -> (i32, i32) {
    %c0_i32 = arith.constant 0 : i32
    %c0_i32_0 = arith.constant 0 : i32
    %c0_i32_1 = arith.constant 0 : i32
    return %c0_i32, %c0_i32_0 : i32, i32
  }
  func.func @transform_33(%arg0: i32) -> (i32, i32) {
    %c0_i32 = arith.constant 0 : i32
    %c0_i32_0 = arith.constant 0 : i32
    %c0_i32_1 = arith.constant 0 : i32
    return %c0_i32, %c0_i32_0 : i32, i32
  }
  func.func @transform_34(%arg0: i32) -> (i32, i32) {
    %c0_i32 = arith.constant 0 : i32
    %c0_i32_0 = arith.constant 0 : i32
    %c0_i32_1 = arith.constant 0 : i32
    return %c0_i32, %c0_i32_0 : i32, i32
  }
  func.func @transform_35(%arg0: i32) -> (i32, i32) {
    %c0_i32 = arith.constant 0 : i32
    %c0_i32_0 = arith.constant 0 : i32
    %c0_i32_1 = arith.constant 0 : i32
    return %c0_i32, %c0_i32_0 : i32, i32
  }
  func.func @transform_36(%arg0: i32) -> (i32, i32, i32) {
    %c0_i32 = arith.constant 0 : i32
    %c0_i32_0 = arith.constant 0 : i32
    %c0_i32_1 = arith.constant 0 : i32
    return %arg0, %c0_i32, %c0_i32_0 : i32, i32, i32
  }
}

</mosaic_0001>

<bundles_post_ra>
// kernel: actor_forward.1
= control target key start
LH: loop header
LB: loop body
LE: loop exit
PB: predicated region body
PF: predicated region fallthrough
CT: control target
= control target key end

     0   :  { %s11558_s6 = smov 1   ;;  %s11559_s10 = smov 2   ;;  %s13301_s0 = inlined_call_operand.smem [shape: u32[37], index: -1, kind: input, shape index: {}] }
   0x1   :  { %s11618_s5 = sld [smem:[%s13301_s0]]   ;;  %s11560_s14 = smov 3  }
   0x2   :  { %s11623_s9 = sld [smem:[%s13301_s0 + %s11558_s6]]   ;;  %s11561_s18 = smov 4  }
   0x3   :  { %s11628_s13 = sld [smem:[%s13301_s0 + %s11559_s10]]   ;;  %s11562_s22 = smov 5  }
   0x4   :  { %s11633_s17 = sld [smem:[%s13301_s0 + %s11560_s14]]   ;;  %s11563_s26 = smov 6  }
   0x5   :  { %s11638_s21 = sld [smem:[%s13301_s0 + %s11561_s18]]   ;;  %s11564_s30 = smov 7  }
   0x6   :  { %s11643_s25 = sld [smem:[%s13301_s0 + %s11562_s22]]   ;;  %s11565_s4 = smov 8  }
   0x7   :  { %s11648_s29 = sld [smem:[%s13301_s0 + %s11563_s26]]   ;;  %s11566_s10 = smov 9  }
   0x8   :  { %13310 = sst [smem:[#allocation5_spill]] %s11623_s9  ;;  %s11567_s15 = smov 10  }
   0x9   :  { %s11653_s3 = sld [smem:[%s13301_s0 + %s11564_s30]]   ;;  %s11568_s20 = smov 11  }
   0xa   :  { %s11658_s8 = sld [smem:[%s13301_s0 + %s11565_s4]]   ;;  %s11569_s26 = smov 12  }
   0xb   :  { %s11663_s14 = sld [smem:[%s13301_s0 + %s11566_s10]]   ;;  %s11570_s1 = smov 13  }
   0xc   :  { %s11668_s19 = sld [smem:[%s13301_s0 + %s11567_s15]]   ;;  %s11571_s7 = smov 14  }
   0xd   :  { %s11673_s24 = sld [smem:[%s13301_s0 + %s11568_s20]]   ;;  %s11572_s15 = smov 15  }
   0xe   :  { %s11678_s30 = sld [smem:[%s13301_s0 + %s11569_s26]]   ;;  %s11573_s22 = smov 16  }
   0xf   :  { %s11683_s6 = sld [smem:[%s13301_s0 + %s11570_s1]]   ;;  %s11574_s28 = smov 17  }
  0x10   :  { %s11688_s12 = sld [smem:[%s13301_s0 + %s11571_s7]]   ;;  %s11575_s7 = smov 18  }
  0x11   :  { %s11693_s20 = sld [smem:[%s13301_s0 + %s11572_s15]]   ;;  %s11576_s15 = smov 19  }
  0x12   :  { %s11698_s27 = sld [smem:[%s13301_s0 + %s11573_s22]]   ;;  %s11577_s22 = smov 20  }
  0x13   :  { %s11703_s4 = sld [smem:[%s13301_s0 + %s11574_s28]]   ;;  %s11578_s28 = smov 21  }
  0x14   :  { %s11708_s9 = sld [smem:[%s13301_s0 + %s11575_s7]]   ;;  %s11579_s7 = smov 22  }
  0x16   :  { %13311 = sst [smem:[#allocation6_spill]] %s11688_s12 }
  0x17   :  { %s11713_s12 = sld [smem:[%s13301_s0 + %s11576_s15]]   ;;  %s11580_s15 = smov 23  }
  0x18   :  { %13312 = sst [smem:[#allocation7_spill]] %s11698_s27 }
  0x19   :  { %13313 = sst [smem:[#allocation8_spill]] %s11703_s4 }
  0x1a   :  { %13314 = sst [smem:[#allocation9_spill]] %s11708_s9 }
  0x1b   :  { %s11718_s27 = sld [smem:[%s13301_s0 + %s11577_s22]]   ;;  %s11581_s22 = smov 24  }
  0x1c   :  { %s11723_s4 = sld [smem:[%s13301_s0 + %s11578_s28]]   ;;  %s11582_s28 = smov 25  }
  0x1d   :  { %13315 = sst [smem:[#allocation10_spill]] %s11713_s12 }
  0x1e   :  { %s11728_s9 = sld [smem:[%s13301_s0 + %s11579_s7]]   ;;  %s11583_s7 = smov 26  }
  0x1f   :  { %s11733_s12 = sld [smem:[%s13301_s0 + %s11580_s15]]   ;;  %s11584_s15 = smov 27  }
  0x21   :  { %13316 = sst [smem:[#allocation11_spill]] %s11718_s27 }
  0x22   :  { %13317 = sst [smem:[#allocation12_spill]] %s11723_s4 }
  0x23   :  { %s11738_s27 = sld [smem:[%s13301_s0 + %s11581_s22]]   ;;  %s11585_s22 = smov 28  }
  0x24   :  { %13318 = sst [smem:[#allocation13_spill]] %s11728_s9 }
  0x25   :  { %13319 = sst [smem:[#allocation14_spill]] %s11733_s12 }
  0x26   :  { %s11743_s4 = sld [smem:[%s13301_s0 + %s11582_s28]]   ;;  %s11586_s28 = smov 29  }
  0x27   :  { %s11748_s9 = sld [smem:[%s13301_s0 + %s11583_s7]]   ;;  %s11587_s7 = smov 30  }
  0x28   :  { %s11753_s12 = sld [smem:[%s13301_s0 + %s11584_s15]]   ;;  %s11588_s15 = smov 31  }
  0x29   :  { %13320 = sst [smem:[#allocation15_spill]] %s11738_s27 }
  0x2a   :  { %s11758_s27 = sld [smem:[%s13301_s0 + %s11585_s22]]   ;;  %s11589_s22 = smov 32  }
  0x2c   :  { %13321 = sst [smem:[#allocation16_spill]] %s11743_s4 }
  0x2d   :  { %13322 = sst [smem:[#allocation17_spill]] %s11748_s9 }
  0x2e   :  { %13323 = sst [smem:[#allocation18_spill]] %s11753_s12 }
  0x2f   :  { %s11763_s4 = sld [smem:[%s13301_s0 + %s11586_s28]]   ;;  %s11590_s28 = smov 33  }
  0x30   :  { %13324 = sst [smem:[#allocation19_spill]] %s11758_s27 }
  0x31   :  { %s11768_s9 = sld [smem:[%s13301_s0 + %s11587_s7]]   ;;  %s11591_s7 = smov 34  }
  0x32   :  { %s11773_s12 = sld [smem:[%s13301_s0 + %s11588_s15]]   ;;  %s11592_s15 = smov 35  }
  0x33   :  { %s11778_s27 = sld [smem:[%s13301_s0 + %s11589_s22]]   ;;  %s11593_s22 = smov 36  }
  0x35   :  { %13325 = sst [smem:[#allocation20_spill]] %s11763_s4 }
  0x36   :  { %s11783_s4 = sld [smem:[%s13301_s0 + %s11590_s28]]  }
  0x37   :  { %13326 = sst [smem:[#allocation21_spill]] %s11768_s9 }
  0x38   :  { %13327 = sst [smem:[#allocation22_spill]] %s11773_s12 }
  0x39   :  { %13328 = sst [smem:[#allocation23_spill]] %s11778_s27 }
  0x3a   :  { %s11788_s9 = sld [smem:[%s13301_s0 + %s11591_s7]]  }
  0x3b   :  { %s11793_s12 = sld [smem:[%s13301_s0 + %s11592_s15]]  }
  0x3c   :  { %s11798_s27 = sld [smem:[%s13301_s0 + %s11593_s22]]  }
  0x3d   :  { %v11066_v0 = vld [vmem:[%s11633_s17] sm:$0xff]   ;;  %v11594_v1 = vmov 0.0   ;;  %v11067_v2 = vld [vmem:[%s11633_s17 + $0x8] sm:$0xff]   ;;  %vm11595_vm0 = vmmov 0   ;;  %vm481_vm1 = vcmask 261120  }
  0x3e   :  { %10752 = vmatprep.subr.bf16.mxu0 %v11594_v1  ;;  %10784 = vmatprep.subr.bf16.mxu1 %v11594_v1  ;;  %v152_v3 = vld [vmem:[%s11618_s5] sm:$0xff]  ;;  %v153_v4 = vld [vmem:[%s11618_s5 + $0x8] sm:$0xff] }
  0x3f   :  { %10753 = vmatpush3.bf16.msra.mxu0 %v11066_v0  ;;  %10756 = vmatprep.mubr.msk.bf16.mxu0 %vm11595_vm0, %v11594_v1  ;;  %v154_v5 = vld [vmem:[%s11628_s13] sm:$0xff] }
  0x40   :  { %10754 = vmatprep.subr.bf16.mxu0 %v11594_v1  ;;  %v11810_v6 = vadd.f32 %v154_v5, %v152_v3  ;;  %v11812_v7 = vadd.f32 %v154_v5, %v153_v4  ;;  %10786 = vmatprep.mubr.msk.bf16.mxu1 %vm11595_vm0, %v11594_v1 }
  0x42   :  { %v462_v8 = vpack.c.bf16 %v11812_v7, %v11810_v6 }
  0x43   :  { %10755 = vmatpush3.bf16.msra.mxu0 %v11067_v2 }
  0x44   :  { %10760 = vmatprep.subr.bf16.mxu0 %v11594_v1 }
  0x46   :  { %10757 = vmatmul.mubr.msk.bf16.vlgmr.msra.gmra.mrb[0].mxu0 %vm481_vm1, %v462_v8 }
  0x47   :  { %10762 = vmatprep.mubr.msk.bf16.mxu0 %vm11595_vm0, %v11594_v1 }
  0x48   :  { %78 = vsyncpa [#allocation3], 0  ;;  %v11596_v9 = vmov 0   ;;  %v9784_v10 = vld [vmem:[%s11638_s21] ss:$0 sm:$0xff]  ;;  %s11597_s0 = smov 104   ;;  %v560_v23 = vlaneseq }
  0x49   :  { %11065 = vset.pattern.permute.xlu0 %v11596_v9  ;;  %11064 = vset.pattern.permute.xlu1 %v11596_v9  ;;  %s11598_s5 = smov 120   ;;  %s11599_s13 = smov 96   ;;  %v11601_v21 = vmov 1983009808   ;;  %v11602_v29 = vmov 1934713408   ;;  %v11857_v34 = vpack.i.b16 %v11596_v9, %v11596_v9 }
  0x4a   :  { %s11600_s17 = smov 112   ;;  %v558_v22 = vunpack.c.l.s4 %v11601_v21  ;;  %v11848_v26 = vshrl.u32 %v560_v23, 7  ;;  %v589_v30 = vunpack.c.l.s4 %v11602_v29  ;;  %vm1372_vm2 = vcmask 64512   ;;  %s11603_s21 = smov 64  }
  0x4b   :  { %vm1840_vm3 = vcmask 1043456   ;;  %s11605_s28 = smov 8   ;;  %s11606_s1 = smov 24   ;;  %vm2527_vm4 = vcmask 130048   ;;  %vm2530_vm5 = vcmask 195584   ;;  %vm8929_vm6 = vcmask 1041409  }
  0x4c   :  { %v559_v25 = vunpack.c.0.s8 %v558_v22  ;;  %v590_v38 = vunpack.c.0.s8 %v589_v30  ;;  %s13338_s2 = sld [smem:[#allocation15_spill]]  ;;  %s13339_s7 = sld [smem:[#allocation5_spill]]  ;;  %vm9692_vm13 = vcmask 25600   ;;  %vm9729_vm14 = vcmask 24576  }
  0x4d   :  { %s13340_s10 = sld [smem:[#allocation21_spill]]  ;;  %s13341_s11 = sld [smem:[#allocation20_spill]] }
  0x4e   :  { %v11860_v35 = vsub.s32 %v559_v25, %v11848_v26  ;;  %v11873_v47 = vsub.s32 %v590_v38, %v11848_v26  ;;  %s13342_s15 = sld [smem:[#allocation18_spill]]  ;;  %s13343_s16 = sld [smem:[#allocation19_spill]] }
  0x4f   :  { %s13344_s18 = sld [smem:[#allocation16_spill]]  ;;  %s13345_s22 = sld [smem:[#allocation17_spill]] }
  0x50   :  { %s13346_s23 = sld [smem:[#allocation23_spill]]  ;;  %s13347_s26 = sld [smem:[#allocation22_spill]] }
 0x119   :  { %v519_v11 = vpop.f32.mrb[0].mxu0 }
 0x11a   :  { %v10758_v12 = vpop.f32.mrb[1].mxu0  ;;  %v520_v14 = vadd.f32 %v9784_v10, %v519_v11 }
 0x11b   :  { %v522_v13 = vpop.f32.mrb[2].mxu0 }
 0x11c   :  { %v523_v15 = vadd.f32 %v9784_v10, %v522_v13  ;;  %v10759_v16 = vpop.f32.mrb[3].mxu0 }
 0x11e   :  { %v11825_v17 = vpack.c.bf16 %v523_v15, %v520_v14 }
 0x120   :  { %532 = vrot.lane.b32.xlu1 %v11825_v17, %s11597_s0  ;;  %528 = vrot.lane.b32.xlu0 %v11825_v17, %s11598_s5  ;;  %v538_v32 = vshrl.u32 %v11825_v17, 16 }
 0x124   :  { %812 = vrot.lane.b32.xlu1 %v11825_v17, %s11599_s13  ;;  %530 = vrot.lane.b32.xlu0 %v11825_v17, %s11600_s17 }
 0x192   :  { %v11835_v18 = vpop.permute.xlu0 %528  ;;  %v11839_v19 = vpop.permute.xlu1 %532 }
 0x193   :  { %814 = vrot.lane.b32.xlu0 %v11835_v18, %s11599_s13  ;;  %v547_v27 = vshrl.u32 %v11839_v19, 16  ;;  %v539_v28 = vshrl.u32 %v11835_v18, 16  ;;  %v536_v36 = vpack.i.b16 %v11835_v18, %v11825_v17 }
 0x195   :  { %v540_v37 = vpack.i.b16 %v539_v28, %v538_v32  ;;  %v556_v42 = vcombine.high %v536_v36, %v11857_v34  ;;  %v563_v43 = vrot.slane %v536_v36, %v11860_v35 }
 0x196   :  { %v11841_v20 = vpop.permute.xlu0 %530  ;;  %v813_v50 = vpop.permute.xlu1 %812 }
 0x197   :  { %818 = vrot.lane.b32.xlu0 %v11839_v19, %s11599_s13  ;;  %816 = vrot.lane.b32.xlu1 %v11841_v20, %s11599_s13  ;;  %v546_v24 = vshrl.u32 %v11841_v20, 16  ;;  %v544_v31 = vpack.i.b16 %v11839_v19, %v11841_v20  ;;  %v622_v45 = vcombine.high %v540_v37, %v11857_v34  ;;  %v629_v46 = vrot.slane %v540_v37, %v11860_v35 }
 0x198   :  { %v570_v53 = vrot.slane %v556_v42, %v11860_v35  ;;  %v824_v60 = vshrl.u32 %v813_v50, 16 }
 0x199   :  { %v548_v33 = vpack.i.b16 %v547_v27, %v546_v24  ;;  %v571_v39 = vcombine.high %v544_v31, %v11857_v34  ;;  %v578_v40 = vrot.slane %v544_v31, %v11860_v35  ;;  %v636_v56 = vrot.slane %v622_v45, %v11860_v35 }
 0x19b   :  { %v637_v41 = vcombine.high %v548_v33, %v11857_v34  ;;  %v644_v44 = vrot.slane %v548_v33, %v11860_v35  ;;  %v585_v48 = vrot.slane %v571_v39, %v11860_v35  ;;  %v586_v49 = vcombine.low %v563_v43, %v578_v40 }
 0x19c   :  { %v587_v51 = vcombine.high %v563_v43, %v578_v40 }
 0x19d   :  { %v651_v52 = vrot.slane %v637_v41, %v11860_v35  ;;  %v652_v54 = vcombine.low %v629_v46, %v644_v44  ;;  %v653_v57 = vcombine.high %v629_v46, %v644_v44  ;;  %v11880_v61 = vrot.slane %v586_v49, %v11873_v47 }
 0x19e   :  { %v602_v62 = vcombine.low %v570_v53, %v585_v48  ;;  %v11883_v63 = vrot.slane %v587_v51, %v11873_v47  ;;  %v603_v0 = vcombine.high %v570_v53, %v585_v48 }
 0x19f   :  { %v668_v2 = vcombine.low %v636_v56, %v651_v52  ;;  %v669_v3 = vcombine.high %v636_v56, %v651_v52  ;;  %v11886_v4 = vrot.slane %v652_v54, %v11873_v47  ;;  %v667_v10 = vrot.slane %v653_v57, %v11873_v47 }
 0x1a0   :  { %v11891_v14 = vrot.slane %v602_v62, %v11873_v47  ;;  %v11894_v21 = vrot.slane %v603_v0, %v11873_v47  ;;  %v688_v24 = vcombine.low %v11880_v61, %v11883_v63  ;;  %v9788_v30 = vcombine.high %v11880_v61, %v11883_v63 }
 0x1a1   :  { %v11897_v22 = vrot.slane %v668_v2, %v11873_v47  ;;  %v11900_v23 = vrot.slane %v669_v3, %v11873_v47  ;;  %v713_v31 = vcombine.low %v11886_v4, %v667_v10  ;;  %v9789_v40 = vcombine.high %v11886_v4, %v667_v10 }
 0x1a3   :  { %v763_v41 = vcombine.low %v11897_v22, %v11900_v23 }
 0x205   :  { %v815_v55 = vpop.permute.xlu0 %814 }
 0x206   :  { %v822_v58 = vpack.i.b16 %v815_v55, %v813_v50  ;;  %v825_v59 = vshrl.u32 %v815_v55, 16 }
 0x208   :  { %v826_v11 = vpack.i.b16 %v825_v59, %v824_v60  ;;  %v836_v12 = vcombine.high %v822_v58, %v11857_v34  ;;  %v843_v25 = vrot.slane %v822_v58, %v11860_v35 }
 0x209   :  { %v817_v5 = vpop.permute.xlu1 %816  ;;  %v819_v8 = vpop.permute.xlu0 %818 }
 0x20a   :  { %v832_v13 = vshrl.u32 %v817_v5, 16  ;;  %v830_v15 = vpack.i.b16 %v819_v8, %v817_v5  ;;  %v833_v16 = vshrl.u32 %v819_v8, 16  ;;  %v850_v32 = vrot.slane %v836_v12, %v11860_v35 }
 0x20b   :  { %v902_v33 = vcombine.high %v826_v11, %v11857_v34  ;;  %v909_v42 = vrot.slane %v826_v11, %v11860_v35  ;;  %v9791_v8 = vcombine.high %v11897_v22, %v11900_v23  ;;  %v9790_v22 = vcombine.high %v11891_v14, %v11894_v21 }
 0x20c   :  { %v834_v27 = vpack.i.b16 %v833_v16, %v832_v13  ;;  %v851_v28 = vcombine.high %v830_v15, %v11857_v34  ;;  %v858_v29 = vrot.slane %v830_v15, %v11860_v35 }
 0x20d   :  { %v916_v49 = vrot.slane %v902_v33, %v11860_v35 }
 0x20e   :  { %v865_v36 = vrot.slane %v851_v28, %v11860_v35  ;;  %v866_v37 = vcombine.low %v843_v25, %v858_v29  ;;  %v867_v38 = vcombine.high %v843_v25, %v858_v29  ;;  %v917_v39 = vcombine.high %v834_v27, %v11857_v34 }
 0x20f   :  { %v924_v43 = vrot.slane %v834_v27, %v11860_v35  ;;  %v720_v27 = vrot.slane %v713_v31, %v11860_v35  ;;  %v728_v28 = vrot.slane %v9789_v40, %v11860_v35  ;;  %v738_v29 = vcombine.low %v11891_v14, %v11894_v21 }
 0x210   :  { %v874_v44 = vrot.slane %v866_v37, %v11873_v47  ;;  %v881_v45 = vrot.slane %v867_v38, %v11873_v47  ;;  %v882_v46 = vcombine.low %v850_v32, %v865_v36  ;;  %v883_v48 = vcombine.high %v850_v32, %v865_v36 }
 0x211   :  { %v931_v50 = vrot.slane %v917_v39, %v11860_v35  ;;  %v932_v51 = vcombine.low %v909_v42, %v924_v43  ;;  %v933_v52 = vcombine.high %v909_v42, %v924_v43  ;;  %v695_v37 = vrot.slane %v688_v24, %v11860_v35 }
 0x212   :  { %v890_v53 = vrot.slane %v882_v46, %v11873_v47  ;;  %v897_v54 = vrot.slane %v883_v48, %v11873_v47  ;;  %v968_v55 = vcombine.low %v874_v44, %v881_v45  ;;  %v9792_v56 = vcombine.high %v874_v44, %v881_v45 }
 0x213   :  { %v940_v57 = vrot.slane %v932_v51, %v11873_v47  ;;  %v947_v58 = vrot.slane %v933_v52, %v11873_v47  ;;  %v948_v59 = vcombine.low %v916_v49, %v931_v50  ;;  %v949_v60 = vcombine.high %v916_v49, %v931_v50 }
 0x214   :  { %v975_v61 = vrot.slane %v968_v55, %v11860_v35  ;;  %v983_v62 = vrot.slane %v9792_v56, %v11860_v35  ;;  %v1018_v63 = vcombine.low %v890_v53, %v897_v54  ;;  %v9794_v0 = vcombine.high %v890_v53, %v897_v54 }
 0x215   :  { %v956_v2 = vrot.slane %v948_v59, %v11873_v47  ;;  %v963_v3 = vrot.slane %v949_v60, %v11873_v47  ;;  %v993_v4 = vcombine.low %v940_v57, %v947_v58  ;;  %v9793_v5 = vcombine.high %v940_v57, %v947_v58 }
 0x216   :  { %v984_v10 = vcombine.low %v975_v61, %v983_v62  ;;  %v1025_v11 = vrot.slane %v1018_v63, %v11860_v35  ;;  %v1033_v12 = vrot.slane %v9794_v0, %v11860_v35  ;;  %v703_v38 = vrot.slane %v9788_v30, %v11860_v35 }
 0x217   :  { %v1000_v13 = vrot.slane %v993_v4, %v11860_v35  ;;  %v1008_v15 = vrot.slane %v9793_v5, %v11860_v35  ;;  %v1043_v16 = vcombine.low %v956_v2, %v963_v3  ;;  %v9795_v25 = vcombine.high %v956_v2, %v963_v3 }
 0x218   :  { %v1034_v32 = vcombine.low %v1025_v11, %v1033_v12  ;;  %v770_v31 = vrot.slane %v763_v41, %v11860_v35  ;;  %v991_v39 = vrot.slane %v984_v10, %v11873_v47  ;;  %v778_v43 = vrot.slane %v9791_v8, %v11860_v35 }
 0x219   :  { %v1009_v23 = vcombine.low %v1000_v13, %v1008_v15  ;;  %v1050_v33 = vrot.slane %v1043_v16, %v11860_v35  ;;  %v1058_v36 = vrot.slane %v9795_v25, %v11860_v35  ;;  %v745_v14 = vrot.slane %v738_v29, %v11860_v35 }
 0x21a   :  { %v753_v21 = vrot.slane %v9790_v22, %v11860_v35  ;;  %v11954_v45 = vrot.slane %v1034_v32, %v11873_v47  ;;  %v729_v30 = vcombine.low %v720_v27, %v728_v28  ;;  %v704_v41 = vcombine.low %v695_v37, %v703_v38 }
 0x21b   :  { %v1016_v40 = vrot.slane %v1009_v23, %v11873_v47  ;;  %v1059_v42 = vcombine.low %v1050_v33, %v1058_v36  ;;  %v779_v50 = vcombine.low %v770_v31, %v778_v43  ;;  %v1071_v54 = vshrl.u32 %v991_v39, 16 }
 0x21c   :  { %v754_v51 = vcombine.low %v745_v14, %v753_v21  ;;  %v736_v53 = vrot.slane %v729_v30, %v11873_v47  ;;  %v711_v56 = vrot.slane %v704_v41, %v11873_v47  ;;  %v1042_v59 = vcombine.high %v11954_v45, %v11596_v9 }
 0x21d   :  { %v1070_v44 = vpack.i.b16 %v1016_v40, %v991_v39  ;;  %v11957_v24 = vrot.slane %v1059_v42, %v11873_v47  ;;  %v1072_v49 = vshrl.u32 %v1016_v40, 16  ;;  %v786_v58 = vrot.slane %v779_v50, %v11873_v47 }
 0x21e   :  { %v790_v60 = vpack.i.b16 %v736_v53, %v711_v56  ;;  %v761_v61 = vrot.slane %v754_v51, %v11873_v47  ;;  %v1017_v2 = vcombine.high %v1016_v40, %v11596_v9  ;;  %v792_v4 = vshrl.u32 %v736_v53, 16 }
 0x21f   :  { %v1377_v46 = vsel %vm1372_vm2, %v1070_v44, 0  ;;  %v1082_v48 = vpack.i.b16 %v11957_v24, %v11954_v45  ;;  %v11967_v55 = vcombine.high %v11957_v24, %v11596_v9  ;;  %v1073_v57 = vpack.i.b16 %v1072_v49, %v1071_v54 }
 0x220   :  { %10761 = vmatpush3.bf16.xpose.msra.mxu0 %v1377_v46  ;;  %v802_v0 = vpack.i.b16 %v786_v58, %v761_v61  ;;  %v992_v5 = vcombine.high %v991_v39, %v11596_v9  ;;  %v791_v8 = vshrl.u32 %v711_v56, 16  ;;  %v787_v11 = vcombine.high %v786_v58, %v11596_v9 }
 0x221   :  { %v1561_v52 = vsel %vm1372_vm2, %v1082_v48, 0  ;;  %10766 = vmatprep.subr.bf16.mxu0 %v11594_v1  ;;  %v1088_v62 = vpack.i.b16 %v11967_v55, %v1042_v59  ;;  %v1423_v63 = vsel %vm1372_vm2, %v1073_v57, 0  ;;  %v762_v13 = vcombine.high %v761_v61, %v11596_v9 }
 0x222   :  { %10785 = vmatpush3.bf16.xpose.msra.mxu1 %v1561_v52  ;;  %v1076_v10 = vpack.i.b16 %v1017_v2, %v992_v5  ;;  %v793_v12 = vpack.i.b16 %v792_v4, %v791_v8  ;;  %v1078_v25 = vshrl.u32 %v1017_v2, 16  ;;  %v737_v27 = vcombine.high %v736_v53, %v11596_v9 }
 0x223   :  { %10796 = vmatprep.subr.bf16.mxu1 %v11594_v1  ;;  %v1653_v3 = vsel %vm1372_vm2, %v1088_v62, 0  ;;  %v808_v16 = vpack.i.b16 %v787_v11, %v762_v13  ;;  %v1077_v28 = vshrl.u32 %v992_v5, 16  ;;  %v712_v29 = vcombine.high %v711_v56, %v11596_v9 }
 0x224   :  { %v1469_v15 = vsel %vm1372_vm2, %v1076_v10, 0  ;;  %v1084_v33 = vshrl.u32 %v11957_v24, 16  ;;  %v798_v36 = vshrl.u32 %v737_v27, 16  ;;  %v1083_v37 = vshrl.u32 %v11954_v45, 16 }
 0x225   :  { %v1079_v22 = vpack.i.b16 %v1078_v25, %v1077_v28  ;;  %v796_v23 = vpack.i.b16 %v737_v27, %v712_v29  ;;  %v797_v38 = vshrl.u32 %v712_v29, 16  ;;  %v1090_v42 = vshrl.u32 %v11967_v55, 16 }
 0x226   :  { %v1085_v31 = vpack.i.b16 %v1084_v33, %v1083_v37  ;;  %v804_v43 = vshrl.u32 %v786_v58, 16  ;;  %v1089_v14 = vshrl.u32 %v1042_v59, 16  ;;  %v803_v21 = vshrl.u32 %v761_v61, 16 }
 0x227   :  { %10763 = vmatmul.mubr.msk.bf16.vlgmr.msra.gmra.mrb[4].mxu0 %vm1372_vm2, %v790_v60  ;;  %v1515_v32 = vsel %vm1372_vm2, %v1079_v22, 0  ;;  %v799_v39 = vpack.i.b16 %v798_v36, %v797_v38  ;;  %v810_v30 = vshrl.u32 %v787_v11, 16  ;;  %v809_v41 = vshrl.u32 %v762_v13, 16 }
 0x228   :  { %10767 = vmatpush3.bf16.xpose.msra.mxu0 %v1423_v63  ;;  %10768 = vmatprep.mubr.msk.bf16.mxu0 %vm11595_vm0, %v11594_v1  ;;  %v1607_v40 = vsel %vm1372_vm2, %v1085_v31, 0  ;;  %v1091_v44 = vpack.i.b16 %v1090_v42, %v1089_v14  ;;  %v805_v45 = vpack.i.b16 %v804_v43, %v803_v21 }
 0x229   :  { %10787 = vmatmul.mubr.msk.bf16.vlgmr.msra.gmra.mrb[0].mxu1 %vm1372_vm2, %v802_v0  ;;  %10772 = vmatprep.subr.bf16.mxu0 %v11594_v1  ;;  %v811_v46 = vpack.i.b16 %v810_v30, %v809_v41 }
 0x22a   :  { %10797 = vmatpush3.bf16.xpose.msra.mxu1 %v1653_v3  ;;  %10798 = vmatprep.mubr.msk.bf16.mxu1 %vm11595_vm0, %v11594_v1  ;;  %v1699_v24 = vsel %vm1372_vm2, %v1091_v44, 0 }
 0x22b   :  { %10808 = vmatprep.subr.bf16.mxu1 %v11594_v1 }
 0x22f   :  { %10769 = vmatmul.mubr.msk.bf16.vlgmr.msra.gmra.mrb[8].mxu0 %vm1372_vm2, %v793_v12 }
 0x230   :  { %10773 = vmatpush3.bf16.xpose.msra.mxu0 %v1469_v15  ;;  %10774 = vmatprep.mubr.msk.bf16.mxu0 %vm11595_vm0, %v11594_v1 }
 0x231   :  { %10799 = vmatmul.mubr.msk.bf16.vlgmr.msra.gmra.mrb[4].mxu1 %vm1372_vm2, %v808_v16  ;;  %10778 = vmatprep.subr.bf16.mxu0 %v11594_v1 }
 0x232   :  { %10810 = vmatprep.mubr.msk.bf16.mxu1 %vm11595_vm0, %v11594_v1 }
 0x237   :  { %10775 = vmatmul.mubr.msk.bf16.vlgmr.msra.gmra.mrb[12].mxu0 %vm1372_vm2, %v796_v23 }
 0x238   :  { %10779 = vmatpush3.bf16.xpose.msra.mxu0 %v1515_v32  ;;  %10780 = vmatprep.mubr.msk.bf16.mxu0 %vm11595_vm0, %v11594_v1 }
 0x239   :  { %10790 = vmatprep.subr.bf16.mxu0 %v11594_v1 }
 0x23f   :  { %10781 = vmatmul.mubr.msk.bf16.vlgmr.msra.gmra.mrb[16].mxu0 %vm1372_vm2, %v799_v39 }
 0x240   :  { %10791 = vmatpush3.bf16.xpose.msra.mxu0 %v1607_v40  ;;  %10792 = vmatprep.mubr.msk.bf16.mxu0 %vm11595_vm0, %v11594_v1 }
 0x241   :  { %10802 = vmatprep.subr.bf16.mxu0 %v11594_v1 }
 0x247   :  { %10793 = vmatmul.mubr.msk.bf16.vlgmr.msra.gmra.mrb[20].mxu0 %vm1372_vm2, %v805_v45 }
 0x248   :  { %10803 = vmatpush3.bf16.xpose.msra.mxu0 %v1699_v24  ;;  %10804 = vmatprep.mubr.msk.bf16.mxu0 %vm11595_vm0, %v11594_v1 }
 0x249   :  { %10814 = vmatprep.subr.bf16.mxu0 %v11594_v1 }
 0x24f   :  { %10805 = vmatmul.mubr.msk.bf16.vlgmr.msra.gmra.mrb[24].mxu0 %vm1372_vm2, %v811_v46 }
 0x250   :  { %10816 = vmatprep.mubr.msk.bf16.mxu0 %vm11595_vm0, %v11594_v1 }
 0x2fa   :  { %v1413_v48 = vpop.f32.mrb[4].mxu0 }
 0x2fb   :  { %v10764_v49 = vpop.f32.mrb[5].mxu0  ;;  %v1741_v50 = vsel %vm1372_vm2, %v1413_v48, -inf }
 0x2fc   :  { %v12022_v51 = vpop.f32.mrb[0].mxu1  ;;  %1742 = vmax.xlane.f32.xlu1 %v1741_v50  ;;  %v1416_v52 = vpop.f32.mrb[6].mxu0 }
 0x2fd   :  { %v10765_v53 = vpop.f32.mrb[7].mxu0  ;;  %v10788_v54 = vpop.f32.mrb[1].mxu1  ;;  %v1753_v55 = vsel %vm1372_vm2, %v12022_v51, -inf }
 0x2fe   :  { %1754 = vmax.xlane.f32.xlu0 %v1753_v55  ;;  %v1600_v56 = vpop.f32.mrb[2].mxu1 }
 0x2ff   :  { %v10789_v57 = vpop.f32.mrb[3].mxu1 }
 0x302   :  { %v1459_v58 = vpop.f32.mrb[8].mxu0 }
 0x303   :  { %v10770_v59 = vpop.f32.mrb[9].mxu0  ;;  %v1744_v60 = vsel %vm1372_vm2, %v1459_v58, -inf }
 0x304   :  { %v12027_v61 = vpop.f32.mrb[4].mxu1  ;;  %1745 = vmax.xlane.f32.xlu0 %v1744_v60  ;;  %v1462_v62 = vpop.f32.mrb[10].mxu0 }
 0x305   :  { %v10771_v63 = vpop.f32.mrb[11].mxu0  ;;  %v10800_v0 = vpop.f32.mrb[5].mxu1  ;;  %v1759_v4 = vsel %vm1372_vm2, %v12027_v61, -inf }
 0x306   :  { %v1692_v2 = vpop.f32.mrb[6].mxu1 }
 0x307   :  { %v10801_v3 = vpop.f32.mrb[7].mxu1 }
 0x308   :  { %1760 = vmax.xlane.f32.xlu0 %v1759_v4 }
 0x30a   :  { %v1505_v5 = vpop.f32.mrb[12].mxu0 }
 0x30b   :  { %v10776_v8 = vpop.f32.mrb[13].mxu0  ;;  %v1747_v10 = vsel %vm1372_vm2, %v1505_v5, -inf }
 0x30c   :  { %1748 = vmax.xlane.f32.xlu0 %v1747_v10  ;;  %v1508_v11 = vpop.f32.mrb[14].mxu0 }
 0x30d   :  { %v10777_v12 = vpop.f32.mrb[15].mxu0 }
 0x312   :  { %v1551_v13 = vpop.f32.mrb[16].mxu0 }
 0x313   :  { %v10782_v15 = vpop.f32.mrb[17].mxu0  ;;  %v1750_v16 = vsel %vm1372_vm2, %v1551_v13, -inf }
 0x314   :  { %1751 = vmax.xlane.f32.xlu1 %v1750_v16  ;;  %v1554_v25 = vpop.f32.mrb[18].mxu0 }
 0x315   :  { %v10783_v27 = vpop.f32.mrb[19].mxu0 }
 0x31a   :  { %v1643_v28 = vpop.f32.mrb[20].mxu0 }
 0x31b   :  { %v10794_v29 = vpop.f32.mrb[21].mxu0  ;;  %v1756_v22 = vsel %vm1372_vm2, %v1643_v28, -inf }
 0x31c   :  { %1757 = vmax.xlane.f32.xlu1 %v1756_v22  ;;  %v1646_v23 = vpop.f32.mrb[22].mxu0 }
 0x31d   :  { %v10795_v32 = vpop.f32.mrb[23].mxu0 }
 0x322   :  { %1092 = vrot.lane.b32.xlu0 %v11825_v17, %s11603_s21  ;;  %v1735_v33 = vpop.f32.mrb[24].mxu0 }
 0x323   :  { %v10806_v36 = vpop.f32.mrb[25].mxu0  ;;  %v1762_v37 = vsel %vm1372_vm2, %v1735_v33, -inf }
 0x324   :  { %1763 = vmax.xlane.f32.xlu1 %v1762_v37  ;;  %v1738_v38 = vpop.f32.mrb[26].mxu0 }
 0x325   :  { %v10807_v31 = vpop.f32.mrb[27].mxu0 }
 0x335   :  { %1094 = vrot.lane.b32.xlu1 %v11835_v18, %s11603_s21 }
 0x389   :  { %v1743_v39 = vpop.xlane.xlu1 %1742 }
 0x38a   :  { %v1765_v40 = vsub.f32 %v1413_v48, %v1743_v39 }
 0x38b   :  { %v1755_v43 = vpop.xlane.xlu0 %1754 }
 0x38c   :  { %v1773_v42 = vmul.f32 1.442695, %v1765_v40  ;;  %v1769_v48 = vsub.f32 %v12022_v51, %v1755_v43 }
 0x38e   :  { %11450 = vpow2.f32 %v1773_v42  ;;  %v1781_v53 = vmul.f32 1.442695, %v1769_v48 }
 0x391   :  { %v1746_v14 = vpop.xlane.xlu0 %1745 }
 0x392   :  { %v1766_v21 = vsub.f32 %v1459_v58, %v1746_v14 }
 0x394   :  { %v1775_v44 = vmul.f32 1.442695, %v1766_v21 }
 0x395   :  { %v1761_v41 = vpop.xlane.xlu0 %1760 }
 0x396   :  { %11452 = vpow2.f32 %v1775_v44  ;;  %v1771_v52 = vsub.f32 %v12027_v61, %v1761_v41 }
 0x398   :  { %v12039_v17 = vpop.eup %11450  ;;  %v1785_v56 = vmul.f32 1.442695, %v1771_v52 }
 0x399   :  { %v1789_v45 = vsel %vm1372_vm2, %v12039_v17, 0.0  ;;  %v1749_v50 = vpop.xlane.xlu0 %1748 }
 0x39a   :  { %1790 = vadd.xlane.f32.xlu0 %v1789_v45  ;;  %v1767_v54 = vsub.f32 %v1505_v5, %v1749_v50 }
 0x39c   :  { %v1777_v57 = vmul.f32 1.442695, %v1767_v54 }
 0x39d   :  { %v1093_v12 = vpop.permute.xlu0 %1092 }
 0x39e   :  { %v1104_v29 = vshrl.u32 %v1093_v12, 16 }
 0x3a0   :  { %v12043_v24 = vpop.eup %11452 }
 0x3a1   :  { %v1792_v18 = vsel %vm1372_vm2, %v12043_v24, 0.0  ;;  %v1752_v30 = vpop.xlane.xlu1 %1751 }
 0x3a2   :  { %1793 = vadd.xlane.f32.xlu1 %v1792_v18  ;;  %v1768_v46 = vsub.f32 %v1551_v13, %v1752_v30 }
 0x3a4   :  { %v1779_v49 = vmul.f32 1.442695, %v1768_v46 }
 0x3a6   :  { %11454 = vpow2.f32 %v1779_v49 }
 0x3a7   :  { %11456 = vpow2.f32 %v1781_v53 }
 0x3a8   :  { %11458 = vpow2.f32 %v1785_v56 }
 0x3a9   :  { %v1758_v55 = vpop.xlane.xlu1 %1757  ;;  %11460 = vpow2.f32 %v1777_v57 }
 0x3b0   :  { %1098 = vrot.lane.b32.xlu0 %v11839_v19, %s11603_s21  ;;  %v1770_v19 = vsub.f32 %v1643_v28, %v1758_v55  ;;  %v12053_v60 = vpop.eup %11454 }
 0x3b1   :  { %v1764_v58 = vpop.xlane.xlu1 %1763  ;;  %v1798_v61 = vsel %vm1372_vm2, %v12053_v60, 0.0  ;;  %v12057_v62 = vpop.eup %11456 }
 0x3b2   :  { %v1772_v59 = vsub.f32 %v1735_v33, %v1764_v58  ;;  %v12059_v63 = vpop.eup %11458  ;;  %v1801_v0 = vsel %vm1372_vm2, %v12057_v62, 0.0 }
 0x3b3   :  { %1096 = vrot.lane.b32.xlu1 %v11841_v20, %s11603_s21  ;;  %v1783_v20 = vmul.f32 1.442695, %v1770_v19  ;;  %v12063_v2 = vpop.eup %11460  ;;  %v1807_v3 = vsel %vm1372_vm2, %v12059_v63, 0.0 }
 0x3b4   :  { %v1787_v51 = vmul.f32 1.442695, %v1772_v59  ;;  %v1795_v4 = vsel %vm1372_vm2, %v12063_v2, 0.0 }
 0x3b5   :  { %11462 = vpow2.f32 %v1783_v20  ;;  %v1095_v13 = vpop.permute.xlu1 %1094 }
 0x3b6   :  { %11464 = vpow2.f32 %v1787_v51  ;;  %v1105_v25 = vshrl.u32 %v1095_v13, 16  ;;  %v1102_v28 = vpack.i.b16 %v1095_v13, %v1093_v12 }
 0x3b8   :  { %v1106_v36 = vpack.i.b16 %v1105_v25, %v1104_v29  ;;  %v1123_v37 = vrot.slane %v1102_v28, %v11860_v35  ;;  %v1116_v13 = vcombine.high %v1102_v28, %v11857_v34 }
 0x3ba   :  { %v1189_v42 = vrot.slane %v1106_v36, %v11860_v35 }
 0x3bf   :  { %v12069_v5 = vpop.eup %11462 }
 0x3c0   :  { %v1804_v8 = vsel %vm1372_vm2, %v12069_v5, 0.0  ;;  %v12073_v10 = vpop.eup %11464 }
 0x3c1   :  { %v1810_v11 = vsel %vm1372_vm2, %v12073_v10, 0.0 }
 0x3cf   :  { %1799 = vadd.xlane.f32.xlu0 %v1798_v61  ;;  %v1182_v61 = vcombine.high %v1106_v36, %v11857_v34 }
 0x3d3   :  { %1802 = vadd.xlane.f32.xlu0 %v1801_v0 }
 0x3d7   :  { %1808 = vadd.xlane.f32.xlu0 %v1807_v3  ;;  %1796 = vadd.xlane.f32.xlu1 %v1795_v4 }
 0x3db   :  { %1805 = vadd.xlane.f32.xlu1 %v1804_v8 }
 0x3df   :  { %1811 = vadd.xlane.f32.xlu1 %v1810_v11 }
 0x427   :  { %v1791_v15 = vpop.xlane.xlu0 %1790 }
 0x428   :  { %11466 = vrcp.f32 %v1791_v15 }
 0x42b   :  { %v1099_v27 = vpop.permute.xlu0 %1098 }
 0x42c   :  { %v1113_v23 = vshrl.u32 %v1099_v27, 16 }
 0x42f   :  { %v1794_v16 = vpop.xlane.xlu1 %1793 }
 0x430   :  { %11468 = vrcp.f32 %v1794_v16 }
 0x432   :  { %v11467_v57 = vpop.eup %11466 }
 0x433   :  { %v1097_v22 = vpop.permute.xlu1 %1096  ;;  %v1821_v0 = vmul.f32 %v11467_v57, %v12039_v17 }
 0x434   :  { %v1110_v32 = vpack.i.b16 %v1099_v27, %v1097_v22  ;;  %v1112_v33 = vshrl.u32 %v1097_v22, 16 }
 0x435   :  { %v1829_v36 = vpack.c.bf16 %v1821_v0, %v1821_v0 }
 0x436   :  { %v1114_v38 = vpack.i.b16 %v1113_v23, %v1112_v33  ;;  %v1138_v31 = vrot.slane %v1110_v32, %v11860_v35  ;;  %v1131_v3 = vcombine.high %v1110_v32, %v11857_v34  ;;  %v1196_v23 = vrot.slane %v1182_v61, %v11860_v35 }
 0x438   :  { %v1146_v39 = vcombine.low %v1123_v37, %v1138_v31  ;;  %v1147_v40 = vcombine.high %v1123_v37, %v1138_v31  ;;  %v1204_v43 = vrot.slane %v1114_v38, %v11860_v35  ;;  %v1197_v58 = vcombine.high %v1114_v38, %v11857_v34 }
 0x439   :  { %v1145_v32 = vrot.slane %v1131_v3, %v11860_v35 }
 0x43a   :  { %v1154_v14 = vrot.slane %v1146_v39, %v11873_v47  ;;  %v1161_v21 = vrot.slane %v1147_v40, %v11873_v47  ;;  %v1212_v44 = vcombine.low %v1189_v42, %v1204_v43  ;;  %v1213_v45 = vcombine.high %v1189_v42, %v1204_v43  ;;  %v11469_v59 = vpop.eup %11468 }
 0x43b   :  { %v1822_v15 = vmul.f32 %v11469_v59, %v12043_v24  ;;  %v1211_v16 = vrot.slane %v1197_v58, %v11860_v35  ;;  %v1130_v24 = vrot.slane %v1116_v13, %v11860_v35 }
 0x43c   :  { %v1248_v18 = vcombine.low %v1154_v14, %v1161_v21  ;;  %v9796_v30 = vcombine.high %v1154_v14, %v1161_v21  ;;  %v1220_v41 = vrot.slane %v1212_v44, %v11873_v47  ;;  %v1227_v46 = vrot.slane %v1213_v45, %v11873_v47 }
 0x43d   :  { %v1228_v37 = vcombine.low %v1196_v23, %v1211_v16  ;;  %v1229_v38 = vcombine.high %v1196_v23, %v1211_v16  ;;  %v1830_v39 = vpack.c.bf16 %v1822_v15, %v1822_v15  ;;  %v1162_v40 = vcombine.low %v1130_v24, %v1145_v32 }
 0x43e   :  { %v1255_v48 = vrot.slane %v1248_v18, %v11860_v35  ;;  %v1263_v49 = vrot.slane %v9796_v30, %v11860_v35  ;;  %v1273_v50 = vcombine.low %v1220_v41, %v1227_v46  ;;  %v9797_v52 = vcombine.high %v1220_v41, %v1227_v46 }
 0x43f   :  { %v1163_v42 = vcombine.high %v1130_v24, %v1145_v32  ;;  %v1236_v14 = vrot.slane %v1228_v37, %v11873_v47  ;;  %v1243_v21 = vrot.slane %v1229_v38, %v11873_v47  ;;  %v1170_v44 = vrot.slane %v1162_v40, %v11873_v47 }
 0x440   :  { %v1264_v53 = vcombine.low %v1255_v48, %v1263_v49  ;;  %v1280_v54 = vrot.slane %v1273_v50, %v11860_v35  ;;  %v1288_v55 = vrot.slane %v9797_v52, %v11860_v35 }
 0x441   :  { %v1177_v45 = vrot.slane %v1163_v42, %v11873_v47  ;;  %v1323_v18 = vcombine.low %v1236_v14, %v1243_v21  ;;  %v9799_v30 = vcombine.high %v1236_v14, %v1243_v21 }
 0x442   :  { %v1271_v56 = vrot.slane %v1264_v53, %v11873_v47  ;;  %v1289_v19 = vcombine.low %v1280_v54, %v1288_v55 }
 0x443   :  { %v1298_v41 = vcombine.low %v1170_v44, %v1177_v45  ;;  %v9798_v46 = vcombine.high %v1170_v44, %v1177_v45  ;;  %v1330_v48 = vrot.slane %v1323_v18, %v11860_v35  ;;  %v1338_v49 = vrot.slane %v9799_v30, %v11860_v35 }
 0x444   :  { %v1272_v20 = vcombine.high %v1271_v56, %v11596_v9  ;;  %v1296_v51 = vrot.slane %v1289_v19, %v11873_v47  ;;  %v1351_v8 = vshrl.u32 %v1271_v56, 16 }
 0x445   :  { %v1305_v50 = vrot.slane %v1298_v41, %v11860_v35  ;;  %v1313_v52 = vrot.slane %v9798_v46, %v11860_v35  ;;  %v1339_v54 = vcombine.low %v1330_v48, %v1338_v49 }
 0x446   :  { %v1350_v4 = vpack.i.b16 %v1296_v51, %v1271_v56  ;;  %v1352_v11 = vshrl.u32 %v1296_v51, 16  ;;  %v1297_v12 = vcombine.high %v1296_v51, %v11596_v9  ;;  %v1357_v25 = vshrl.u32 %v1272_v20, 16 }
 0x447   :  { %v1314_v55 = vcombine.low %v1305_v50, %v1313_v52  ;;  %v1346_v56 = vrot.slane %v1339_v54, %v11873_v47 }
 0x448   :  { %v1842_v27 = vsel %vm1840_vm3, %v1350_v4, 0  ;;  %v1353_v29 = vpack.i.b16 %v1352_v11, %v1351_v8  ;;  %v1356_v22 = vpack.i.b16 %v1297_v12, %v1272_v20  ;;  %v1358_v17 = vshrl.u32 %v1297_v12, 16 }
 0x449   :  { %10809 = vmatpush3.bf16.msra.mxu1 %v1842_v27  ;;  %v1321_v57 = vrot.slane %v1314_v55, %v11873_v47  ;;  %v1364_v58 = vshrl.u32 %v1346_v56, 16  ;;  %v1347_v12 = vcombine.high %v1346_v56, %v11596_v9 }
 0x44a   :  { %v1888_v33 = vsel %vm1840_vm3, %v1353_v29, 0  ;;  %10820 = vmatprep.subr.bf16.mxu1 %v11594_v1  ;;  %v1359_v28 = vpack.i.b16 %v1358_v17, %v1357_v25  ;;  %v1934_v31 = vsel %vm1840_vm3, %v1356_v22, 0 }
 0x44b   :  { %10815 = vmatpush3.bf16.msra.mxu0 %v1888_v33  ;;  %v1363_v20 = vshrl.u32 %v1321_v57, 16  ;;  %v1370_v16 = vshrl.u32 %v1347_v12, 16  ;;  %v1362_v27 = vpack.i.b16 %v1346_v56, %v1321_v57 }
 0x44c   :  { %10811 = vmatmul.mubr.msk.bf16.vlgmr.msra.gmra.mrb[8].mxu1 %vm1372_vm2, %v1829_v36  ;;  %10826 = vmatprep.subr.bf16.mxu0 %v11594_v1  ;;  %v1980_v43 = vsel %vm1840_vm3, %v1359_v28, 0 }
 0x44d   :  { %10821 = vmatpush3.bf16.msra.mxu1 %v1934_v31  ;;  %10822 = vmatprep.mubr.msk.bf16.mxu1 %vm11595_vm0, %v11594_v1  ;;  %v1365_v3 = vpack.i.b16 %v1364_v58, %v1363_v20  ;;  %v2026_v36 = vsel %vm1840_vm3, %v1362_v27, 0 }
 0x44e   :  { %10817 = vmatmul.mubr.msk.bf16.vlgmr.msra.gmra.mrb[28].mxu0 %vm1372_vm2, %v1830_v39  ;;  %10832 = vmatprep.subr.bf16.mxu1 %v11594_v1 }
 0x44f   :  { %10827 = vmatpush3.bf16.msra.mxu0 %v1980_v43  ;;  %10828 = vmatprep.mubr.msk.bf16.mxu0 %vm11595_vm0, %v11594_v1  ;;  %v2072_v8 = vsel %vm1840_vm3, %v1365_v3, 0  ;;  %v11068_v43 = vld [vmem:[%s11643_s25] sm:$0xff]  }
 0x450   :  { %10838 = vmatprep.subr.bf16.mxu0 %v11594_v1 }
 0x45c   :  { %v1800_v53 = vpop.xlane.xlu0 %1799 }
 0x45d   :  { %11470 = vrcp.f32 %v1800_v53 }
 0x460   :  { %v1803_v51 = vpop.xlane.xlu0 %1802 }
 0x464   :  { %v1797_v19 = vpop.xlane.xlu1 %1796  ;;  %v1809_v13 = vpop.xlane.xlu0 %1808 }
 0x465   :  { %11472 = vrcp.f32 %v1797_v19 }
 0x467   :  { %v11471_v59 = vpop.eup %11470 }
 0x468   :  { %v1824_v61 = vmul.f32 %v11471_v59, %v12053_v60  ;;  %v1806_v0 = vpop.xlane.xlu1 %1805  ;;  %v1322_v60 = vcombine.high %v1321_v57, %v11596_v9 }
 0x469   :  { %11474 = vrcp.f32 %v1806_v0 }
 0x46a   :  { %11476 = vrcp.f32 %v1803_v51  ;;  %v1832_v4 = vpack.c.bf16 %v1824_v61, %v1824_v61  ;;  %v1369_v29 = vshrl.u32 %v1322_v60, 16 }
 0x46c   :  { %10829 = vmatmul.mubr.msk.bf16.vlgmr.msra.gmra.mrb[32].mxu0 %vm1372_vm2, %v1832_v4  ;;  %v1812_v11 = vpop.xlane.xlu1 %1811  ;;  %v1371_v33 = vpack.i.b16 %v1370_v16, %v1369_v29 }
 0x46d   :  { %10839 = vmatpush3.bf16.msra.mxu0 %v2072_v8  ;;  %11478 = vrcp.f32 %v1812_v11  ;;  %10840 = vmatprep.mubr.msk.bf16.mxu0 %vm11595_vm0, %v11594_v1 }
 0x46e   :  { %10850 = vmatprep.subr.bf16.mxu0 %v11594_v1  ;;  %11480 = vrcp.f32 %v1809_v13  ;;  %v2164_v37 = vsel %vm1840_vm3, %v1371_v33, 0 }
 0x46f   :  { %v11473_v15 = vpop.eup %11472 }
 0x470   :  { %v1823_v25 = vmul.f32 %v11473_v15, %v12063_v2 }
 0x472   :  { %v1831_v17 = vpack.c.bf16 %v1823_v25, %v1823_v25 }
 0x473   :  { %v11475_v22 = vpop.eup %11474 }
 0x474   :  { %v11477_v23 = vpop.eup %11476  ;;  %v1826_v32 = vmul.f32 %v11475_v22, %v12069_v5  ;;  %10823 = vmatmul.mubr.msk.bf16.vlgmr.msra.gmra.mrb[12].mxu1 %vm1372_vm2, %v1831_v17  ;;  %v1368_v5 = vpack.i.b16 %v1347_v12, %v1322_v60 }
 0x475   :  { %10833 = vmatpush3.bf16.msra.mxu1 %v2026_v36  ;;  %10834 = vmatprep.mubr.msk.bf16.mxu1 %vm11595_vm0, %v11594_v1  ;;  %v1825_v2 = vmul.f32 %v11477_v23, %v12057_v62 }
 0x476   :  { %v1834_v28 = vpack.c.bf16 %v1826_v32, %v1826_v32  ;;  %10844 = vmatprep.subr.bf16.mxu1 %v11594_v1  ;;  %v2118_v62 = vsel %vm1840_vm3, %v1368_v5, 0 }
 0x477   :  { %v11479_v24 = vpop.eup %11478  ;;  %v1833_v31 = vpack.c.bf16 %v1825_v2, %v1825_v2 }
 0x478   :  { %10841 = vmatmul.mubr.msk.bf16.vlgmr.msra.gmra.mrb[36].mxu0 %vm1372_vm2, %v1834_v28  ;;  %v1828_v38 = vmul.f32 %v11479_v24, %v12073_v10  ;;  %v11481_v39 = vpop.eup %11480 }
 0x479   :  { %10851 = vmatpush3.bf16.msra.mxu0 %v2164_v37  ;;  %10852 = vmatprep.mubr.msk.bf16.mxu0 %vm11595_vm0, %v11594_v1  ;;  %v1827_v42 = vmul.f32 %v11481_v39, %v12059_v63 }
 0x47a   :  { %v1836_v40 = vpack.c.bf16 %v1828_v38, %v1828_v38 }
 0x47b   :  { %v1835_v10 = vpack.c.bf16 %v1827_v42, %v1827_v42 }
 0x47c   :  { %10835 = vmatmul.mubr.msk.bf16.vlgmr.msra.gmra.mrb[16].mxu1 %vm1372_vm2, %v1833_v31 }
 0x47d   :  { %10845 = vmatpush3.bf16.msra.mxu1 %v2118_v62  ;;  %10846 = vmatprep.mubr.msk.bf16.mxu1 %vm11595_vm0, %v11594_v1 }
 0x47e   :  { %10856 = vmatprep.subr.bf16.mxu1 %v11594_v1 }
 0x480   :  { %10853 = vmatmul.mubr.msk.bf16.vlgmr.msra.gmra.mrb[40].mxu0 %vm1372_vm2, %v1836_v40 }
 0x481   :  { %2917 = vmatprep.mubr.bf16.mxu0 %v11596_v9 }
 0x484   :  { %10847 = vmatmul.mubr.msk.bf16.vlgmr.msra.gmra.mrb[20].mxu1 %vm1372_vm2, %v1835_v10 }
 0x485   :  { %10860 = vmatprep.mubr.msk.bf16.mxu1 %vm11595_vm0, %v11594_v1  ;;  %10857 = vmatpush3.bf16.msra.mxu1 %v11068_v43 }
 0x486   :  { %10858 = vmatprep.subr.bf16.mxu1 %v11594_v1 }
 0x51f   :  { %v1878_v14 = vpop.f32.mrb[8].mxu1 }
 0x520   :  { %v10812_v21 = vpop.f32.mrb[9].mxu1  ;;  %v2206_v19 = vpack.c.bf16 %v1878_v14, %v1878_v14 }
 0x521   :  { %v1881_v44 = vpop.f32.mrb[10].mxu1  ;;  %v1924_v63 = vpop.f32.mrb[28].mxu0 }
 0x522   :  { %v10813_v45 = vpop.f32.mrb[11].mxu1  ;;  %v10818_v18 = vpop.f32.mrb[29].mxu0  ;;  %v2240_v46 = vpack.c.bf16 %v1924_v63, %v1924_v63  ;;  %v2213_v0 = vrot.slane %v2206_v19, %v11860_v35 }
 0x523   :  { %v1927_v30 = vpop.f32.mrb[30].mxu0 }
 0x524   :  { %v10819_v41 = vpop.f32.mrb[31].mxu0  ;;  %v2247_v53 = vrot.slane %v2240_v46, %v11860_v35 }
 0x53f   :  { %v2016_v48 = vpop.f32.mrb[32].mxu0 }
 0x540   :  { %v2248_v49 = vpack.c.bf16 %v2016_v48, %v2016_v48  ;;  %v10830_v50 = vpop.f32.mrb[33].mxu0 }
 0x541   :  { %v2019_v52 = vpop.f32.mrb[34].mxu0 }
 0x542   :  { %v2255_v54 = vrot.slane %v2248_v49, %v11860_v35  ;;  %v10831_v55 = vpop.f32.mrb[35].mxu0 }
 0x544   :  { %v2256_v56 = vcombine.low %v2247_v53, %v2255_v54  ;;  %v2257_v57 = vcombine.high %v2247_v53, %v2255_v54 }
 0x546   :  { %v2264_v51 = vrot.slane %v2256_v56, %v11873_v47  ;;  %v2271_v11 = vrot.slane %v2257_v57, %v11873_v47 }
 0x547   :  { %v1970_v58 = vpop.f32.mrb[12].mxu1 }
 0x548   :  { %v2214_v20 = vpack.c.bf16 %v1970_v58, %v1970_v58  ;;  %v10824_v59 = vpop.f32.mrb[13].mxu1  ;;  %v2272_v16 = vcombine.high %v2264_v51, %v11596_v9  ;;  %v2273_v22 = vcombine.high %v2271_v11, %v11596_v9  ;;  %v2347_v17 = vshrl.u32 %v2264_v51, 16 }
 0x549   :  { %v1973_v61 = vpop.f32.mrb[14].mxu1  ;;  %v2363_v23 = vshrl.u32 %v2271_v11, 16 }
 0x54a   :  { %v2221_v3 = vrot.slane %v2214_v20, %v11860_v35  ;;  %v10825_v4 = vpop.f32.mrb[15].mxu1  ;;  %v2355_v37 = vshrl.u32 %v2272_v16, 16  ;;  %v2371_v21 = vshrl.u32 %v2273_v22, 16 }
 0x54b   :  { %v2108_v8 = vpop.f32.mrb[36].mxu0 }
 0x54c   :  { %v10842_v12 = vpop.f32.mrb[37].mxu0  ;;  %v2222_v60 = vcombine.low %v2213_v0, %v2221_v3  ;;  %v2223_v13 = vcombine.high %v2213_v0, %v2221_v3  ;;  %v2308_v31 = vpack.c.bf16 %v2108_v8, %v2108_v8 }
 0x54d   :  { %v2111_v15 = vpop.f32.mrb[38].mxu0 }
 0x54e   :  { %v10843_v25 = vpop.f32.mrb[39].mxu0  ;;  %v2230_v27 = vrot.slane %v2222_v60, %v11873_v47  ;;  %v2237_v29 = vrot.slane %v2223_v13, %v11873_v47  ;;  %v2315_v53 = vrot.slane %v2308_v31, %v11860_v35 }
 0x54f   :  { %v2062_v32 = vpop.f32.mrb[16].mxu1 }
 0x550   :  { %v2238_v33 = vcombine.high %v2230_v27, %v11596_v9  ;;  %v2239_v36 = vcombine.high %v2237_v29, %v11596_v9  ;;  %v2344_v28 = vpack.i.b16 %v2264_v51, %v2230_v27  ;;  %v2346_v24 = vshrl.u32 %v2230_v27, 16  ;;  %v10836_v2 = vpop.f32.mrb[17].mxu1 }
 0x551   :  { %v2360_v5 = vpack.i.b16 %v2271_v11, %v2237_v29  ;;  %v2362_v38 = vshrl.u32 %v2237_v29, 16  ;;  %v2065_v39 = vpop.f32.mrb[18].mxu1  ;;  %v2274_v57 = vpack.c.bf16 %v2062_v32, %v2062_v32 }
 0x552   :  { %v2348_v62 = vpack.i.b16 %v2347_v17, %v2346_v24  ;;  %v2352_v40 = vpack.i.b16 %v2272_v16, %v2238_v33  ;;  %v2354_v42 = vshrl.u32 %v2238_v33, 16  ;;  %v2368_v10 = vpack.i.b16 %v2273_v22, %v2239_v36  ;;  %v10837_v43 = vpop.f32.mrb[19].mxu1 }
 0x553   :  { %v2200_v14 = vpop.f32.mrb[40].mxu0  ;;  %v2364_v44 = vpack.i.b16 %v2363_v23, %v2362_v38  ;;  %v2370_v63 = vshrl.u32 %v2239_v36, 16  ;;  %v2406_v45 = vcombine.low %v2344_v28, %v2360_v5  ;;  %v2281_v13 = vrot.slane %v2274_v57, %v11860_v35 }
 0x554   :  { %v10854_v18 = vpop.f32.mrb[41].mxu0  ;;  %v2356_v30 = vpack.i.b16 %v2355_v37, %v2354_v42  ;;  %v2316_v41 = vpack.c.bf16 %v2200_v14, %v2200_v14  ;;  %v2414_v48 = vcombine.low %v2352_v40, %v2368_v10 }
 0x555   :  { %v2203_v46 = vpop.f32.mrb[42].mxu0  ;;  %v2372_v49 = vpack.i.b16 %v2371_v21, %v2370_v63  ;;  %v2456_v52 = vcombine.low %v2348_v62, %v2364_v44  ;;  %v2413_v55 = vrot.slane %v2406_v45, %v11860_v35 }
 0x556   :  { %v10855_v50 = vpop.f32.mrb[43].mxu0  ;;  %v2323_v54 = vrot.slane %v2316_v41, %v11860_v35  ;;  %v2421_v56 = vrot.slane %v2414_v48, %v11860_v35  ;;  %v11069_v41 = vld [vmem:[%s11643_s25 + $0x8] sm:$0xff]   ;;  %s11604_s25 = smov 16  }
 0x557   :  { %v2154_v19 = vpop.f32.mrb[20].mxu1  ;;  %v2464_v58 = vcombine.low %v2356_v30, %v2372_v49  ;;  %v2463_v4 = vrot.slane %v2456_v52, %v11860_v35  ;;  %10859 = vmatpush3.bf16.msra.mxu1 %v11069_v41  ;;  %v193_v41 = vld [vmem:[%s11663_s14 + $0xc0] sm:$0xff] }
 0x558   :  { %v2324_v20 = vcombine.low %v2315_v53, %v2323_v54  ;;  %v2325_v59 = vcombine.high %v2315_v53, %v2323_v54  ;;  %v2282_v51 = vpack.c.bf16 %v2154_v19, %v2154_v19  ;;  %v10848_v61 = vpop.f32.mrb[21].mxu1  ;;  %v2438_v0 = vcombine.low %v2413_v55, %v2421_v56 }
 0x559   :  { %v2157_v3 = vpop.f32.mrb[22].mxu1  ;;  %v2471_v8 = vrot.slane %v2464_v58, %v11860_v35 }
 0x55a   :  { %v2332_v11 = vrot.slane %v2324_v20, %v11873_v47  ;;  %v2289_v12 = vrot.slane %v2282_v51, %v11860_v35  ;;  %v10849_v60 = vpop.f32.mrb[23].mxu1  ;;  %v2339_v16 = vrot.slane %v2325_v59, %v11873_v47  ;;  %v2445_v52 = vrot.slane %v2438_v0, %v11873_v47 }
 0x55b   :  { %v2488_v15 = vcombine.low %v2463_v4, %v2471_v8 }
 0x55c   :  { %v2290_v25 = vcombine.low %v2281_v13, %v2289_v12  ;;  %v2291_v27 = vcombine.high %v2281_v13, %v2289_v12  ;;  %v2340_v29 = vcombine.high %v2332_v11, %v11596_v9  ;;  %v2341_v23 = vcombine.high %v2339_v16, %v11596_v9 }
 0x55d   :  { %v2379_v32 = vshrl.u32 %v2332_v11, 16  ;;  %v2395_v37 = vshrl.u32 %v2339_v16, 16  ;;  %v2495_v57 = vrot.slane %v2488_v15, %v11873_v47 }
 0x55e   :  { %v2298_v22 = vrot.slane %v2290_v25, %v11873_v47  ;;  %v2305_v17 = vrot.slane %v2291_v27, %v11873_v47  ;;  %v2387_v2 = vshrl.u32 %v2340_v29, 16  ;;  %v2403_v42 = vshrl.u32 %v2341_v23, 16  ;;  %v9816_v27 = vld [vmem:[%s11648_s29] ss:$0 sm:$0xff]  ;;  %s13329_s29 = sld [smem:[#allocation6_spill]] }
 0x560   :  { %v2306_v33 = vcombine.high %v2298_v22, %v11596_v9  ;;  %v2307_v36 = vcombine.high %v2305_v17, %v11596_v9  ;;  %v2376_v28 = vpack.i.b16 %v2332_v11, %v2298_v22  ;;  %v2378_v24 = vshrl.u32 %v2298_v22, 16 }
 0x561   :  { %v2392_v5 = vpack.i.b16 %v2339_v16, %v2305_v17  ;;  %v2394_v38 = vshrl.u32 %v2305_v17, 16 }
 0x562   :  { %v2380_v31 = vpack.i.b16 %v2379_v32, %v2378_v24  ;;  %v2384_v39 = vpack.i.b16 %v2340_v29, %v2306_v33  ;;  %v2386_v62 = vshrl.u32 %v2306_v33, 16  ;;  %v2400_v40 = vpack.i.b16 %v2341_v23, %v2307_v36 }
 0x563   :  { %v2396_v10 = vpack.i.b16 %v2395_v37, %v2394_v38  ;;  %v2402_v43 = vshrl.u32 %v2307_v36, 16  ;;  %v2422_v14 = vcombine.low %v2376_v28, %v2392_v5 }
 0x564   :  { %v2388_v21 = vpack.i.b16 %v2387_v2, %v2386_v62  ;;  %v2430_v44 = vcombine.low %v2384_v39, %v2400_v40 }
 0x565   :  { %v2404_v63 = vpack.i.b16 %v2403_v42, %v2402_v43  ;;  %v2472_v45 = vcombine.low %v2380_v31, %v2396_v10  ;;  %v2429_v18 = vrot.slane %v2422_v14, %v11860_v35  ;;  %v169_v10 = vld [vmem:[%s11663_s14] sm:$0xff]  ;;  %v170_v14 = vld [vmem:[%s11663_s14 + $0x8] sm:$0xff] }
 0x566   :  { %v2437_v30 = vrot.slane %v2430_v44, %v11860_v35  ;;  %v177_v43 = vld [vmem:[%s11663_s14 + $0x40] sm:$0xff]  ;;  %v178_v44 = vld [vmem:[%s11663_s14 + $0x48] sm:$0xff] }
 0x567   :  { %v2480_v46 = vcombine.low %v2388_v21, %v2404_v63  ;;  %v2479_v49 = vrot.slane %v2472_v45, %v11860_v35  ;;  %v9823_v21 = vcombine.high %v169_v10, %v177_v43  ;;  %v9822_v63 = vcombine.low %v169_v10, %v177_v43  ;;  %v198_v10 = vld [vmem:[%s11663_s14 + $0xe8] sm:$0xff] }
 0x568   :  { %v2446_v48 = vcombine.low %v2429_v18, %v2437_v30  ;;  %v9824_v45 = vcombine.low %v170_v14, %v178_v44  ;;  %v9825_v18 = vcombine.high %v170_v14, %v178_v44  ;;  %v185_v30 = vld [vmem:[%s11663_s14 + $0x80] sm:$0xff] }
 0x569   :  { %v2487_v50 = vrot.slane %v2480_v46, %v11860_v35  ;;  %2885 = vmatprep.subr.bf16.mxu0 %v9823_v21  ;;  %v186_v46 = vld [vmem:[%s11663_s14 + $0x88] sm:$0xff] }
 0x56a   :  { %v2453_v53 = vrot.slane %v2446_v48, %v11873_v47  ;;  %2928 = vmatprep.subr.bf16.mxu1 %v9825_v18  ;;  %2886 = vmatpush1.bf16.msra.mxu0 %v9822_v63  ;;  %v9839_v48 = vcombine.high %v185_v30, %v193_v41  ;;  %v175_v63 = vld [vmem:[%s11663_s14 + $0x30] sm:$0xff]  ;;  %v176_v18 = vld [vmem:[%s11663_s14 + $0x38] sm:$0xff] }
 0x56b   :  { %v2496_v54 = vcombine.low %v2479_v49, %v2487_v50  ;;  %v194_v49 = vld [vmem:[%s11663_s14 + $0xc8] sm:$0xff]  ;;  %v9838_v50 = vcombine.low %v185_v30, %v193_v41  ;;  %v184_v30 = vld [vmem:[%s11663_s14 + $0x78] sm:$0xff] }
 0x56c   :  { %v2455_v55 = vcombine.high %v2445_v52, %v2453_v53  ;;  %v2454_v56 = vcombine.low %v2445_v52, %v2453_v53  ;;  %v9840_v52 = vcombine.low %v186_v46, %v194_v49  ;;  %v9841_v53 = vcombine.high %v186_v46, %v194_v49  ;;  %2887 = vmatprep.subr.bf16.mxu0 %v9839_v48 }
 0x56d   :  { %v2503_v19 = vrot.slane %v2496_v54, %v11873_v47  ;;  %v171_v54 = vld [vmem:[%s11663_s14 + $0x10] sm:$0xff]  ;;  %v9837_v49 = vcombine.high %v176_v18, %v184_v30 }
 0x56e   :  { %v2509_v59 = vshrl.u32 %v2454_v56, 16  ;;  %v2515_v51 = vshrl.u32 %v2455_v55, 16  ;;  %2888 = vmatpush1.bf16.msra.mxu0 %v9838_v50  ;;  %v191_v50 = vld [vmem:[%s11663_s14 + $0xb0] sm:$0xff] }
 0x56f   :  { %v2505_v58 = vcombine.high %v2495_v57, %v2503_v19  ;;  %v2504_v20 = vcombine.low %v2495_v57, %v2503_v19  ;;  %v180_v19 = vld [vmem:[%s11663_s14 + $0x58] sm:$0xff] }
 0x571   :  { %v2514_v61 = vpack.i.b16 %v2505_v58, %v2455_v55  ;;  %v2510_v3 = vshrl.u32 %v2504_v20, 16  ;;  %v2516_v4 = vshrl.u32 %v2505_v58, 16  ;;  %v2508_v8 = vpack.i.b16 %v2504_v20, %v2454_v56  ;;  %v179_v55 = vld [vmem:[%s11663_s14 + $0x50] sm:$0xff]  ;;  %v172_v56 = vld [vmem:[%s11663_s14 + $0x18] sm:$0xff] }
 0x572   :  { %v9827_v57 = vcombine.high %v171_v54, %v179_v55  ;;  %v9826_v58 = vcombine.low %v171_v54, %v179_v55  ;;  %v9828_v20 = vcombine.low %v172_v56, %v180_v19  ;;  %v200_v54 = vld [vmem:[%s11663_s14 + $0xf8] sm:$0xff] }
 0x573   :  { %2520 = vrot.lane.b32.xlu1 %v2514_v61, %s11604_s25  ;;  %v2511_v0 = vpack.i.b16 %v2510_v3, %v2509_v59  ;;  %v2517_v11 = vpack.i.b16 %v2516_v4, %v2515_v51  ;;  %v9829_v59 = vcombine.high %v172_v56, %v180_v19  ;;  %v9836_v56 = vcombine.low %v176_v18, %v184_v30 }
 0x574   :  { %2971 = vmatprep.subr.bf16.mxu0 %v9827_v57 }
 0x575   :  { %2518 = vrot.lane.b32.xlu0 %v2511_v0, %s11605_s28 }
 0x577   :  { %2522 = vrot.lane.b32.xlu1 %v2517_v11, %s11606_s1 }
 0x5e5   :  { %v2521_v12 = vpop.permute.xlu1 %2520 }
 0x5e7   :  { %v2519_v60 = vpop.permute.xlu0 %2518 }
 0x5e8   :  { %v2526_v13 = vsel %vm1372_vm2, %v2508_v8, %v2519_v60  ;;  %v9820_v60 = vld [vmem:[%s11653_s3] ss:$0 sm:$0xff]  ;;  %s13330_s3 = sld [smem:[#allocation7_spill]] }
 0x5e9   :  { %v2523_v15 = vpop.permute.xlu1 %2522  ;;  %v2529_v16 = vsel %vm2527_vm4, %v2526_v13, %v2521_v12 }
 0x5ea   :  { %v2532_v25 = vsel %vm2530_vm5, %v2529_v16, %v2523_v15 }
 0x5eb   :  { %10861 = vmatmul.mubr.msk.bf16.vlgmr.msra.gmra.mrb[24].mxu1 %vm481_vm1, %v2532_v25  ;;  %v9821_v25 = vld [vmem:[%s11658_s8] ss:$0 sm:$0xff]  ;;  %s13331_s8 = sld [smem:[#allocation8_spill]] }
 0x5ec   :  { %2960 = vmatprep.mubr.bf16.mxu1 %v11596_v9  ;;  %2929 = vmatpush1.bf16.msra.mxu1 %v9824_v45  ;;  %v183_v45 = vld [vmem:[%s11663_s14 + $0x70] sm:$0xff] }
 0x5ed   :  { %2930 = vmatprep.subr.bf16.mxu1 %v9841_v53  ;;  %v9835_v48 = vcombine.high %v175_v63, %v183_v45  ;;  %v192_v53 = vld [vmem:[%s11663_s14 + $0xb8] sm:$0xff]  ;;  %v9834_v55 = vcombine.low %v175_v63, %v183_v45  ;;  %v12322_v63 = vsub.s32 3, %v11848_v26 }
 0x5ee   :  { %v9853_v19 = vcombine.high %v192_v53, %v200_v54 }
 0x5f0   :  { %2931 = vmatpush1.bf16.msra.mxu1 %v9840_v52  ;;  %v199_v52 = vld [vmem:[%s11663_s14 + $0xf0] sm:$0xff] }
 0x5f1   :  { %3014 = vmatprep.subr.bf16.mxu1 %v9829_v59  ;;  %v9851_v57 = vcombine.high %v191_v50, %v199_v52  ;;  %v11070_v59 = vld [vmem:[%s11673_s24 + $0x40] sm:$0xff]  }
 0x6be   :  { %v2587_v29 = vpop.f32.mrb[24].mxu1 }
 0x6bf   :  { %v2588_v22 = vadd.f32 %v9816_v27, %v2587_v29  ;;  %v10862_v17 = vpop.f32.mrb[25].mxu1  ;;  %v187_v29 = vld [vmem:[%s11663_s14 + $0x90] sm:$0xff] }
 0x6c0   :  { %v2590_v23 = vpop.f32.mrb[26].mxu1  ;;  %v188_v17 = vld [vmem:[%s11663_s14 + $0x98] sm:$0xff] }
 0x6c1   :  { %v2591_v32 = vadd.f32 %v9816_v27, %v2590_v23  ;;  %v10863_v33 = vpop.f32.mrb[27].mxu1  ;;  %v2594_v36 = vadd.f32 %v2588_v22, %v11810_v6  ;;  %v195_v22 = vld [vmem:[%s11663_s14 + $0xd0] sm:$0xff]  ;;  %v196_v23 = vld [vmem:[%s11663_s14 + $0xd8] sm:$0xff] }
 0x6c3   :  { %v2596_v28 = vsel %vm481_vm1, %v2594_v36, 0.0  ;;  %v2595_v24 = vadd.f32 %v2591_v32, %v11812_v7 }
 0x6c4   :  { %2597 = vadd.xlane.f32.xlu0 %v2596_v28  ;;  %v9843_v28 = vcombine.high %v187_v29, %v195_v22 }
 0x6c5   :  { %v2599_v2 = vsel %vm481_vm1, %v2595_v24, 0.0 }
 0x6c6   :  { %2600 = vadd.xlane.f32.xlu1 %v2599_v2  ;;  %v173_v2 = vld [vmem:[%s11663_s14 + $0x20] sm:$0xff] }
 0x751   :  { %v2598_v37 = vpop.xlane.xlu0 %2597 }
 0x752   :  { %v2603_v5 = vmul.f32 0.03125, %v2598_v37  ;;  %v181_v37 = vld [vmem:[%s11663_s14 + $0x60] sm:$0xff] }
 0x753   :  { %v2601_v38 = vpop.xlane.xlu1 %2600  ;;  %v9830_v43 = vcombine.low %v173_v2, %v181_v37 }
 0x754   :  { %v2605_v31 = vsub.f32 %v2594_v36, %v2603_v5  ;;  %v2604_v39 = vmul.f32 0.03125, %v2601_v38  ;;  %v174_v5 = vld [vmem:[%s11663_s14 + $0x28] sm:$0xff] }
 0x755   :  { %v182_v38 = vld [vmem:[%s11663_s14 + $0x68] sm:$0xff] }
 0x756   :  { %v2606_v62 = vsub.f32 %v2595_v24, %v2604_v39  ;;  %v2607_v40 = vmul.f32 %v2605_v31, %v2605_v31  ;;  %v9845_v24 = vcombine.high %v188_v17, %v196_v23  ;;  %v9844_v39 = vcombine.low %v188_v17, %v196_v23  ;;  %v11087_v17 = vld [vmem:[%s11673_s24 + $0xe0] sm:$0xff]  }
 0x757   :  { %v9832_v14 = vcombine.low %v174_v5, %v182_v38  ;;  %v11088_v23 = vld [vmem:[%s11673_s24 + $0x20] sm:$0xff]  }
 0x758   :  { %v2609_v6 = vsel %vm481_vm1, %v2607_v40, 0.0  ;;  %v2608_v42 = vmul.f32 %v2606_v62, %v2606_v62  ;;  %v9833_v40 = vcombine.high %v174_v5, %v182_v38  ;;  %v11094_v5 = vld [vmem:[%s11673_s24 + $0x70] sm:$0xff]  }
 0x759   :  { %2610 = vadd.xlane.f32.xlu0 %v2609_v6  ;;  %v189_v6 = vld [vmem:[%s11663_s14 + $0xa0] sm:$0xff]  ;;  %v11095_v38 = vld [vmem:[%s11673_s24 + $0xf0] sm:$0xff]  }
 0x75a   :  { %v2612_v7 = vsel %vm481_vm1, %v2608_v42, 0.0  ;;  %v197_v42 = vld [vmem:[%s11663_s14 + $0xe0] sm:$0xff] }
 0x75b   :  { %v9847_v21 = vcombine.high %v189_v6, %v197_v42  ;;  %v9846_v41 = vcombine.low %v189_v6, %v197_v42  ;;  %v11100_v6 = vld [vmem:[%s11673_s24 + $0x38] sm:$0xff]  }
 0x75c   :  { %v11101_v42 = vld [vmem:[%s11673_s24 + $0xb8] sm:$0xff]  }
 0x75d   :  { %2613 = vadd.xlane.f32.xlu0 %v2612_v7  ;;  %v190_v7 = vld [vmem:[%s11663_s14 + $0xa8] sm:$0xff]  ;;  %s13332_s14 = sld [smem:[#allocation9_spill]] }
 0x75e   :  { %v9849_v44 = vcombine.high %v190_v7, %v198_v10  ;;  %v9848_v46 = vcombine.low %v190_v7, %v198_v10  ;;  %v11102_v7 = vld [vmem:[%s11673_s24 + $0x140] sm:$0xff]  }
 0x75f   :  { %v11103_v10 = vld [vmem:[%s11673_s24 + $0x1c0] sm:$0xff]  }
 0x7e6   :  { %v2611_v51 = vpop.xlane.xlu0 %2610 }
 0x7e7   :  { %v2615_v61 = vmul.f32 0.03125, %v2611_v51  ;;  %v11071_v51 = vld [vmem:[%s11673_s24 + $0xc0] sm:$0xff]  }
 0x7e9   :  { %v2617_v3 = vadd.f32 1e-05, %v2615_v61  ;;  %v11072_v61 = vld [vmem:[%s11673_s24] sm:$0xff]  }
 0x7ea   :  { %v2614_v4 = vpop.xlane.xlu0 %2613 }
 0x7eb   :  { %11482 = vrsqrt.f32 %v2617_v3  ;;  %v2616_v8 = vmul.f32 0.03125, %v2614_v4  ;;  %v11073_v3 = vld [vmem:[%s11673_s24 + $0x80] sm:$0xff]   ;;  %v11074_v4 = vld [vmem:[%s11673_s24 + $0x48] sm:$0xff]  }
 0x7ed   :  { %v2618_v0 = vadd.f32 1e-05, %v2616_v8  ;;  %v11075_v8 = vld [vmem:[%s11673_s24 + $0xc8] sm:$0xff]  }
 0x7ef   :  { %11484 = vrsqrt.f32 %v2618_v0  ;;  %v11076_v0 = vld [vmem:[%s11673_s24 + $0x8] sm:$0xff]  }
 0x7f5   :  { %v11483_v11 = vpop.eup %11482 }
 0x7f6   :  { %v2621_v12 = vmul.f32 %v11483_v11, %v2605_v31  ;;  %v9842_v31 = vcombine.low %v187_v29, %v195_v22  ;;  %v11077_v11 = vld [vmem:[%s11673_s24 + $0x88] sm:$0xff]   ;;  %v11085_v29 = vld [vmem:[%s11673_s24 + $0x98] sm:$0xff]   ;;  %v11086_v22 = vld [vmem:[%s11673_s24 + $0x60] sm:$0xff]  }
 0x7f8   :  { %v2629_v15 = vmul.f32 %v9820_v60, %v2621_v12  ;;  %v11078_v12 = vld [vmem:[%s11673_s24 + $0x50] sm:$0xff]  }
 0x7f9   :  { %v11485_v13 = vpop.eup %11484 }
 0x7fa   :  { %v2622_v16 = vmul.f32 %v11485_v13, %v2606_v62  ;;  %v12231_v32 = vadd.f32 %v9821_v25, %v2629_v15  ;;  %v9831_v62 = vcombine.high %v173_v2, %v181_v37  ;;  %v11080_v13 = vld [vmem:[%s11673_s24 + $0x10] sm:$0xff]   ;;  %v11092_v2 = vld [vmem:[%s11673_s24 + $0x28] sm:$0xff]  }
 0x7fb   :  { %v11081_v15 = vld [vmem:[%s11673_s24 + $0x90] sm:$0xff]   ;;  %v11093_v37 = vld [vmem:[%s11673_s24 + $0xa8] sm:$0xff]  }
 0x7fc   :  { %v2630_v27 = vmul.f32 %v9820_v60, %v2622_v16  ;;  %v11079_v60 = vld [vmem:[%s11673_s24 + $0xd0] sm:$0xff]   ;;  %v11082_v16 = vld [vmem:[%s11673_s24 + $0x58] sm:$0xff]  }
 0x7fe   :  { %v12233_v33 = vadd.f32 %v9821_v25, %v2630_v27  ;;  %v11083_v25 = vld [vmem:[%s11673_s24 + $0xd8] sm:$0xff]  }
 0x7ff   :  { %v11084_v27 = vld [vmem:[%s11673_s24 + $0x18] sm:$0xff]  }
 0x800   :  { %v12237_v36 = vpack.c.bf16 %v12233_v33, %v12231_v32 }
 0x802   :  { %9854 = vmatmul.mubr.msk.bf16.vlgmr.msra.gmra.mrb[44].mxu0 %vm481_vm1, %v12237_v36  ;;  %9855 = vmatmul.mubr.msk.bf16.vlgmr.msra.gmra.mrb[28].mxu1 %vm481_vm1, %v12237_v36 }
 0x803   :  { %2972 = vmatpush1.bf16.msra.mxu0 %v9826_v58  ;;  %3015 = vmatpush1.bf16.msra.mxu1 %v9828_v20  ;;  %v9850_v58 = vcombine.low %v191_v50, %v199_v52  ;;  %v9852_v20 = vcombine.low %v192_v53, %v200_v54  ;;  %v12335_v52 = vsub.s32 5, %v11848_v26  ;;  %v12338_v53 = vsub.s32 7, %v11848_v26 }
 0x804   :  { %2973 = vmatprep.subr.bf16.mxu0 %v9843_v28  ;;  %3016 = vmatprep.subr.bf16.mxu1 %v9845_v24  ;;  %v11090_v28 = vld [vmem:[%s11673_s24 + $0x68] sm:$0xff]  }
 0x805   :  { %3003 = vmatprep.mubr.bf16.mxu0 %v11596_v9  ;;  %3046 = vmatprep.mubr.bf16.mxu1 %v11596_v9  ;;  %v11091_v24 = vld [vmem:[%s11673_s24 + $0xe8] sm:$0xff]  }
 0x807   :  { %2974 = vmatpush1.bf16.msra.mxu0 %v9842_v31  ;;  %3017 = vmatpush1.bf16.msra.mxu1 %v9844_v39  ;;  %v11096_v31 = vld [vmem:[%s11673_s24 + $0x30] sm:$0xff]  }
 0x808   :  { %3057 = vmatprep.subr.bf16.mxu0 %v9831_v62  ;;  %3100 = vmatprep.subr.bf16.mxu1 %v9833_v40  ;;  %v11097_v39 = vld [vmem:[%s11673_s24 + $0xb0] sm:$0xff]   ;;  %v11098_v62 = vld [vmem:[%s11673_s24 + $0x78] sm:$0xff]  }
 0x809   :  { %v11099_v40 = vld [vmem:[%s11673_s24 + $0xf8] sm:$0xff]  }
 0x80a   :  { %9856 = vmatmul.mubr.msk.bf16.vlgmr.msra.gmra.mrb[48].mxu0 %vm481_vm1, %v12237_v36  ;;  %9857 = vmatmul.mubr.msk.bf16.vlgmr.msra.gmra.mrb[32].mxu1 %vm481_vm1, %v12237_v36 }
 0x80b   :  { %3058 = vmatpush1.bf16.msra.mxu0 %v9830_v43  ;;  %3101 = vmatpush1.bf16.msra.mxu1 %v9832_v14  ;;  %v12312_v43 = vsub.s32 0, %v11848_v26  ;;  %v12315_v14 = vsub.s32 2, %v11848_v26 }
 0x80c   :  { %3059 = vmatprep.subr.bf16.mxu0 %v9847_v21  ;;  %3102 = vmatprep.subr.bf16.mxu1 %v9849_v44  ;;  %v201_v21 = vld [vmem:[%s11668_s19] sm:$0xff]  ;;  %v12319_v44 = vsub.s32 1, %v11848_v26 }
 0x80d   :  { %3089 = vmatprep.mubr.bf16.mxu0 %v11596_v9  ;;  %3132 = vmatprep.mubr.bf16.mxu1 %v11596_v9  ;;  %v2645_v45 = vrot.slane %v201_v21, %v12312_v43  ;;  %v2653_v18 = vrot.slane %v201_v21, %v12315_v14 }
 0x80e   :  { %v2649_v30 = vrot.slane %v201_v21, %v12319_v44 }
 0x80f   :  { %3060 = vmatpush1.bf16.msra.mxu0 %v9846_v41  ;;  %3103 = vmatpush1.bf16.msra.mxu1 %v9848_v46  ;;  %v2657_v41 = vrot.slane %v201_v21, %v12322_v63  ;;  %v12329_v46 = vsub.s32 4, %v11848_v26 }
 0x810   :  { %3143 = vmatprep.subr.bf16.mxu0 %v9835_v48  ;;  %3186 = vmatprep.subr.bf16.mxu1 %v9837_v49  ;;  %v12332_v48 = vsub.s32 6, %v11848_v26 }
 0x812   :  { %9858 = vmatmul.mubr.msk.bf16.vlgmr.msra.gmra.mrb[52].mxu0 %vm481_vm1, %v12237_v36  ;;  %9859 = vmatmul.mubr.msk.bf16.vlgmr.msra.gmra.mrb[36].mxu1 %vm481_vm1, %v12237_v36 }
 0x813   :  { %3144 = vmatpush1.bf16.msra.mxu0 %v9834_v55  ;;  %3187 = vmatpush1.bf16.msra.mxu1 %v9836_v56 }
 0x814   :  { %3145 = vmatprep.subr.bf16.mxu0 %v9851_v57  ;;  %3188 = vmatprep.subr.bf16.mxu1 %v9853_v19 }
 0x815   :  { %3175 = vmatprep.mubr.bf16.mxu0 %v11596_v9  ;;  %3218 = vmatprep.mubr.bf16.mxu1 %v11596_v9 }
 0x817   :  { %3146 = vmatpush1.bf16.msra.mxu0 %v9850_v58  ;;  %3189 = vmatpush1.bf16.msra.mxu1 %v9852_v20 }
 0x818   :  { %10327 = vmatprep.subr.bf16.mxu0 %v11070_v59  ;;  %10349 = vmatprep.subr.bf16.mxu1 %v11071_v51 }
 0x81a   :  { %9860 = vmatmul.mubr.msk.bf16.vlgmr.msra.gmra.mrb[56].mxu0 %vm481_vm1, %v12237_v36  ;;  %9861 = vmatmul.mubr.msk.bf16.vlgmr.msra.gmra.mrb[40].mxu1 %vm481_vm1, %v12237_v36  ;;  %v11089_v36 = vld [vmem:[%s11673_s24 + $0xa0] sm:$0xff]  }
 0x81b   :  { %10328 = vmatpush3.bf16.msra.mxu0 %v11072_v61  ;;  %10350 = vmatpush3.bf16.msra.mxu1 %v11073_v3 }
 0x81c   :  { %10329 = vmatprep.subr.bf16.mxu0 %v11074_v4  ;;  %10351 = vmatprep.subr.bf16.mxu1 %v11075_v8  ;;  %v2661_v8 = vrot.slane %v201_v21, %v12329_v46 }
 0x81f   :  { %10330 = vmatpush3.bf16.msra.mxu0 %v11076_v0  ;;  %10352 = vmatpush3.bf16.msra.mxu1 %v11077_v11  ;;  %v2669_v0 = vrot.slane %v201_v21, %v12332_v48 }
 0x820   :  { %10331 = vmatprep.subr.bf16.mxu0 %v11078_v12  ;;  %10353 = vmatprep.subr.bf16.mxu1 %v11079_v60  ;;  %v2665_v60 = vrot.slane %v201_v21, %v12335_v52 }
 0x823   :  { %10332 = vmatpush3.bf16.msra.mxu0 %v11080_v13  ;;  %10354 = vmatpush3.bf16.msra.mxu1 %v11081_v15  ;;  %v2673_v13 = vrot.slane %v201_v21, %v12338_v53 }
 0x824   :  { %10333 = vmatprep.subr.bf16.mxu0 %v11082_v16  ;;  %10355 = vmatprep.subr.bf16.mxu1 %v11083_v25 }
 0x827   :  { %10334 = vmatpush3.bf16.msra.mxu0 %v11084_v27  ;;  %10356 = vmatpush3.bf16.msra.mxu1 %v11085_v29 }
 0x828   :  { %10335 = vmatprep.subr.bf16.mxu0 %v11086_v22  ;;  %10357 = vmatprep.subr.bf16.mxu1 %v11087_v17 }
 0x82b   :  { %10336 = vmatpush3.bf16.msra.mxu0 %v11088_v23  ;;  %10358 = vmatpush3.bf16.msra.mxu1 %v11089_v36  ;;  %v12345_v36 = vld [vmem:[%s11668_s19 + $0x8] sm:$0xff]  ;;  %s13333_s19 = sld [smem:[#allocation12_spill]] }
 0x82c   :  { %10337 = vmatprep.subr.bf16.mxu0 %v11090_v28  ;;  %10359 = vmatprep.subr.bf16.mxu1 %v11091_v24  ;;  %v2677_v21 = vrot.slane %v12345_v36, %v12312_v43 }
 0x82f   :  { %10338 = vmatpush3.bf16.msra.mxu0 %v11092_v2  ;;  %10360 = vmatpush3.bf16.msra.mxu1 %v11093_v37 }
 0x830   :  { %10339 = vmatprep.subr.bf16.mxu0 %v11094_v5  ;;  %10361 = vmatprep.subr.bf16.mxu1 %v11095_v38 }
 0x833   :  { %10340 = vmatpush3.bf16.msra.mxu0 %v11096_v31  ;;  %10362 = vmatpush3.bf16.msra.mxu1 %v11097_v39  ;;  %v11104_v31 = vld [vmem:[%s11673_s24 + $0x100] sm:$0xff]  }
 0x834   :  { %10341 = vmatprep.subr.bf16.mxu0 %v11098_v62  ;;  %10363 = vmatprep.subr.bf16.mxu1 %v11099_v40  ;;  %v11105_v39 = vld [vmem:[%s11673_s24 + $0x180] sm:$0xff]  }
 0x837   :  { %10342 = vmatpush3.bf16.msra.mxu0 %v11100_v6  ;;  %10364 = vmatpush3.bf16.msra.mxu1 %v11101_v42 }
 0x838   :  { %10371 = vmatprep.subr.bf16.mxu0 %v11102_v7  ;;  %10393 = vmatprep.subr.bf16.mxu1 %v11103_v10  ;;  %v11106_v7 = vld [vmem:[%s11673_s24 + $0x148] sm:$0xff]  }
 0x839   :  { %v11107_v10 = vld [vmem:[%s11673_s24 + $0x1c8] sm:$0xff]  }
 0x8d5   :  { %v2919_v49 = vpop.f32.mrb[44].mxu0  ;;  %v2962_v50 = vpop.f32.mrb[28].mxu1 }
 0x8d6   :  { %v2920_v54 = vadd.f32 %v2919_v49, %v2645_v45  ;;  %v2963_v55 = vadd.f32 %v2962_v50, %v2653_v18  ;;  %v2921_v56 = vpop.f32.mrb[45].mxu0  ;;  %v2964_v57 = vpop.f32.mrb[29].mxu1  ;;  %v2685_v49 = vrot.slane %v12345_v36, %v12315_v14 }
 0x8d7   :  { %v2922_v19 = vadd.f32 %v2921_v56, %v2649_v30  ;;  %v2965_v58 = vadd.f32 %v2964_v57, %v2657_v41  ;;  %v2923_v20 = vpop.f32.mrb[46].mxu0  ;;  %v2966_v59 = vpop.f32.mrb[30].mxu1  ;;  %v2681_v57 = vrot.slane %v12345_v36, %v12319_v44 }
 0x8d8   :  { %v2924_v51 = vadd.f32 %v2923_v20, %v2645_v45  ;;  %v2967_v61 = vadd.f32 %v2966_v59, %v2653_v18  ;;  %v2925_v3 = vpop.f32.mrb[47].mxu0  ;;  %v2968_v4 = vpop.f32.mrb[31].mxu1  ;;  %v3229_v15 = vmax.f32 %v2920_v54, 0.0  ;;  %v3231_v16 = vmax.f32 %v2963_v55, 0.0  ;;  %v11108_v20 = vld [vmem:[%s11673_s24 + $0x108] sm:$0xff]  }
 0x8d9   :  { %v2926_v11 = vadd.f32 %v2925_v3, %v2649_v30  ;;  %v2969_v12 = vadd.f32 %v2968_v4, %v2657_v41  ;;  %v3230_v29 = vmax.f32 %v2922_v19, 0.0  ;;  %v3232_v22 = vmax.f32 %v2965_v58, 0.0  ;;  %v11109_v59 = vld [vmem:[%s11673_s24 + $0x188] sm:$0xff]  }
 0x8da   :  { %v3245_v25 = vmax.f32 %v2924_v51, 0.0  ;;  %v3247_v27 = vmax.f32 %v2967_v61, 0.0  ;;  %v2689_v51 = vrot.slane %v12345_v36, %v12322_v63 }
 0x8db   :  { %v3246_v17 = vmax.f32 %v2926_v11, 0.0  ;;  %v3248_v23 = vmax.f32 %v2969_v12, 0.0  ;;  %v11111_v11 = vld [vmem:[%s11673_s24 + $0x1d0] sm:$0xff]  }
 0x8dc   :  { %v3261_v28 = vpack.c.bf16 %v3245_v25, %v3229_v15  ;;  %v3263_v24 = vpack.c.bf16 %v3247_v27, %v3231_v16 }
 0x8dd   :  { %v3262_v2 = vpack.c.bf16 %v3246_v17, %v3230_v29  ;;  %v3264_v37 = vpack.c.bf16 %v3248_v23, %v3232_v22  ;;  %v3005_v5 = vpop.f32.mrb[48].mxu0  ;;  %v3048_v38 = vpop.f32.mrb[32].mxu1  ;;  %v11112_v23 = vld [vmem:[%s11673_s24 + $0x110] sm:$0xff]  }
 0x8de   :  { %v3006_v62 = vadd.f32 %v3005_v5, %v2661_v8  ;;  %v3049_v40 = vadd.f32 %v3048_v38, %v2669_v0  ;;  %v3007_v6 = vpop.f32.mrb[49].mxu0  ;;  %v3050_v42 = vpop.f32.mrb[33].mxu1  ;;  %v11114_v38 = vld [vmem:[%s11673_s24 + $0x158] sm:$0xff]  }
 0x8df   :  { %v3008_v45 = vadd.f32 %v3007_v6, %v2665_v60  ;;  %v3051_v18 = vadd.f32 %v3050_v42, %v2673_v13  ;;  %v3009_v30 = vpop.f32.mrb[50].mxu0  ;;  %v3052_v41 = vpop.f32.mrb[34].mxu1  ;;  %4083 = vmatprep.mubr.bf16.mxu0 %v3262_v2  ;;  %4124 = vmatprep.mubr.bf16.mxu1 %v3264_v37  ;;  %v2693_v42 = vrot.slane %v12345_v36, %v12329_v46 }
 0x8e0   :  { %v3010_v50 = vadd.f32 %v3009_v30, %v2661_v8  ;;  %v3053_v54 = vadd.f32 %v3052_v41, %v2669_v0  ;;  %v3011_v55 = vpop.f32.mrb[51].mxu0  ;;  %v3054_v56 = vpop.f32.mrb[35].mxu1  ;;  %4084 = vmatmul.mubr.bf16.vlgmr.msra.gmra.mrb[60].mxu0 %v3261_v28  ;;  %4125 = vmatmul.mubr.bf16.vlgmr.msra.gmra.mrb[44].mxu1 %v3263_v24  ;;  %v3233_v61 = vmax.f32 %v3006_v62, 0.0  ;;  %v3235_v3 = vmax.f32 %v3049_v40, 0.0  ;;  %v11110_v0 = vld [vmem:[%s11673_s24 + $0x150] sm:$0xff]  }
 0x8e1   :  { %v3012_v19 = vadd.f32 %v3011_v55, %v2665_v60  ;;  %v3055_v58 = vadd.f32 %v3054_v56, %v2673_v13  ;;  %10372 = vmatpush3.bf16.msra.mxu0 %v11104_v31  ;;  %10394 = vmatpush3.bf16.msra.mxu1 %v11105_v39  ;;  %v3234_v12 = vmax.f32 %v3008_v45, 0.0  ;;  %v3236_v60 = vmax.f32 %v3051_v18, 0.0  ;;  %v11113_v28 = vld [vmem:[%s11673_s24 + $0x190] sm:$0xff]   ;;  %v11115_v31 = vld [vmem:[%s11673_s24 + $0x1d8] sm:$0xff]  }
 0x8e2   :  { %v3249_v4 = vmax.f32 %v3010_v50, 0.0  ;;  %v3251_v8 = vmax.f32 %v3053_v54, 0.0  ;;  %10373 = vmatprep.subr.bf16.mxu0 %v11106_v7  ;;  %10395 = vmatprep.subr.bf16.mxu1 %v11107_v10  ;;  %v2701_v30 = vrot.slane %v12345_v36, %v12332_v48  ;;  %v2697_v41 = vrot.slane %v12345_v36, %v12335_v52  ;;  %v11116_v55 = vld [vmem:[%s11673_s24 + $0x118] sm:$0xff]  }
 0x8e3   :  { %v3250_v13 = vmax.f32 %v3012_v19, 0.0  ;;  %v3252_v15 = vmax.f32 %v3055_v58, 0.0  ;;  %v11117_v56 = vld [vmem:[%s11673_s24 + $0x198] sm:$0xff]  }
 0x8e4   :  { %v12363_v16 = vpack.c.bf16 %v3249_v4, %v3233_v61  ;;  %v12365_v25 = vpack.c.bf16 %v3251_v8, %v3235_v3  ;;  %v11119_v61 = vld [vmem:[%s11673_s24 + $0x1e0] sm:$0xff]  }
 0x8e5   :  { %v3266_v27 = vpack.c.bf16 %v3250_v13, %v3234_v12  ;;  %v3268_v29 = vpack.c.bf16 %v3252_v15, %v3236_v60  ;;  %10374 = vmatpush3.bf16.msra.mxu0 %v11108_v20  ;;  %10396 = vmatpush3.bf16.msra.mxu1 %v11109_v59  ;;  %v3091_v22 = vpop.f32.mrb[52].mxu0  ;;  %v3134_v17 = vpop.f32.mrb[36].mxu1  ;;  %v11118_v59 = vld [vmem:[%s11673_s24 + $0x160] sm:$0xff]  }
 0x8e6   :  { %v3092_v24 = vadd.f32 %v3091_v22, %v2677_v21  ;;  %v3135_v2 = vadd.f32 %v3134_v17, %v2685_v49  ;;  %v3093_v37 = vpop.f32.mrb[53].mxu0  ;;  %v3136_v5 = vpop.f32.mrb[37].mxu1  ;;  %10375 = vmatprep.subr.bf16.mxu0 %v11110_v0  ;;  %10397 = vmatprep.subr.bf16.mxu1 %v11111_v11  ;;  %v11120_v13 = vld [vmem:[%s11673_s24 + $0x120] sm:$0xff]  }
 0x8e7   :  { %v3094_v39 = vadd.f32 %v3093_v37, %v2681_v57  ;;  %v3137_v62 = vadd.f32 %v3136_v5, %v2689_v51  ;;  %v3095_v40 = vpop.f32.mrb[54].mxu0  ;;  %v3138_v6 = vpop.f32.mrb[38].mxu1  ;;  %4165 = vmatprep.mubr.bf16.mxu0 %v3266_v27  ;;  %4206 = vmatprep.mubr.bf16.mxu1 %v3268_v29  ;;  %v11121_v15 = vld [vmem:[%s11673_s24 + $0x1a0] sm:$0xff]  }
 0x8e8   :  { %v3096_v7 = vadd.f32 %v3095_v40, %v2677_v21  ;;  %v3139_v10 = vadd.f32 %v3138_v6, %v2685_v49  ;;  %v3097_v45 = vpop.f32.mrb[55].mxu0  ;;  %v3140_v18 = vpop.f32.mrb[39].mxu1  ;;  %v2705_v21 = vrot.slane %v12345_v36, %v12338_v53  ;;  %v3237_v49 = vmax.f32 %v3092_v24, 0.0 }
 0x8e9   :  { %v3098_v50 = vadd.f32 %v3097_v45, %v2681_v57  ;;  %v3141_v54 = vadd.f32 %v3140_v18, %v2689_v51  ;;  %10376 = vmatpush3.bf16.msra.mxu0 %v11112_v23  ;;  %10398 = vmatpush3.bf16.msra.mxu1 %v11113_v28  ;;  %v3239_v19 = vmax.f32 %v3135_v2, 0.0  ;;  %v3238_v3 = vmax.f32 %v3094_v39, 0.0  ;;  %v11122_v23 = vld [vmem:[%s11673_s24 + $0x168] sm:$0xff]  }
 0x8ea   :  { %v3253_v58 = vmax.f32 %v3096_v7, 0.0  ;;  %v3255_v20 = vmax.f32 %v3139_v10, 0.0  ;;  %10377 = vmatprep.subr.bf16.mxu0 %v11114_v38  ;;  %10399 = vmatprep.subr.bf16.mxu1 %v11115_v31  ;;  %v3240_v57 = vmax.f32 %v3137_v62, 0.0  ;;  %v11123_v28 = vld [vmem:[%s11673_s24 + $0x1e8] sm:$0xff]  }
 0x8eb   :  { %v3254_v51 = vmax.f32 %v3098_v50, 0.0  ;;  %v3256_v4 = vmax.f32 %v3141_v54, 0.0  ;;  %v11124_v7 = vld [vmem:[%s11673_s24 + $0x128] sm:$0xff]  }
 0x8ec   :  { %v12383_v8 = vpack.c.bf16 %v3253_v58, %v3237_v49  ;;  %v12385_v0 = vpack.c.bf16 %v3255_v20, %v3239_v19  ;;  %v11125_v10 = vld [vmem:[%s11673_s24 + $0x1a8] sm:$0xff]  }
 0x8ed   :  { %v12387_v36 = vpack.c.bf16 %v3254_v51, %v3238_v3  ;;  %v12389_v11 = vpack.c.bf16 %v3256_v4, %v3240_v57  ;;  %10378 = vmatpush3.bf16.msra.mxu0 %v11116_v55  ;;  %10400 = vmatpush3.bf16.msra.mxu1 %v11117_v56  ;;  %v3177_v12 = vpop.f32.mrb[56].mxu0  ;;  %v3220_v60 = vpop.f32.mrb[40].mxu1  ;;  %v11130_v3 = vld [vmem:[%s11673_s24 + $0x178] sm:$0xff]  }
 0x8ee   :  { %v3178_v27 = vadd.f32 %v3177_v12, %v2693_v42  ;;  %v3221_v29 = vadd.f32 %v3220_v60, %v2701_v30  ;;  %v3179_v22 = vpop.f32.mrb[57].mxu0  ;;  %v3222_v17 = vpop.f32.mrb[41].mxu1  ;;  %10379 = vmatprep.subr.bf16.mxu0 %v11118_v59  ;;  %10401 = vmatprep.subr.bf16.mxu1 %v11119_v61  ;;  %v11128_v59 = vld [vmem:[%s11673_s24 + $0x130] sm:$0xff]   ;;  %v11131_v57 = vld [vmem:[%s11673_s24 + $0x1f8] sm:$0xff]   ;;  %v11134_v12 = vld [vmem:[%s11673_s24 + $0x240] sm:$0xff]  }
 0x8ef   :  { %v3180_v24 = vadd.f32 %v3179_v22, %v2697_v41  ;;  %v3223_v2 = vadd.f32 %v3222_v17, %v2705_v21  ;;  %v3181_v37 = vpop.f32.mrb[58].mxu0  ;;  %v3224_v5 = vpop.f32.mrb[42].mxu1  ;;  %v11129_v61 = vld [vmem:[%s11673_s24 + $0x1b0] sm:$0xff]   ;;  %v11132_v51 = vld [vmem:[%s11673_s24 + $0x138] sm:$0xff]   ;;  %v11135_v60 = vld [vmem:[%s11673_s24 + $0x2c0] sm:$0xff]  }
 0x8f0   :  { %v3182_v38 = vadd.f32 %v3181_v37, %v2693_v42  ;;  %v3225_v31 = vadd.f32 %v3224_v5, %v2701_v30  ;;  %v3183_v39 = vpop.f32.mrb[59].mxu0  ;;  %v3226_v62 = vpop.f32.mrb[43].mxu1  ;;  %v3241_v45 = vmax.f32 %v3178_v27, 0.0  ;;  %v3243_v18 = vmax.f32 %v3221_v29, 0.0  ;;  %v11126_v42 = vld [vmem:[%s11673_s24 + $0x170] sm:$0xff]   ;;  %v11133_v4 = vld [vmem:[%s11673_s24 + $0x1b8] sm:$0xff]  }
 0x8f1   :  { %v3184_v40 = vadd.f32 %v3183_v39, %v2697_v41  ;;  %v3227_v6 = vadd.f32 %v3226_v62, %v2705_v21  ;;  %10380 = vmatpush3.bf16.msra.mxu0 %v11120_v13  ;;  %10402 = vmatpush3.bf16.msra.mxu1 %v11121_v15  ;;  %v11127_v30 = vld [vmem:[%s11673_s24 + $0x1f0] sm:$0xff]   ;;  %v3242_v55 = vmax.f32 %v3180_v24, 0.0  ;;  %v3244_v56 = vmax.f32 %v3223_v2, 0.0  ;;  %v11136_v13 = vld [vmem:[%s11673_s24 + $0x200] sm:$0xff]   ;;  %v11138_v27 = vld [vmem:[%s11673_s24 + $0x248] sm:$0xff]  }
 0x8f2   :  { %v3257_v50 = vmax.f32 %v3182_v38, 0.0  ;;  %v3259_v54 = vmax.f32 %v3225_v31, 0.0  ;;  %10381 = vmatprep.subr.bf16.mxu0 %v11122_v23  ;;  %10403 = vmatprep.subr.bf16.mxu1 %v11123_v28  ;;  %v11137_v15 = vld [vmem:[%s11673_s24 + $0x280] sm:$0xff]   ;;  %v11139_v29 = vld [vmem:[%s11673_s24 + $0x2c8] sm:$0xff]   ;;  %v11142_v23 = vld [vmem:[%s11673_s24 + $0x250] sm:$0xff]  }
 0x8f3   :  { %v3258_v41 = vmax.f32 %v3184_v40, 0.0  ;;  %v3260_v21 = vmax.f32 %v3227_v6, 0.0  ;;  %v11140_v22 = vld [vmem:[%s11673_s24 + $0x208] sm:$0xff]   ;;  %v11146_v28 = vld [vmem:[%s11673_s24 + $0x258] sm:$0xff]   ;;  %v11150_v37 = vld [vmem:[%s11673_s24 + $0x260] sm:$0xff]  }
 0x8f4   :  { %v12399_v49 = vpack.c.bf16 %v3257_v50, %v3241_v45  ;;  %v12401_v19 = vpack.c.bf16 %v3259_v54, %v3243_v18  ;;  %v11141_v17 = vld [vmem:[%s11673_s24 + $0x288] sm:$0xff]   ;;  %v11147_v24 = vld [vmem:[%s11673_s24 + $0x2d8] sm:$0xff]   ;;  %v11151_v5 = vld [vmem:[%s11673_s24 + $0x2e0] sm:$0xff]  }
 0x8f5   :  { %v12403_v58 = vpack.c.bf16 %v3258_v41, %v3242_v55  ;;  %v12405_v20 = vpack.c.bf16 %v3260_v21, %v3244_v56  ;;  %10382 = vmatpush3.bf16.msra.mxu0 %v11124_v7  ;;  %10404 = vmatpush3.bf16.msra.mxu1 %v11125_v10  ;;  %v11149_v2 = vld [vmem:[%s11673_s24 + $0x298] sm:$0xff]   ;;  %v11152_v38 = vld [vmem:[%s11673_s24 + $0x220] sm:$0xff]   ;;  %v11154_v39 = vld [vmem:[%s11673_s24 + $0x268] sm:$0xff]  }
 0x8f6   :  { %10383 = vmatprep.subr.bf16.mxu0 %v11126_v42  ;;  %10405 = vmatprep.subr.bf16.mxu1 %v11127_v30  ;;  %v11153_v31 = vld [vmem:[%s11673_s24 + $0x2a0] sm:$0xff]   ;;  %v11155_v62 = vld [vmem:[%s11673_s24 + $0x2e8] sm:$0xff]   ;;  %v11158_v7 = vld [vmem:[%s11673_s24 + $0x270] sm:$0xff]  }
 0x8f7   :  { %v11156_v40 = vld [vmem:[%s11673_s24 + $0x228] sm:$0xff]   ;;  %v11159_v10 = vld [vmem:[%s11673_s24 + $0x2f0] sm:$0xff]   ;;  %v11162_v50 = vld [vmem:[%s11673_s24 + $0x278] sm:$0xff]  }
 0x8f8   :  { %v11157_v6 = vld [vmem:[%s11673_s24 + $0x2a8] sm:$0xff]   ;;  %v11160_v45 = vld [vmem:[%s11673_s24 + $0x230] sm:$0xff]   ;;  %v11163_v54 = vld [vmem:[%s11673_s24 + $0x2f8] sm:$0xff]  }
 0x8f9   :  { %10384 = vmatpush3.bf16.msra.mxu0 %v11128_v59  ;;  %10406 = vmatpush3.bf16.msra.mxu1 %v11129_v61  ;;  %v11161_v18 = vld [vmem:[%s11673_s24 + $0x2b0] sm:$0xff]   ;;  %v11164_v42 = vld [vmem:[%s11673_s24 + $0x238] sm:$0xff]   ;;  %v11166_v55 = vld [vmem:[%s11673_s24 + $0x340] sm:$0xff]  }
 0x8fa   :  { %10385 = vmatprep.subr.bf16.mxu0 %v11130_v3  ;;  %10407 = vmatprep.subr.bf16.mxu1 %v11131_v57  ;;  %v11165_v30 = vld [vmem:[%s11673_s24 + $0x2b8] sm:$0xff]   ;;  %v11167_v56 = vld [vmem:[%s11673_s24 + $0x3c0] sm:$0xff]   ;;  %v11170_v59 = vld [vmem:[%s11673_s24 + $0x348] sm:$0xff]  }
 0x8fb   :  { %v11168_v41 = vld [vmem:[%s11673_s24 + $0x300] sm:$0xff]   ;;  %v11171_v61 = vld [vmem:[%s11673_s24 + $0x3c8] sm:$0xff]  }
 0x8fc   :  { %v11169_v21 = vld [vmem:[%s11673_s24 + $0x380] sm:$0xff]   ;;  %v11172_v3 = vld [vmem:[%s11673_s24 + $0x308] sm:$0xff]  }
 0x8fd   :  { %10386 = vmatpush3.bf16.msra.mxu0 %v11132_v51  ;;  %10408 = vmatpush3.bf16.msra.mxu1 %v11133_v4  ;;  %v11173_v57 = vld [vmem:[%s11673_s24 + $0x388] sm:$0xff]   ;;  %v11174_v51 = vld [vmem:[%s11673_s24 + $0x350] sm:$0xff]  }
 0x8fe   :  { %10415 = vmatprep.subr.bf16.mxu0 %v11134_v12  ;;  %10437 = vmatprep.subr.bf16.mxu1 %v11135_v60  ;;  %v11177_v4 = vld [vmem:[%s11673_s24 + $0x390] sm:$0xff]   ;;  %v11179_v12 = vld [vmem:[%s11673_s24 + $0x3d8] sm:$0xff]  }
 0x8ff   :  { %v11181_v60 = vld [vmem:[%s11673_s24 + $0x398] sm:$0xff]  }
 0x900   :  { %4166 = vmatmul.mubr.bf16.vlgmr.msra.gmra.mrb[64].mxu0 %v12363_v16  ;;  %4207 = vmatmul.mubr.bf16.vlgmr.msra.gmra.mrb[48].mxu1 %v12365_v25  ;;  %v11143_v16 = vld [vmem:[%s11673_s24 + $0x2d0] sm:$0xff]  }
 0x901   :  { %10416 = vmatpush3.bf16.msra.mxu0 %v11136_v13  ;;  %4247 = vmatprep.mubr.bf16.mxu0 %v12387_v36  ;;  %v11144_v25 = vld [vmem:[%s11673_s24 + $0x210] sm:$0xff]   ;;  %v11182_v13 = vld [vmem:[%s11673_s24 + $0x360] sm:$0xff]  }
 0x902   :  { %10438 = vmatpush3.bf16.msra.mxu1 %v11137_v15  ;;  %4288 = vmatprep.mubr.bf16.mxu1 %v12389_v11  ;;  %v11145_v36 = vld [vmem:[%s11673_s24 + $0x290] sm:$0xff]   ;;  %v11148_v11 = vld [vmem:[%s11673_s24 + $0x218] sm:$0xff]   ;;  %v11183_v15 = vld [vmem:[%s11673_s24 + $0x3e0] sm:$0xff]  }
 0x903   :  { %10417 = vmatprep.subr.bf16.mxu0 %v11138_v27  ;;  %10439 = vmatprep.subr.bf16.mxu1 %v11139_v29  ;;  %v11184_v27 = vld [vmem:[%s11673_s24 + $0x320] sm:$0xff]  }
 0x904   :  { %v11185_v29 = vld [vmem:[%s11673_s24 + $0x3a0] sm:$0xff]  }
 0x905   :  { %10418 = vmatpush3.bf16.msra.mxu0 %v11140_v22  ;;  %v11186_v22 = vld [vmem:[%s11673_s24 + $0x368] sm:$0xff]  }
 0x906   :  { %10440 = vmatpush3.bf16.msra.mxu1 %v11141_v17  ;;  %10419 = vmatprep.subr.bf16.mxu0 %v11142_v23  ;;  %v11187_v17 = vld [vmem:[%s11673_s24 + $0x3e8] sm:$0xff]  }
 0x907   :  { %10441 = vmatprep.subr.bf16.mxu1 %v11143_v16  ;;  %v11188_v23 = vld [vmem:[%s11673_s24 + $0x328] sm:$0xff]  }
 0x908   :  { %v11189_v16 = vld [vmem:[%s11673_s24 + $0x3a8] sm:$0xff]  }
 0x909   :  { %10420 = vmatpush3.bf16.msra.mxu0 %v11144_v25  ;;  %v11190_v25 = vld [vmem:[%s11673_s24 + $0x370] sm:$0xff]  }
 0x90a   :  { %10442 = vmatpush3.bf16.msra.mxu1 %v11145_v36  ;;  %10421 = vmatprep.subr.bf16.mxu0 %v11146_v28  ;;  %v11191_v36 = vld [vmem:[%s11673_s24 + $0x3f0] sm:$0xff]  }
 0x90b   :  { %10443 = vmatprep.subr.bf16.mxu1 %v11147_v24  ;;  %v11192_v28 = vld [vmem:[%s11673_s24 + $0x330] sm:$0xff]  }
 0x90c   :  { %v11193_v24 = vld [vmem:[%s11673_s24 + $0x3b0] sm:$0xff]  }
 0x90d   :  { %10422 = vmatpush3.bf16.msra.mxu0 %v11148_v11  ;;  %v11194_v11 = vld [vmem:[%s11673_s24 + $0x378] sm:$0xff]  }
 0x90e   :  { %10444 = vmatpush3.bf16.msra.mxu1 %v11149_v2  ;;  %10423 = vmatprep.subr.bf16.mxu0 %v11150_v37  ;;  %v11195_v2 = vld [vmem:[%s11673_s24 + $0x3f8] sm:$0xff]  }
 0x90f   :  { %10445 = vmatprep.subr.bf16.mxu1 %v11151_v5  ;;  %v11196_v37 = vld [vmem:[%s11673_s24 + $0x338] sm:$0xff]  }
 0x910   :  { %v11197_v5 = vld [vmem:[%s11673_s24 + $0x3b8] sm:$0xff]  }
 0x911   :  { %10424 = vmatpush3.bf16.msra.mxu0 %v11152_v38 }
 0x912   :  { %10446 = vmatpush3.bf16.msra.mxu1 %v11153_v31  ;;  %10425 = vmatprep.subr.bf16.mxu0 %v11154_v39  ;;  %v9862_v39 = vld [vmem:[%s11678_s30] ss:$0 sm:$0xff]  ;;  %s13335_s30 = sld [smem:[#allocation11_spill]] }
 0x913   :  { %10447 = vmatprep.subr.bf16.mxu1 %v11155_v62 }
 0x915   :  { %10426 = vmatpush3.bf16.msra.mxu0 %v11156_v40 }
 0x916   :  { %10448 = vmatpush3.bf16.msra.mxu1 %v11157_v6  ;;  %10427 = vmatprep.subr.bf16.mxu0 %v11158_v7 }
 0x917   :  { %10449 = vmatprep.subr.bf16.mxu1 %v11159_v10 }
 0x919   :  { %10428 = vmatpush3.bf16.msra.mxu0 %v11160_v45 }
 0x91a   :  { %10450 = vmatpush3.bf16.msra.mxu1 %v11161_v18  ;;  %10429 = vmatprep.subr.bf16.mxu0 %v11162_v50 }
 0x91b   :  { %10451 = vmatprep.subr.bf16.mxu1 %v11163_v54 }
 0x91d   :  { %10430 = vmatpush3.bf16.msra.mxu0 %v11164_v42 }
 0x91e   :  { %10452 = vmatpush3.bf16.msra.mxu1 %v11165_v30  ;;  %10459 = vmatprep.subr.bf16.mxu0 %v11166_v55 }
 0x91f   :  { %10481 = vmatprep.subr.bf16.mxu1 %v11167_v56 }
 0x920   :  { %4248 = vmatmul.mubr.bf16.vlgmr.msra.gmra.mrb[68].mxu0 %v12383_v8  ;;  %v11175_v8 = vld [vmem:[%s11673_s24 + $0x3d0] sm:$0xff]  }
 0x921   :  { %4289 = vmatmul.mubr.bf16.vlgmr.msra.gmra.mrb[52].mxu1 %v12385_v0  ;;  %10460 = vmatpush3.bf16.msra.mxu0 %v11168_v41  ;;  %v11176_v0 = vld [vmem:[%s11673_s24 + $0x310] sm:$0xff]  }
 0x922   :  { %4329 = vmatprep.mubr.bf16.mxu0 %v12403_v58  ;;  %10482 = vmatpush3.bf16.msra.mxu1 %v11169_v21  ;;  %v11178_v58 = vld [vmem:[%s11673_s24 + $0x358] sm:$0xff]  }
 0x923   :  { %4370 = vmatprep.mubr.bf16.mxu1 %v12405_v20  ;;  %10461 = vmatprep.subr.bf16.mxu0 %v11170_v59  ;;  %v11180_v20 = vld [vmem:[%s11673_s24 + $0x318] sm:$0xff]   ;;  %s13334_s24 = sld [smem:[#allocation10_spill]] }
 0x924   :  { %10483 = vmatprep.subr.bf16.mxu1 %v11171_v61 }
 0x925   :  { %10462 = vmatpush3.bf16.msra.mxu0 %v11172_v3 }
 0x926   :  { %10484 = vmatpush3.bf16.msra.mxu1 %v11173_v57  ;;  %10463 = vmatprep.subr.bf16.mxu0 %v11174_v51 }
 0x927   :  { %10485 = vmatprep.subr.bf16.mxu1 %v11175_v8 }
 0x929   :  { %10464 = vmatpush3.bf16.msra.mxu0 %v11176_v0 }
 0x92a   :  { %10486 = vmatpush3.bf16.msra.mxu1 %v11177_v4  ;;  %10465 = vmatprep.subr.bf16.mxu0 %v11178_v58 }
 0x92b   :  { %10487 = vmatprep.subr.bf16.mxu1 %v11179_v12 }
 0x92d   :  { %10466 = vmatpush3.bf16.msra.mxu0 %v11180_v20 }
 0x92e   :  { %10488 = vmatpush3.bf16.msra.mxu1 %v11181_v60  ;;  %10467 = vmatprep.subr.bf16.mxu0 %v11182_v13 }
 0x92f   :  { %10489 = vmatprep.subr.bf16.mxu1 %v11183_v15 }
 0x931   :  { %10468 = vmatpush3.bf16.msra.mxu0 %v11184_v27 }
 0x932   :  { %10490 = vmatpush3.bf16.msra.mxu1 %v11185_v29  ;;  %10469 = vmatprep.subr.bf16.mxu0 %v11186_v22 }
 0x933   :  { %10491 = vmatprep.subr.bf16.mxu1 %v11187_v17 }
 0x935   :  { %10470 = vmatpush3.bf16.msra.mxu0 %v11188_v23 }
 0x936   :  { %10492 = vmatpush3.bf16.msra.mxu1 %v11189_v16  ;;  %10471 = vmatprep.subr.bf16.mxu0 %v11190_v25 }
 0x937   :  { %10493 = vmatprep.subr.bf16.mxu1 %v11191_v36 }
 0x939   :  { %10472 = vmatpush3.bf16.msra.mxu0 %v11192_v28 }
 0x93a   :  { %10494 = vmatpush3.bf16.msra.mxu1 %v11193_v24  ;;  %10473 = vmatprep.subr.bf16.mxu0 %v11194_v11 }
 0x93b   :  { %10495 = vmatprep.subr.bf16.mxu1 %v11195_v2 }
 0x93d   :  { %10474 = vmatpush3.bf16.msra.mxu0 %v11196_v37 }
 0x93e   :  { %10496 = vmatpush3.bf16.msra.mxu1 %v11197_v5  ;;  %10864 = vmatprep.subr.bf16.mxu0 %v11594_v1 }
 0x93f   :  { %10872 = vmatprep.subr.bf16.mxu1 %v11594_v1 }
 0x940   :  { %4330 = vmatmul.mubr.bf16.vlgmr.msra.gmra.mrb[72].mxu0 %v12399_v49 }
 0x941   :  { %4371 = vmatmul.mubr.bf16.vlgmr.msra.gmra.mrb[56].mxu1 %v12401_v19  ;;  %10868 = vmatprep.mubr.msk.bf16.mxu0 %vm11595_vm0, %v11594_v1 }
 0x942   :  { %10874 = vmatprep.mubr.msk.bf16.mxu1 %vm11595_vm0, %v11594_v1 }
 0x9b3   :  { %v10343_v38 = vpop.f32.mrb[60].mxu0  ;;  %v10365_v31 = vpop.f32.mrb[44].mxu1 }
 0x9b4   :  { %v10344_v62 = vpop.f32.mrb[61].mxu0  ;;  %v10366_v40 = vpop.f32.mrb[45].mxu1 }
 0x9b5   :  { %v10345_v6 = vadd.f32 %v10344_v62, %v10343_v38  ;;  %v10367_v7 = vadd.f32 %v10366_v40, %v10365_v31  ;;  %v10346_v10 = vpop.f32.mrb[62].mxu0  ;;  %v10368_v45 = vpop.f32.mrb[46].mxu1 }
 0x9b6   :  { %v10347_v18 = vpop.f32.mrb[63].mxu0  ;;  %v10369_v50 = vpop.f32.mrb[47].mxu1 }
 0x9b7   :  { %v4086_v49 = vadd.f32 %v10345_v6, %v9862_v39  ;;  %v10348_v54 = vadd.f32 %v10347_v18, %v10346_v10  ;;  %v10370_v19 = vadd.f32 %v10369_v50, %v10368_v45 }
 0x9b9   :  { %v4127_v42 = vadd.f32 %v10367_v7, %v4086_v49  ;;  %v4089_v30 = vadd.f32 %v10348_v54, %v9862_v39 }
 0x9bb   :  { %v4130_v55 = vadd.f32 %v10370_v19, %v4089_v30 }
 0x9d3   :  { %v10387_v56 = vpop.f32.mrb[64].mxu0  ;;  %v10409_v41 = vpop.f32.mrb[48].mxu1 }
 0x9d4   :  { %v10388_v21 = vpop.f32.mrb[65].mxu0  ;;  %v10410_v59 = vpop.f32.mrb[49].mxu1 }
 0x9d5   :  { %v10389_v61 = vadd.f32 %v10388_v21, %v10387_v56  ;;  %v10411_v3 = vadd.f32 %v10410_v59, %v10409_v41  ;;  %v10390_v57 = vpop.f32.mrb[66].mxu0  ;;  %v10412_v51 = vpop.f32.mrb[50].mxu1 }
 0x9d6   :  { %v10391_v8 = vpop.f32.mrb[67].mxu0  ;;  %v10413_v0 = vpop.f32.mrb[51].mxu1 }
 0x9d7   :  { %v4168_v4 = vadd.f32 %v10389_v61, %v4127_v42  ;;  %v10392_v58 = vadd.f32 %v10391_v8, %v10390_v57  ;;  %v10414_v12 = vadd.f32 %v10413_v0, %v10412_v51 }
 0x9d9   :  { %v4209_v20 = vadd.f32 %v10411_v3, %v4168_v4  ;;  %v4171_v60 = vadd.f32 %v10392_v58, %v4130_v55 }
 0x9db   :  { %v4212_v13 = vadd.f32 %v10414_v12, %v4171_v60 }
 0x9f3   :  { %v10431_v15 = vpop.f32.mrb[68].mxu0 }
 0x9f4   :  { %v10453_v27 = vpop.f32.mrb[52].mxu1  ;;  %v10432_v29 = vpop.f32.mrb[69].mxu0 }
 0x9f5   :  { %v10433_v22 = vadd.f32 %v10432_v29, %v10431_v15  ;;  %v10454_v17 = vpop.f32.mrb[53].mxu1  ;;  %v10434_v23 = vpop.f32.mrb[70].mxu0 }
 0x9f6   :  { %v10455_v16 = vadd.f32 %v10454_v17, %v10453_v27  ;;  %v10456_v25 = vpop.f32.mrb[54].mxu1  ;;  %v10435_v36 = vpop.f32.mrb[71].mxu0 }
 0x9f7   :  { %v4250_v28 = vadd.f32 %v10433_v22, %v4209_v20  ;;  %v10436_v24 = vadd.f32 %v10435_v36, %v10434_v23  ;;  %v10457_v11 = vpop.f32.mrb[55].mxu1  ;;  %v11199_v20 = vld [vmem:[%s11693_s20 + $0x8] sm:$0xff]   ;;  %v9991_v23 = vld [vmem:[%s11683_s6] ss:$0 sm:$0xff]  ;;  %s13336_s6 = sld [smem:[#allocation14_spill]] }
 0x9f8   :  { %v10458_v2 = vadd.f32 %v10457_v11, %v10456_v25 }
 0x9f9   :  { %v4291_v37 = vadd.f32 %v10455_v16, %v4250_v28  ;;  %v4253_v5 = vadd.f32 %v10436_v24, %v4212_v13  ;;  %v9992_v24 = vld [vmem:[%s13329_s29] ss:$0 sm:$0xff] }
 0x9fb   :  { %v4294_v38 = vadd.f32 %v10458_v2, %v4253_v5 }
 0xa13   :  { %v10475_v31 = vpop.f32.mrb[72].mxu0 }
 0xa14   :  { %v10497_v39 = vpop.f32.mrb[56].mxu1  ;;  %v10476_v62 = vpop.f32.mrb[73].mxu0 }
 0xa15   :  { %v10477_v40 = vadd.f32 %v10476_v62, %v10475_v31  ;;  %v10498_v6 = vpop.f32.mrb[57].mxu1  ;;  %v10478_v7 = vpop.f32.mrb[74].mxu0 }
 0xa16   :  { %v10499_v10 = vadd.f32 %v10498_v6, %v10497_v39  ;;  %v10500_v45 = vpop.f32.mrb[58].mxu1  ;;  %v10479_v18 = vpop.f32.mrb[75].mxu0 }
 0xa17   :  { %v4332_v50 = vadd.f32 %v10477_v40, %v4291_v37  ;;  %v10480_v49 = vadd.f32 %v10479_v18, %v10478_v7  ;;  %v10501_v54 = vpop.f32.mrb[59].mxu1 }
 0xa18   :  { %v10502_v19 = vadd.f32 %v10501_v54, %v10500_v45 }
 0xa19   :  { %v4373_v42 = vadd.f32 %v10499_v10, %v4332_v50  ;;  %v4335_v30 = vadd.f32 %v10480_v49, %v4294_v38  ;;  %v9993_v38 = vld [vmem:[%s13330_s3] ss:$0 sm:$0xff] }
 0xa1b   :  { %v4376_v55 = vadd.f32 %v10502_v19, %v4335_v30  ;;  %v4379_v56 = vadd.f32 %v4373_v42, %v12231_v32 }
 0xa1d   :  { %v4381_v41 = vsel %vm481_vm1, %v4379_v56, 0.0  ;;  %v4380_v21 = vadd.f32 %v4376_v55, %v12233_v33  ;;  %v11198_v33 = vld [vmem:[%s11693_s20] sm:$0xff]   ;;  %s13337_s20 = sld [smem:[#allocation13_spill]] }
 0xa1e   :  { %4382 = vadd.xlane.f32.xlu1 %v4381_v41  ;;  %10865 = vmatpush3.bf16.msra.mxu0 %v11198_v33 }
 0xa1f   :  { %v4384_v59 = vsel %vm481_vm1, %v4380_v21, 0.0  ;;  %10866 = vmatprep.subr.bf16.mxu0 %v11594_v1 }
 0xa20   :  { %4385 = vadd.xlane.f32.xlu0 %v4384_v59 }
 0xa22   :  { %10867 = vmatpush3.bf16.msra.mxu0 %v11199_v20 }
 0xa23   :  { %10878 = vmatprep.subr.bf16.mxu0 %v11594_v1 }
 0xaab   :  { %v4383_v61 = vpop.xlane.xlu1 %4382 }
 0xaac   :  { %v4387_v3 = vmul.f32 0.03125, %v4383_v61 }
 0xaad   :  { %v4386_v57 = vpop.xlane.xlu0 %4385 }
 0xaae   :  { %v4389_v51 = vsub.f32 %v4379_v56, %v4387_v3  ;;  %v4388_v8 = vmul.f32 0.03125, %v4386_v57 }
 0xab0   :  { %v4390_v0 = vsub.f32 %v4380_v21, %v4388_v8  ;;  %v4391_v4 = vmul.f32 %v4389_v51, %v4389_v51 }
 0xab2   :  { %v4393_v58 = vsel %vm481_vm1, %v4391_v4, 0.0  ;;  %v4392_v32 = vmul.f32 %v4390_v0, %v4390_v0 }
 0xab3   :  { %4394 = vadd.xlane.f32.xlu1 %v4393_v58 }
 0xab4   :  { %v4396_v12 = vsel %vm481_vm1, %v4392_v32, 0.0 }
 0xab5   :  { %4397 = vadd.xlane.f32.xlu0 %v4396_v12 }
 0xb40   :  { %v4395_v60 = vpop.xlane.xlu1 %4394 }
 0xb41   :  { %v4399_v13 = vmul.f32 0.03125, %v4395_v60 }
 0xb42   :  { %v4398_v15 = vpop.xlane.xlu0 %4397 }
 0xb43   :  { %v4401_v27 = vadd.f32 1e-05, %v4399_v13  ;;  %v4400_v29 = vmul.f32 0.03125, %v4398_v15 }
 0xb45   :  { %11486 = vrsqrt.f32 %v4401_v27  ;;  %v4402_v22 = vadd.f32 1e-05, %v4400_v29 }
 0xb47   :  { %11488 = vrsqrt.f32 %v4402_v22 }
 0xb4f   :  { %v11487_v17 = vpop.eup %11486 }
 0xb50   :  { %v4405_v16 = vmul.f32 %v11487_v17, %v4389_v51 }
 0xb51   :  { %v11489_v25 = vpop.eup %11488 }
 0xb52   :  { %v4413_v36 = vmul.f32 %v9991_v23, %v4405_v16  ;;  %v4406_v28 = vmul.f32 %v11489_v25, %v4390_v0 }
 0xb54   :  { %v4414_v11 = vmul.f32 %v9991_v23, %v4406_v28  ;;  %v12506_v2 = vadd.f32 %v9992_v24, %v4413_v36 }
 0xb56   :  { %v12508_v37 = vadd.f32 %v9992_v24, %v4414_v11 }
 0xb58   :  { %v4728_v5 = vpack.c.bf16 %v12508_v37, %v12506_v2 }
 0xb5a   :  { %10869 = vmatmul.mubr.msk.bf16.vlgmr.msra.gmra.mrb[76].mxu0 %vm481_vm1, %v4728_v5 }
 0xb5b   :  { %10880 = vmatprep.mubr.msk.bf16.mxu0 %vm11595_vm0, %v11594_v1 }
 0xc2d   :  { %v4784_v31 = vpop.f32.mrb[76].mxu0 }
 0xc2e   :  { %v10870_v39 = vpop.f32.mrb[77].mxu0  ;;  %v4785_v40 = vadd.f32 %v9993_v38, %v4784_v31 }
 0xc2f   :  { %v4787_v62 = vpop.f32.mrb[78].mxu0 }
 0xc30   :  { %v4788_v6 = vadd.f32 %v9993_v38, %v4787_v62  ;;  %v10871_v7 = vpop.f32.mrb[79].mxu0 }
 0xc32   :  { %v12516_v10 = vpack.c.bf16 %v4788_v6, %v4785_v40 }
 0xc34   :  { %4795 = vrot.lane.b32.xlu0 %v12516_v10, %s11600_s17  ;;  %4793 = vrot.lane.b32.xlu1 %v12516_v10, %s11598_s5  ;;  %v4803_v30 = vshrl.u32 %v12516_v10, 16 }
 0xc38   :  { %4797 = vrot.lane.b32.xlu1 %v12516_v10, %s11597_s0 }
 0xc3c   :  { %5071 = vrot.lane.b32.xlu1 %v12516_v10, %s11599_s13 }
 0xca6   :  { %v12526_v45 = vpop.permute.xlu0 %4795  ;;  %v12528_v18 = vpop.permute.xlu1 %4793 }
 0xca7   :  { %5075 = vrot.lane.b32.xlu1 %v12526_v45, %s11599_s13  ;;  %5073 = vrot.lane.b32.xlu0 %v12528_v18, %s11599_s13  ;;  %v4811_v54 = vshrl.u32 %v12526_v45, 16  ;;  %v4804_v19 = vshrl.u32 %v12528_v18, 16  ;;  %v12548_v56 = vpack.i.b16 %v12528_v18, %v12516_v10 }
 0xca9   :  { %v12550_v41 = vpack.i.b16 %v4804_v19, %v4803_v30  ;;  %v4822_v61 = vrot.slane %v12548_v56, %v11860_v35  ;;  %v4815_v60 = vcombine.high %v12548_v56, %v11857_v34 }
 0xcaa   :  { %v12534_v50 = vpop.permute.xlu1 %4797 }
 0xcab   :  { %5077 = vrot.lane.b32.xlu0 %v12534_v50, %s11599_s13  ;;  %v4812_v49 = vshrl.u32 %v12534_v50, 16  ;;  %v12543_v42 = vpack.i.b16 %v12534_v50, %v12526_v45  ;;  %v4888_v57 = vrot.slane %v12550_v41, %v11860_v35  ;;  %v4881_v29 = vcombine.high %v12550_v41, %v11857_v34 }
 0xcad   :  { %v4813_v55 = vpack.i.b16 %v4812_v49, %v4811_v54  ;;  %v4837_v21 = vrot.slane %v12543_v42, %v11860_v35  ;;  %v4830_v31 = vcombine.high %v12543_v42, %v11857_v34 }
 0xcae   :  { %v5072_v3 = vpop.permute.xlu1 %5071 }
 0xcaf   :  { %v4903_v59 = vrot.slane %v4813_v55, %v11860_v35  ;;  %v4845_v8 = vcombine.low %v4822_v61, %v4837_v21  ;;  %v4846_v0 = vcombine.high %v4822_v61, %v4837_v21  ;;  %v5083_v12 = vshrl.u32 %v5072_v3, 16 }
 0xcb0   :  { %v4896_v13 = vcombine.high %v4813_v55, %v11857_v34 }
 0xcb1   :  { %v4911_v58 = vcombine.low %v4888_v57, %v4903_v59  ;;  %v4912_v32 = vcombine.high %v4888_v57, %v4903_v59  ;;  %v4853_v22 = vrot.slane %v4845_v8, %v11873_v47  ;;  %v4860_v17 = vrot.slane %v4846_v0, %v11873_v47 }
 0xcb2   :  { %v12575_v39 = vrot.slane %v4896_v13, %v11860_v35 }
 0xcb3   :  { %v4919_v16 = vrot.slane %v4911_v58, %v11873_v47  ;;  %v4926_v25 = vrot.slane %v4912_v32, %v11873_v47  ;;  %v4947_v6 = vcombine.low %v4853_v22, %v4860_v17 }
 0xcb5   :  { %v4972_v19 = vcombine.low %v4919_v16, %v4926_v25  ;;  %v9998_v21 = vcombine.high %v4919_v16, %v4926_v25 }
 0xd19   :  { %v5074_v51 = vpop.permute.xlu0 %5073  ;;  %v5076_v20 = vpop.permute.xlu1 %5075 }
 0xd1a   :  { %v5084_v4 = vshrl.u32 %v5074_v51, 16  ;;  %v5081_v33 = vpack.i.b16 %v5074_v51, %v5072_v3  ;;  %v5091_v36 = vshrl.u32 %v5076_v20, 16 }
 0xd1c   :  { %v5085_v15 = vpack.i.b16 %v5084_v4, %v5083_v12  ;;  %v5095_v24 = vcombine.high %v5081_v33, %v11857_v34  ;;  %v5102_v11 = vrot.slane %v5081_v33, %v11860_v35 }
 0xd1d   :  { %v5078_v27 = vpop.permute.xlu0 %5077 }
 0xd1e   :  { %v5089_v23 = vpack.i.b16 %v5078_v27, %v5076_v20  ;;  %v5092_v28 = vshrl.u32 %v5078_v27, 16  ;;  %v5161_v62 = vcombine.high %v5085_v15, %v11857_v34  ;;  %v5168_v30 = vrot.slane %v5085_v15, %v11860_v35 }
 0xd1f   :  { %v5109_v42 = vrot.slane %v5095_v24, %v11860_v35  ;;  %v9997_v15 = vcombine.high %v4853_v22, %v4860_v17  ;;  %v4979_v27 = vrot.slane %v4972_v19, %v11860_v35  ;;  %v4895_v22 = vrot.slane %v4881_v29, %v11860_v35 }
 0xd20   :  { %v5110_v5 = vcombine.high %v5089_v23, %v11857_v34  ;;  %v5117_v38 = vrot.slane %v5089_v23, %v11860_v35  ;;  %v5093_v40 = vpack.i.b16 %v5092_v28, %v5091_v36  ;;  %v5175_v3 = vrot.slane %v5161_v62, %v11860_v35 }
 0xd21   :  { %v4844_v17 = vrot.slane %v4830_v31, %v11860_v35  ;;  %v4927_v31 = vcombine.low %v4895_v22, %v12575_v39 }
 0xd22   :  { %v5124_v7 = vrot.slane %v5110_v5, %v11860_v35  ;;  %v5125_v49 = vcombine.low %v5102_v11, %v5117_v38  ;;  %v5126_v54 = vcombine.high %v5102_v11, %v5117_v38  ;;  %v5176_v55 = vcombine.high %v5093_v40, %v11857_v34 }
 0xd23   :  { %v5183_v41 = vrot.slane %v5093_v40, %v11860_v35  ;;  %v4987_v11 = vrot.slane %v9998_v21, %v11860_v35  ;;  %v4928_v21 = vcombine.high %v4895_v22, %v12575_v39 }
 0xd24   :  { %v5133_v59 = vrot.slane %v5125_v49, %v11873_v47  ;;  %v5140_v61 = vrot.slane %v5126_v54, %v11873_v47  ;;  %v5190_v57 = vrot.slane %v5176_v55, %v11860_v35  ;;  %v5141_v0 = vcombine.low %v5109_v42, %v5124_v7 }
 0xd25   :  { %v5191_v51 = vcombine.low %v5168_v30, %v5183_v41  ;;  %v5192_v8 = vcombine.high %v5168_v30, %v5183_v41  ;;  %v5142_v4 = vcombine.high %v5109_v42, %v5124_v7  ;;  %v4954_v49 = vrot.slane %v4947_v6, %v11860_v35 }
 0xd26   :  { %v5227_v58 = vcombine.low %v5133_v59, %v5140_v61  ;;  %v10001_v32 = vcombine.high %v5133_v59, %v5140_v61  ;;  %v5207_v20 = vcombine.low %v5175_v3, %v5190_v57  ;;  %v5208_v13 = vcombine.high %v5175_v3, %v5190_v57 }
 0xd27   :  { %v5199_v12 = vrot.slane %v5191_v51, %v11873_v47  ;;  %v5206_v33 = vrot.slane %v5192_v8, %v11873_v47  ;;  %v5149_v5 = vrot.slane %v5141_v0, %v11873_v47  ;;  %v5156_v38 = vrot.slane %v5142_v4, %v11873_v47 }
 0xd28   :  { %v5234_v23 = vrot.slane %v5227_v58, %v11860_v35  ;;  %v5242_v16 = vrot.slane %v10001_v32, %v11860_v35  ;;  %v5215_v25 = vrot.slane %v5207_v20, %v11873_v47  ;;  %v5222_v36 = vrot.slane %v5208_v13, %v11873_v47 }
 0xd29   :  { %v5252_v28 = vcombine.low %v5199_v12, %v5206_v33  ;;  %v10002_v24 = vcombine.high %v5199_v12, %v5206_v33  ;;  %v4962_v54 = vrot.slane %v9997_v15, %v11860_v35  ;;  %v4829_v55 = vrot.slane %v4815_v60, %v11860_v35 }
 0xd2a   :  { %v5243_v62 = vcombine.low %v5234_v23, %v5242_v16  ;;  %v5302_v19 = vcombine.low %v5215_v25, %v5222_v36  ;;  %v10004_v30 = vcombine.high %v5215_v25, %v5222_v36  ;;  %v5277_v42 = vcombine.low %v5149_v5, %v5156_v38 }
 0xd2b   :  { %v5259_v40 = vrot.slane %v5252_v28, %v11860_v35  ;;  %v5267_v7 = vrot.slane %v10002_v24, %v11860_v35  ;;  %v4988_v59 = vcombine.low %v4979_v27, %v4987_v11  ;;  %v4861_v61 = vcombine.low %v4829_v55, %v4844_v17 }
 0xd2c   :  { %v5250_v41 = vrot.slane %v5243_v62, %v11873_v47  ;;  %v10003_v6 = vcombine.high %v5149_v5, %v5156_v38  ;;  %v4862_v57 = vcombine.high %v4829_v55, %v4844_v17  ;;  %v4963_v51 = vcombine.low %v4954_v49, %v4962_v54 }
 0xd2d   :  { %v5268_v29 = vcombine.low %v5259_v40, %v5267_v7  ;;  %v5309_v8 = vrot.slane %v5302_v19, %v11860_v35  ;;  %v5317_v56 = vrot.slane %v10004_v30, %v11860_v35  ;;  %v4935_v32 = vrot.slane %v4927_v31, %v11873_v47 }
 0xd2e   :  { %v5330_v0 = vshrl.u32 %v5250_v41, 16  ;;  %v4942_v39 = vrot.slane %v4928_v21, %v11873_v47  ;;  %v5284_v12 = vrot.slane %v5277_v42, %v11860_v35  ;;  %v4995_v33 = vrot.slane %v4988_v59, %v11873_v47 }
 0xd2f   :  { %v5275_v3 = vrot.slane %v5268_v29, %v11873_v47  ;;  %v5292_v20 = vrot.slane %v10003_v6, %v11860_v35  ;;  %v5251_v27 = vcombine.high %v5250_v41, %v11596_v9  ;;  %v4869_v23 = vrot.slane %v4861_v61, %v11873_v47 }
 0xd30   :  { %v4876_v16 = vrot.slane %v4862_v57, %v11873_v47  ;;  %v4970_v36 = vrot.slane %v4963_v51, %v11873_v47  ;;  %v5318_v24 = vcombine.low %v5309_v8, %v5317_v56  ;;  %v5022_v11 = vcombine.low %v4935_v32, %v4942_v39 }
 0xd31   :  { %v5329_v60 = vpack.i.b16 %v5275_v3, %v5250_v41  ;;  %v5331_v4 = vshrl.u32 %v5275_v3, 16  ;;  %v5276_v58 = vcombine.high %v5275_v3, %v11596_v9  ;;  %v10000_v5 = vcombine.high %v4935_v32, %v4942_v39 }
 0xd32   :  { %v5051_v62 = vshrl.u32 %v4995_v33, 16  ;;  %v5336_v22 = vshrl.u32 %v5251_v27, 16  ;;  %v5293_v17 = vcombine.low %v5284_v12, %v5292_v20  ;;  %v4997_v40 = vcombine.low %v4869_v23, %v4876_v16 }
 0xd33   :  { %v5635_v13 = vsel %vm1372_vm2, %v5329_v60, 0  ;;  %v5332_v15 = vpack.i.b16 %v5331_v4, %v5330_v0  ;;  %v5337_v28 = vshrl.u32 %v5276_v58, 16  ;;  %v5335_v38 = vpack.i.b16 %v5276_v58, %v5251_v27 }
 0xd34   :  { %10873 = vmatpush3.bf16.xpose.msra.mxu1 %v5635_v13  ;;  %v9999_v7 = vcombine.high %v4869_v23, %v4876_v16  ;;  %v5049_v49 = vpack.i.b16 %v4995_v33, %v4970_v36  ;;  %v5050_v54 = vshrl.u32 %v4970_v36, 16  ;;  %v5325_v30 = vrot.slane %v5318_v24, %v11873_v47 }
 0xd35   :  { %v5681_v25 = vsel %vm1372_vm2, %v5332_v15, 0  ;;  %10884 = vmatprep.subr.bf16.mxu1 %v11594_v1  ;;  %v5338_v19 = vpack.i.b16 %v5337_v28, %v5336_v22  ;;  %v5029_v55 = vrot.slane %v5022_v11, %v11860_v35  ;;  %v5037_v41 = vrot.slane %v10000_v5, %v11860_v35 }
 0xd36   :  { %10879 = vmatpush3.bf16.xpose.msra.mxu0 %v5681_v25  ;;  %v5727_v29 = vsel %vm1372_vm2, %v5335_v38, 0  ;;  %v5052_v31 = vpack.i.b16 %v5051_v62, %v5050_v54  ;;  %v4996_v21 = vcombine.high %v4995_v33, %v11596_v9  ;;  %v5300_v42 = vrot.slane %v5293_v17, %v11873_v47 }
 0xd37   :  { %10890 = vmatprep.subr.bf16.mxu0 %v11594_v1  ;;  %v5004_v59 = vrot.slane %v4997_v40, %v11860_v35  ;;  %v5012_v61 = vrot.slane %v9999_v7, %v11860_v35  ;;  %v5773_v6 = vsel %vm1372_vm2, %v5338_v19, 0  ;;  %v4971_v3 = vcombine.high %v4970_v36, %v11596_v9 }
 0xd38   :  { %v5343_v57 = vshrl.u32 %v5325_v30, 16  ;;  %v5341_v51 = vpack.i.b16 %v5325_v30, %v5300_v42  ;;  %v5057_v8 = vshrl.u32 %v4996_v21, 16  ;;  %v5342_v56 = vshrl.u32 %v5300_v42, 16 }
 0xd39   :  { %v5038_v60 = vcombine.low %v5029_v55, %v5037_v41  ;;  %v5013_v0 = vcombine.low %v5004_v59, %v5012_v61  ;;  %v5055_v4 = vpack.i.b16 %v4996_v21, %v4971_v3  ;;  %v5056_v58 = vshrl.u32 %v4971_v3, 16 }
 0xd3a   :  { %v5344_v32 = vpack.i.b16 %v5343_v57, %v5342_v56  ;;  %v5326_v39 = vcombine.high %v5325_v30, %v11596_v9  ;;  %v5819_v12 = vsel %vm1372_vm2, %v5341_v51, 0  ;;  %v5301_v13 = vcombine.high %v5300_v42, %v11596_v9 }
 0xd3b   :  { %10875 = vmatmul.mubr.msk.bf16.vlgmr.msra.gmra.mrb[60].mxu1 %vm1372_vm2, %v5049_v49  ;;  %v5058_v33 = vpack.i.b16 %v5057_v8, %v5056_v58  ;;  %v5045_v20 = vrot.slane %v5038_v60, %v11873_v47  ;;  %v5020_v27 = vrot.slane %v5013_v0, %v11873_v47 }
 0xd3c   :  { %10885 = vmatpush3.bf16.xpose.msra.mxu1 %v5727_v29  ;;  %10886 = vmatprep.mubr.msk.bf16.mxu1 %vm11595_vm0, %v11594_v1  ;;  %v5865_v15 = vsel %vm1372_vm2, %v5344_v32, 0  ;;  %v5349_v23 = vshrl.u32 %v5326_v39, 16  ;;  %v5347_v16 = vpack.i.b16 %v5326_v39, %v5301_v13  ;;  %v5348_v36 = vshrl.u32 %v5301_v13, 16 }
 0xd3d   :  { %10881 = vmatmul.mubr.msk.bf16.vlgmr.msra.gmra.mrb[80].mxu0 %vm1372_vm2, %v5052_v31  ;;  %10896 = vmatprep.subr.bf16.mxu1 %v11594_v1  ;;  %v5063_v25 = vshrl.u32 %v5045_v20, 16  ;;  %v5061_v28 = vpack.i.b16 %v5045_v20, %v5020_v27  ;;  %v5062_v24 = vshrl.u32 %v5020_v27, 16  ;;  %v5046_v62 = vcombine.high %v5045_v20, %v11596_v9 }
 0xd3e   :  { %10891 = vmatpush3.bf16.xpose.msra.mxu0 %v5773_v6  ;;  %10892 = vmatprep.mubr.msk.bf16.mxu0 %vm11595_vm0, %v11594_v1  ;;  %v5350_v11 = vpack.i.b16 %v5349_v23, %v5348_v36  ;;  %v5911_v5 = vsel %vm1372_vm2, %v5347_v16, 0  ;;  %v5021_v17 = vcombine.high %v5020_v27, %v11596_v9 }
 0xd3f   :  { %10902 = vmatprep.subr.bf16.mxu0 %v11594_v1  ;;  %v5064_v38 = vpack.i.b16 %v5063_v25, %v5062_v24  ;;  %v5069_v40 = vshrl.u32 %v5046_v62, 16 }
 0xd40   :  { %v5957_v22 = vsel %vm1372_vm2, %v5350_v11, 0  ;;  %v5067_v7 = vpack.i.b16 %v5046_v62, %v5021_v17  ;;  %v5068_v49 = vshrl.u32 %v5021_v17, 16 }
 0xd42   :  { %v5070_v54 = vpack.i.b16 %v5069_v40, %v5068_v49 }
 0xd43   :  { %10887 = vmatmul.mubr.msk.bf16.vlgmr.msra.gmra.mrb[64].mxu1 %vm1372_vm2, %v5055_v4 }
 0xd44   :  { %10897 = vmatpush3.bf16.xpose.msra.mxu1 %v5819_v12  ;;  %10898 = vmatprep.mubr.msk.bf16.mxu1 %vm11595_vm0, %v11594_v1 }
 0xd45   :  { %10893 = vmatmul.mubr.msk.bf16.vlgmr.msra.gmra.mrb[84].mxu0 %vm1372_vm2, %v5058_v33  ;;  %10908 = vmatprep.subr.bf16.mxu1 %v11594_v1 }
 0xd46   :  { %10903 = vmatpush3.bf16.xpose.msra.mxu0 %v5865_v15  ;;  %10904 = vmatprep.mubr.msk.bf16.mxu0 %vm11595_vm0, %v11594_v1 }
 0xd47   :  { %10914 = vmatprep.subr.bf16.mxu0 %v11594_v1 }
 0xd4b   :  { %10899 = vmatmul.mubr.msk.bf16.vlgmr.msra.gmra.mrb[68].mxu1 %vm1372_vm2, %v5061_v28 }
 0xd4c   :  { %10909 = vmatpush3.bf16.xpose.msra.mxu1 %v5911_v5  ;;  %10910 = vmatprep.mubr.msk.bf16.mxu1 %vm11595_vm0, %v11594_v1 }
 0xd4d   :  { %10905 = vmatmul.mubr.msk.bf16.vlgmr.msra.gmra.mrb[88].mxu0 %vm1372_vm2, %v5064_v38  ;;  %10920 = vmatprep.subr.bf16.mxu1 %v11594_v1 }
 0xd4e   :  { %10915 = vmatpush3.bf16.xpose.msra.mxu0 %v5957_v22  ;;  %10916 = vmatprep.mubr.msk.bf16.mxu0 %vm11595_vm0, %v11594_v1 }
 0xd4f   :  { %10926 = vmatprep.subr.bf16.mxu0 %v11594_v1 }
 0xd53   :  { %10911 = vmatmul.mubr.msk.bf16.vlgmr.msra.gmra.mrb[72].mxu1 %vm1372_vm2, %v5067_v7 }
 0xd54   :  { %10922 = vmatprep.mubr.msk.bf16.mxu1 %vm11595_vm0, %v11594_v1 }
 0xd55   :  { %10917 = vmatmul.mubr.msk.bf16.vlgmr.msra.gmra.mrb[92].mxu0 %vm1372_vm2, %v5070_v54 }
 0xd56   :  { %10928 = vmatprep.mubr.msk.bf16.mxu0 %vm11595_vm0, %v11594_v1 }
 0xe0e   :  { %v5671_v19 = vpop.f32.mrb[60].mxu1 }
 0xe0f   :  { %v10876_v30 = vpop.f32.mrb[61].mxu1  ;;  %v5999_v55 = vsel %vm1372_vm2, %v5671_v19, -inf }
 0xe10   :  { %6000 = vmax.xlane.f32.xlu1 %v5999_v55  ;;  %v5674_v41 = vpop.f32.mrb[62].mxu1  ;;  %v5717_v29 = vpop.f32.mrb[80].mxu0 }
 0xe11   :  { %v10877_v31 = vpop.f32.mrb[63].mxu1  ;;  %v10882_v21 = vpop.f32.mrb[81].mxu0  ;;  %v6002_v42 = vsel %vm1372_vm2, %v5717_v29, -inf }
 0xe12   :  { %6003 = vmax.xlane.f32.xlu0 %v6002_v42  ;;  %v5720_v59 = vpop.f32.mrb[82].mxu0 }
 0xe13   :  { %v10883_v61 = vpop.f32.mrb[83].mxu0 }
 0xe16   :  { %v12679_v6 = vpop.f32.mrb[64].mxu1 }
 0xe17   :  { %v10888_v3 = vpop.f32.mrb[65].mxu1  ;;  %v6005_v57 = vsel %vm1372_vm2, %v12679_v6, -inf }
 0xe18   :  { %v5766_v51 = vpop.f32.mrb[66].mxu1  ;;  %6006 = vmax.xlane.f32.xlu0 %v6005_v57  ;;  %v5809_v8 = vpop.f32.mrb[84].mxu0 }
 0xe19   :  { %v10889_v56 = vpop.f32.mrb[67].mxu1  ;;  %v10894_v60 = vpop.f32.mrb[85].mxu0  ;;  %v6008_v0 = vsel %vm1372_vm2, %v5809_v8, -inf }
 0xe1a   :  { %6009 = vmax.xlane.f32.xlu1 %v6008_v0  ;;  %v5812_v4 = vpop.f32.mrb[86].mxu0 }
 0xe1b   :  { %v10895_v58 = vpop.f32.mrb[87].mxu0 }
 0xe1e   :  { %v5855_v32 = vpop.f32.mrb[68].mxu1 }
 0xe1f   :  { %v10900_v39 = vpop.f32.mrb[69].mxu1  ;;  %v6011_v12 = vsel %vm1372_vm2, %v5855_v32, -inf }
 0xe20   :  { %v5858_v33 = vpop.f32.mrb[70].mxu1  ;;  %6012 = vmax.xlane.f32.xlu0 %v6011_v12  ;;  %v5901_v20 = vpop.f32.mrb[88].mxu0 }
 0xe21   :  { %v10901_v13 = vpop.f32.mrb[71].mxu1  ;;  %v10906_v15 = vpop.f32.mrb[89].mxu0  ;;  %v6014_v27 = vsel %vm1372_vm2, %v5901_v20, -inf }
 0xe22   :  { %6015 = vmax.xlane.f32.xlu1 %v6014_v27  ;;  %v5904_v23 = vpop.f32.mrb[90].mxu0 }
 0xe23   :  { %v10907_v16 = vpop.f32.mrb[91].mxu0 }
 0xe26   :  { %v5947_v25 = vpop.f32.mrb[72].mxu1 }
 0xe27   :  { %v10912_v36 = vpop.f32.mrb[73].mxu1  ;;  %v6017_v28 = vsel %vm1372_vm2, %v5947_v25, -inf }
 0xe28   :  { %v5950_v24 = vpop.f32.mrb[74].mxu1  ;;  %6018 = vmax.xlane.f32.xlu0 %v6017_v28  ;;  %v5993_v11 = vpop.f32.mrb[92].mxu0 }
 0xe29   :  { %v10913_v5 = vpop.f32.mrb[75].mxu1  ;;  %v10918_v38 = vpop.f32.mrb[93].mxu0  ;;  %v6020_v62 = vsel %vm1372_vm2, %v5993_v11, -inf }
 0xe2a   :  { %6021 = vmax.xlane.f32.xlu1 %v6020_v62  ;;  %v5996_v22 = vpop.f32.mrb[94].mxu0 }
 0xe2b   :  { %v10919_v17 = vpop.f32.mrb[95].mxu0 }
 0xe3b   :  { %5353 = vrot.lane.b32.xlu1 %v12528_v18, %s11603_s21 }
 0xe3e   :  { %5351 = vrot.lane.b32.xlu0 %v12516_v10, %s11603_s21 }
 0xe9d   :  { %v6001_v40 = vpop.xlane.xlu1 %6000 }
 0xe9e   :  { %v6023_v7 = vsub.f32 %v5671_v19, %v6001_v40 }
 0xe9f   :  { %v6004_v49 = vpop.xlane.xlu0 %6003 }
 0xea0   :  { %v6031_v54 = vmul.f32 1.442695, %v6023_v7  ;;  %v6024_v30 = vsub.f32 %v5717_v29, %v6004_v49 }
 0xea2   :  { %11490 = vpow2.f32 %v6031_v54  ;;  %v6033_v55 = vmul.f32 1.442695, %v6024_v30 }
 0xea4   :  { %11492 = vpow2.f32 %v6033_v55 }
 0xea5   :  { %v6007_v10 = vpop.xlane.xlu0 %6006 }
 0xea6   :  { %v6025_v59 = vsub.f32 %v12679_v6, %v6007_v10 }
 0xea7   :  { %v6010_v19 = vpop.xlane.xlu1 %6009 }
 0xea8   :  { %v6026_v29 = vsub.f32 %v5809_v8, %v6010_v19  ;;  %v6035_v56 = vmul.f32 1.442695, %v6025_v59 }
 0xeaa   :  { %v6037_v3 = vmul.f32 1.442695, %v6026_v29 }
 0xeac   :  { %v12692_v41 = vpop.eup %11490  ;;  %11494 = vpow2.f32 %v6037_v3 }
 0xead   :  { %v6047_v31 = vsel %vm1372_vm2, %v12692_v41, 0.0  ;;  %v6013_v42 = vpop.xlane.xlu0 %6012  ;;  %11496 = vpow2.f32 %v6035_v56 }
 0xeae   :  { %v12696_v21 = vpop.eup %11492  ;;  %6048 = vadd.xlane.f32.xlu0 %v6047_v31  ;;  %v6027_v57 = vsub.f32 %v5855_v32, %v6013_v42 }
 0xeaf   :  { %v6050_v18 = vsel %vm1372_vm2, %v12696_v21, 0.0  ;;  %v6016_v61 = vpop.xlane.xlu1 %6015 }
 0xeb0   :  { %6051 = vadd.xlane.f32.xlu1 %v6050_v18  ;;  %v6028_v60 = vsub.f32 %v5901_v20, %v6016_v61  ;;  %v6039_v4 = vmul.f32 1.442695, %v6027_v57 }
 0xeb2   :  { %11498 = vpow2.f32 %v6039_v4 }
 0xeb5   :  { %v6019_v51 = vpop.xlane.xlu0 %6018 }
 0xeb6   :  { %v6029_v58 = vsub.f32 %v5947_v25, %v6019_v51  ;;  %v12705_v12 = vpop.eup %11494 }
 0xeb7   :  { %v6022_v0 = vpop.xlane.xlu1 %6021  ;;  %v12707_v6 = vpop.eup %11496  ;;  %v6056_v32 = vsel %vm1372_vm2, %v12705_v12, 0.0 }
 0xeb8   :  { %v6030_v39 = vsub.f32 %v5993_v11, %v6022_v0  ;;  %v6053_v20 = vsel %vm1372_vm2, %v12707_v6, 0.0 }
 0xeb9   :  { %v5352_v28 = vpop.permute.xlu0 %5351 }
 0xeba   :  { %v6045_v8 = vmul.f32 1.442695, %v6030_v39  ;;  %v5363_v17 = vshrl.u32 %v5352_v28, 16 }
 0xebb   :  { %v5354_v24 = vpop.permute.xlu1 %5353 }
 0xebc   :  { %v12711_v33 = vpop.eup %11498  ;;  %v5364_v38 = vshrl.u32 %v5354_v24, 16  ;;  %v12729_v22 = vpack.i.b16 %v5354_v24, %v5352_v28 }
 0xebd   :  { %v6059_v15 = vsel %vm1372_vm2, %v12711_v33, 0.0 }
 0xebe   :  { %v12733_v30 = vpack.i.b16 %v5364_v38, %v5363_v17  ;;  %v5382_v55 = vrot.slane %v12729_v22, %v11860_v35 }
 0xec0   :  { %v5448_v29 = vrot.slane %v12733_v30, %v11860_v35 }
 0xec1   :  { %5355 = vrot.lane.b32.xlu1 %v12526_v45, %s11603_s21  ;;  %v6041_v45 = vmul.f32 1.442695, %v6028_v60 }
 0xec3   :  { %11500 = vpow2.f32 %v6041_v45 }
 0xec4   :  { %5357 = vrot.lane.b32.xlu0 %v12534_v50, %s11603_s21  ;;  %v6043_v50 = vmul.f32 1.442695, %v6029_v58 }
 0xec6   :  { %11502 = vpow2.f32 %v6043_v50 }
 0xec7   :  { %11504 = vpow2.f32 %v6045_v8 }
 0xecd   :  { %v12715_v13 = vpop.eup %11500 }
 0xece   :  { %v6062_v23 = vsel %vm1372_vm2, %v12715_v13, 0.0 }
 0xed0   :  { %v12719_v27 = vpop.eup %11502 }
 0xed1   :  { %v12723_v16 = vpop.eup %11504  ;;  %v6065_v25 = vsel %vm1372_vm2, %v12719_v27, 0.0 }
 0xed2   :  { %v6068_v36 = vsel %vm1372_vm2, %v12723_v16, 0.0 }
 0xee3   :  { %6057 = vadd.xlane.f32.xlu0 %v6056_v32 }
 0xee5   :  { %6054 = vadd.xlane.f32.xlu1 %v6053_v20 }
 0xee7   :  { %6060 = vadd.xlane.f32.xlu0 %v6059_v15 }
 0xee9   :  { %6063 = vadd.xlane.f32.xlu1 %v6062_v23 }
 0xeeb   :  { %6066 = vadd.xlane.f32.xlu0 %v6065_v25 }
 0xeed   :  { %6069 = vadd.xlane.f32.xlu1 %v6068_v36 }
 0xf3b   :  { %v6049_v11 = vpop.xlane.xlu0 %6048 }
 0xf3c   :  { %11506 = vrcp.f32 %v6049_v11 }
 0xf3d   :  { %v6052_v5 = vpop.xlane.xlu1 %6051 }
 0xf3e   :  { %11508 = vrcp.f32 %v6052_v5 }
 0xf3f   :  { %v5358_v62 = vpop.permute.xlu0 %5357 }
 0xf40   :  { %v5372_v7 = vshrl.u32 %v5358_v62, 16 }
 0xf41   :  { %v5356_v40 = vpop.permute.xlu1 %5355 }
 0xf42   :  { %v12731_v49 = vpack.i.b16 %v5358_v62, %v5356_v40  ;;  %v5371_v54 = vshrl.u32 %v5356_v40, 16 }
 0xf44   :  { %v5373_v31 = vpack.i.b16 %v5372_v7, %v5371_v54  ;;  %v5397_v18 = vrot.slane %v12731_v49, %v11860_v35 }
 0xf46   :  { %v5405_v10 = vcombine.low %v5382_v55, %v5397_v18  ;;  %v5406_v19 = vcombine.high %v5382_v55, %v5397_v18  ;;  %v5463_v42 = vrot.slane %v5373_v31, %v11860_v35  ;;  %v11507_v15 = vpop.eup %11506 }
 0xf47   :  { %v6079_v24 = vmul.f32 %v11507_v15, %v12692_v41 }
 0xf48   :  { %v5413_v59 = vrot.slane %v5405_v10, %v11873_v47  ;;  %v5420_v61 = vrot.slane %v5406_v19, %v11873_v47  ;;  %v5471_v3 = vcombine.low %v5448_v29, %v5463_v42  ;;  %v5472_v57 = vcombine.high %v5448_v29, %v5463_v42  ;;  %v11509_v36 = vpop.eup %11508 }
 0xf49   :  { %v6080_v17 = vmul.f32 %v11509_v36, %v12696_v21  ;;  %v5456_v10 = vcombine.high %v5373_v31, %v11857_v34  ;;  %v6087_v29 = vpack.c.bf16 %v6079_v24, %v6079_v24  ;;  %v5441_v42 = vcombine.high %v12733_v30, %v11857_v34 }
 0xf4a   :  { %v5507_v51 = vcombine.low %v5413_v59, %v5420_v61  ;;  %v10005_v56 = vcombine.high %v5413_v59, %v5420_v61  ;;  %v5479_v60 = vrot.slane %v5471_v3, %v11873_v47  ;;  %v5486_v0 = vrot.slane %v5472_v57, %v11873_v47 }
 0xf4b   :  { %v5390_v21 = vcombine.high %v12731_v49, %v11857_v34  ;;  %v6088_v61 = vpack.c.bf16 %v6080_v17, %v6080_v17  ;;  %v5375_v31 = vcombine.high %v12729_v22, %v11857_v34  ;;  %v5470_v3 = vrot.slane %v5456_v10, %v11860_v35 }
 0xf4c   :  { %v5514_v4 = vrot.slane %v5507_v51, %v11860_v35  ;;  %v5522_v58 = vrot.slane %v10005_v56, %v11860_v35  ;;  %v5532_v45 = vcombine.low %v5479_v60, %v5486_v0  ;;  %v10006_v39 = vcombine.high %v5479_v60, %v5486_v0 }
 0xf4d   :  { %v5455_v30 = vrot.slane %v5441_v42, %v11860_v35  ;;  %v5404_v57 = vrot.slane %v5390_v21, %v11860_v35  ;;  %v5389_v34 = vrot.slane %v5375_v31, %v11860_v35 }
 0xf4e   :  { %v5523_v50 = vcombine.low %v5514_v4, %v5522_v58  ;;  %v5539_v8 = vrot.slane %v5532_v45, %v11860_v35  ;;  %v5547_v32 = vrot.slane %v10006_v39, %v11860_v35 }
 0xf4f   :  { %v5487_v22 = vcombine.low %v5455_v30, %v5470_v3  ;;  %v5488_v51 = vcombine.high %v5455_v30, %v5470_v3  ;;  %v5421_v56 = vcombine.low %v5389_v34, %v5404_v57  ;;  %v5422_v60 = vcombine.high %v5389_v34, %v5404_v57 }
 0xf50   :  { %v5530_v20 = vrot.slane %v5523_v50, %v11873_v47  ;;  %v5548_v23 = vcombine.low %v5539_v8, %v5547_v32 }
 0xf51   :  { %v5495_v0 = vrot.slane %v5487_v22, %v11873_v47  ;;  %v5502_v4 = vrot.slane %v5488_v51, %v11873_v47  ;;  %v5429_v58 = vrot.slane %v5421_v56, %v11873_v47  ;;  %v5436_v45 = vrot.slane %v5422_v60, %v11873_v47 }
 0xf52   :  { %v5531_v25 = vcombine.high %v5530_v20, %v11596_v9  ;;  %v5555_v28 = vrot.slane %v5548_v23, %v11873_v47  ;;  %v5610_v5 = vshrl.u32 %v5530_v20, 16 }
 0xf53   :  { %v5582_v39 = vcombine.low %v5495_v0, %v5502_v4  ;;  %v10008_v50 = vcombine.high %v5495_v0, %v5502_v4  ;;  %v5557_v8 = vcombine.low %v5429_v58, %v5436_v45  ;;  %v10007_v32 = vcombine.high %v5429_v58, %v5436_v45 }
 0xf54   :  { %v5609_v11 = vpack.i.b16 %v5555_v28, %v5530_v20  ;;  %v5611_v38 = vshrl.u32 %v5555_v28, 16  ;;  %v5556_v62 = vcombine.high %v5555_v28, %v11596_v9  ;;  %v5616_v40 = vshrl.u32 %v5531_v25, 16 }
 0xf55   :  { %v5589_v20 = vrot.slane %v5582_v39, %v11860_v35  ;;  %v5597_v15 = vrot.slane %v10008_v50, %v11860_v35  ;;  %v5564_v23 = vrot.slane %v5557_v8, %v11860_v35 }
 0xf56   :  { %v6099_v7 = vsel %vm1840_vm3, %v5609_v11, 0  ;;  %v5612_v54 = vpack.i.b16 %v5611_v38, %v5610_v5  ;;  %v5615_v55 = vpack.i.b16 %v5556_v62, %v5531_v25  ;;  %v5617_v18 = vshrl.u32 %v5556_v62, 16 }
 0xf57   :  { %10921 = vmatpush3.bf16.msra.mxu1 %v6099_v7  ;;  %v5572_v25 = vrot.slane %v10007_v32, %v11860_v35  ;;  %v5598_v28 = vcombine.low %v5589_v20, %v5597_v15 }
 0xf58   :  { %v6145_v19 = vsel %vm1840_vm3, %v5612_v54, 0  ;;  %10932 = vmatprep.subr.bf16.mxu1 %v11594_v1  ;;  %v5618_v41 = vpack.i.b16 %v5617_v18, %v5616_v40  ;;  %v6191_v59 = vsel %vm1840_vm3, %v5615_v55, 0 }
 0xf59   :  { %10927 = vmatpush3.bf16.msra.mxu0 %v6145_v19  ;;  %v5573_v11 = vcombine.low %v5564_v23, %v5572_v25  ;;  %v5605_v38 = vrot.slane %v5598_v28, %v11873_v47 }
 0xf5a   :  { %10923 = vmatmul.mubr.msk.bf16.vlgmr.msra.gmra.mrb[76].mxu1 %vm1372_vm2, %v6087_v29  ;;  %10938 = vmatprep.subr.bf16.mxu0 %v11594_v1  ;;  %v6237_v49 = vsel %vm1840_vm3, %v5618_v41, 0 }
 0xf5b   :  { %10933 = vmatpush3.bf16.msra.mxu1 %v6191_v59  ;;  %10934 = vmatprep.mubr.msk.bf16.mxu1 %vm11595_vm0, %v11594_v1  ;;  %v5580_v17 = vrot.slane %v5573_v11, %v11873_v47  ;;  %v5623_v40 = vshrl.u32 %v5605_v38, 16  ;;  %v5606_v29 = vcombine.high %v5605_v38, %v11596_v9 }
 0xf5c   :  { %10929 = vmatmul.mubr.msk.bf16.vlgmr.msra.gmra.mrb[96].mxu0 %vm1372_vm2, %v6088_v61  ;;  %10944 = vmatprep.subr.bf16.mxu1 %v11594_v1 }
 0xf5d   :  { %10939 = vmatpush3.bf16.msra.mxu0 %v6237_v49  ;;  %10940 = vmatprep.mubr.msk.bf16.mxu0 %vm11595_vm0, %v11594_v1  ;;  %v5622_v54 = vshrl.u32 %v5580_v17, 16  ;;  %v5621_v59 = vpack.i.b16 %v5605_v38, %v5580_v17  ;;  %v5581_v61 = vcombine.high %v5580_v17, %v11596_v9 }
 0xf5e   :  { %10950 = vmatprep.subr.bf16.mxu0 %v11594_v1 }
 0xf5f   :  { %v5624_v19 = vpack.i.b16 %v5623_v40, %v5622_v54  ;;  %v5628_v34 = vshrl.u32 %v5581_v61, 16  ;;  %v5627_v60 = vpack.i.b16 %v5606_v29, %v5581_v61 }
 0xf61   :  { %v6329_v3 = vsel %vm1840_vm3, %v5624_v19, 0 }
 0xf70   :  { %v6058_v36 = vpop.xlane.xlu0 %6057 }
 0xf71   :  { %11510 = vrcp.f32 %v6058_v36 }
 0xf72   :  { %v6055_v24 = vpop.xlane.xlu1 %6054 }
 0xf73   :  { %11512 = vrcp.f32 %v6055_v24 }
 0xf74   :  { %v6061_v5 = vpop.xlane.xlu0 %6060 }
 0xf75   :  { %11514 = vrcp.f32 %v6061_v5 }
 0xf76   :  { %v6064_v62 = vpop.xlane.xlu1 %6063 }
 0xf77   :  { %11516 = vrcp.f32 %v6064_v62 }
 0xf78   :  { %v6067_v10 = vpop.xlane.xlu0 %6066 }
 0xf7a   :  { %v6070_v7 = vpop.xlane.xlu1 %6069 }
 0xf7b   :  { %v11511_v55 = vpop.eup %11510  ;;  %11518 = vrcp.f32 %v6070_v7 }
 0xf7c   :  { %v6082_v18 = vmul.f32 %v11511_v55, %v12705_v12  ;;  %11520 = vrcp.f32 %v6067_v10  ;;  %v5629_v12 = vshrl.u32 %v5606_v29, 16 }
 0xf7d   :  { %v11513_v41 = vpop.eup %11512 }
 0xf7e   :  { %v6081_v42 = vmul.f32 %v11513_v41, %v12707_v6  ;;  %v6090_v21 = vpack.c.bf16 %v6082_v18, %v6082_v18  ;;  %v6283_v6 = vsel %vm1840_vm3, %v5621_v59, 0  ;;  %v5630_v51 = vpack.i.b16 %v5629_v12, %v5628_v34 }
 0xf7f   :  { %v11515_v31 = vpop.eup %11514 }
 0xf80   :  { %10941 = vmatmul.mubr.msk.bf16.vlgmr.msra.gmra.mrb[100].mxu0 %vm1372_vm2, %v6090_v21  ;;  %v6089_v49 = vpack.c.bf16 %v6081_v42, %v6081_v42  ;;  %v6083_v22 = vmul.f32 %v11515_v31, %v12711_v33  ;;  %v6375_v33 = vsel %vm1840_vm3, %v5627_v60, 0 }
 0xf81   :  { %v11517_v30 = vpop.eup %11516  ;;  %10951 = vmatpush3.bf16.msra.mxu0 %v6329_v3  ;;  %10952 = vmatprep.mubr.msk.bf16.mxu0 %vm11595_vm0, %v11594_v1 }
 0xf82   :  { %v6084_v57 = vmul.f32 %v11517_v30, %v12715_v13  ;;  %10935 = vmatmul.mubr.msk.bf16.vlgmr.msra.gmra.mrb[80].mxu1 %vm1372_vm2, %v6089_v49  ;;  %10962 = vmatprep.subr.bf16.mxu0 %v11594_v1  ;;  %v6421_v13 = vsel %vm1840_vm3, %v5630_v51, 0  ;;  %v6091_v4 = vpack.c.bf16 %v6083_v22, %v6083_v22 }
 0xf83   :  { %10945 = vmatpush3.bf16.msra.mxu1 %v6283_v6  ;;  %10946 = vmatprep.mubr.msk.bf16.mxu1 %vm11595_vm0, %v11594_v1 }
 0xf84   :  { %10956 = vmatprep.subr.bf16.mxu1 %v11594_v1  ;;  %v6092_v56 = vpack.c.bf16 %v6084_v57, %v6084_v57 }
 0xf85   :  { %v11519_v0 = vpop.eup %11518 }
 0xf86   :  { %v11521_v58 = vpop.eup %11520  ;;  %v6086_v45 = vmul.f32 %v11519_v0, %v12723_v16  ;;  %v11200_v16 = vld [vmem:[%s13331_s8] sm:$0xff]  }
 0xf87   :  { %v6085_v39 = vmul.f32 %v11521_v58, %v12719_v27 }
 0xf88   :  { %10953 = vmatmul.mubr.msk.bf16.vlgmr.msra.gmra.mrb[104].mxu0 %vm1372_vm2, %v6092_v56  ;;  %v6094_v50 = vpack.c.bf16 %v6086_v45, %v6086_v45 }
 0xf89   :  { %10963 = vmatpush3.bf16.msra.mxu0 %v6421_v13  ;;  %10964 = vmatprep.mubr.msk.bf16.mxu0 %vm11595_vm0, %v11594_v1  ;;  %v6093_v8 = vpack.c.bf16 %v6085_v39, %v6085_v39 }
 0xf8a   :  { %10947 = vmatmul.mubr.msk.bf16.vlgmr.msra.gmra.mrb[84].mxu1 %vm1372_vm2, %v6091_v4 }
 0xf8b   :  { %10957 = vmatpush3.bf16.msra.mxu1 %v6375_v33  ;;  %10958 = vmatprep.mubr.msk.bf16.mxu1 %vm11595_vm0, %v11594_v1 }
 0xf8c   :  { %10968 = vmatprep.subr.bf16.mxu1 %v11594_v1 }
 0xf90   :  { %10965 = vmatmul.mubr.msk.bf16.vlgmr.msra.gmra.mrb[108].mxu0 %vm1372_vm2, %v6094_v50 }
 0xf91   :  { %7171 = vmatprep.mubr.bf16.mxu0 %v11596_v9 }
 0xf92   :  { %10959 = vmatmul.mubr.msk.bf16.vlgmr.msra.gmra.mrb[88].mxu1 %vm1372_vm2, %v6093_v8 }
 0xf93   :  { %10972 = vmatprep.mubr.msk.bf16.mxu1 %vm11595_vm0, %v11594_v1  ;;  %10969 = vmatpush3.bf16.msra.mxu1 %v11200_v16 }
 0xf94   :  { %10970 = vmatprep.subr.bf16.mxu1 %v11594_v1 }
0x102d   :  { %v6135_v32 = vpop.f32.mrb[76].mxu1 }
0x102e   :  { %v10924_v20 = vpop.f32.mrb[77].mxu1  ;;  %v6463_v5 = vpack.c.bf16 %v6135_v32, %v6135_v32 }
0x102f   :  { %v6138_v27 = vpop.f32.mrb[78].mxu1  ;;  %v6181_v15 = vpop.f32.mrb[96].mxu0 }
0x1030   :  { %v10925_v23 = vpop.f32.mrb[79].mxu1  ;;  %v10930_v25 = vpop.f32.mrb[97].mxu0  ;;  %v6497_v24 = vpack.c.bf16 %v6181_v15, %v6181_v15  ;;  %v6470_v19 = vrot.slane %v6463_v5, %v11860_v35 }
0x1031   :  { %v6184_v36 = vpop.f32.mrb[98].mxu0 }
0x1032   :  { %v10931_v28 = vpop.f32.mrb[99].mxu0  ;;  %v6504_v7 = vrot.slane %v6497_v24, %v11860_v35 }
0x1053   :  { %v6273_v11 = vpop.f32.mrb[100].mxu0 }
0x1054   :  { %v6505_v38 = vpack.c.bf16 %v6273_v11, %v6273_v11  ;;  %v10942_v62 = vpop.f32.mrb[101].mxu0 }
0x1055   :  { %v6227_v17 = vpop.f32.mrb[80].mxu1  ;;  %v6276_v40 = vpop.f32.mrb[102].mxu0 }
0x1056   :  { %v6512_v54 = vrot.slane %v6505_v38, %v11860_v35  ;;  %v6471_v1 = vpack.c.bf16 %v6227_v17, %v6227_v17  ;;  %v10936_v55 = vpop.f32.mrb[81].mxu1  ;;  %v10943_v18 = vpop.f32.mrb[103].mxu0 }
0x1057   :  { %v6230_v10 = vpop.f32.mrb[82].mxu1 }
0x1058   :  { %v6513_v29 = vcombine.low %v6504_v7, %v6512_v54  ;;  %v6514_v41 = vcombine.high %v6504_v7, %v6512_v54  ;;  %v6478_v42 = vrot.slane %v6471_v1, %v11860_v35  ;;  %v10937_v21 = vpop.f32.mrb[83].mxu1 }
0x105a   :  { %v6521_v59 = vrot.slane %v6513_v29, %v11873_v47  ;;  %v6528_v61 = vrot.slane %v6514_v41, %v11873_v47  ;;  %v6479_v31 = vcombine.low %v6470_v19, %v6478_v42  ;;  %v6480_v3 = vcombine.high %v6470_v19, %v6478_v42 }
0x105b   :  { %v6365_v49 = vpop.f32.mrb[104].mxu0 }
0x105c   :  { %v6529_v12 = vcombine.high %v6521_v59, %v11596_v9  ;;  %v10954_v30 = vpop.f32.mrb[105].mxu0  ;;  %v6487_v57 = vrot.slane %v6479_v31, %v11873_v47  ;;  %v6494_v6 = vrot.slane %v6480_v3, %v11873_v47  ;;  %v6530_v51 = vcombine.high %v6528_v61, %v11596_v9 }
0x105d   :  { %v6319_v34 = vpop.f32.mrb[84].mxu1  ;;  %v6368_v22 = vpop.f32.mrb[106].mxu0  ;;  %v6604_v56 = vshrl.u32 %v6521_v59, 16  ;;  %v6620_v60 = vshrl.u32 %v6528_v61, 16  ;;  %v6565_v32 = vpack.c.bf16 %v6365_v49, %v6365_v49 }
0x105e   :  { %v10948_v0 = vpop.f32.mrb[85].mxu1  ;;  %v10955_v13 = vpop.f32.mrb[107].mxu0  ;;  %v6495_v4 = vcombine.high %v6487_v57, %v11596_v9  ;;  %v6496_v58 = vcombine.high %v6494_v6, %v11596_v9  ;;  %v6601_v45 = vpack.i.b16 %v6521_v59, %v6487_v57  ;;  %v6603_v33 = vshrl.u32 %v6487_v57, 16 }
0x105f   :  { %v6322_v39 = vpop.f32.mrb[86].mxu1  ;;  %v6612_v50 = vshrl.u32 %v6529_v12, 16  ;;  %v6617_v8 = vpack.i.b16 %v6528_v61, %v6494_v6  ;;  %v6619_v16 = vshrl.u32 %v6494_v6, 16  ;;  %v6628_v36 = vshrl.u32 %v6530_v51, 16 }
0x1060   :  { %v10949_v20 = vpop.f32.mrb[87].mxu1  ;;  %v6605_v27 = vpack.i.b16 %v6604_v56, %v6603_v33  ;;  %v6609_v15 = vpack.i.b16 %v6529_v12, %v6495_v4  ;;  %v6611_v23 = vshrl.u32 %v6495_v4, 16  ;;  %v6625_v25 = vpack.i.b16 %v6530_v51, %v6496_v58 }
0x1061   :  { %v6621_v28 = vpack.i.b16 %v6620_v60, %v6619_v16  ;;  %v6627_v24 = vshrl.u32 %v6496_v58, 16  ;;  %v6663_v11 = vcombine.low %v6601_v45, %v6617_v8  ;;  %v6531_v38 = vpack.c.bf16 %v6319_v34, %v6319_v34 }
0x1062   :  { %v6613_v5 = vpack.i.b16 %v6612_v50, %v6611_v23  ;;  %v6671_v17 = vcombine.low %v6609_v15, %v6625_v25  ;;  %v6572_v29 = vrot.slane %v6565_v32, %v11860_v35 }
0x1063   :  { %v6457_v62 = vpop.f32.mrb[108].mxu0  ;;  %v6629_v40 = vpack.i.b16 %v6628_v36, %v6627_v24  ;;  %v6713_v1 = vcombine.low %v6605_v27, %v6621_v28  ;;  %v6670_v10 = vrot.slane %v6663_v11, %v11860_v35  ;;  %v6538_v31 = vrot.slane %v6531_v38, %v11860_v35 }
0x1064   :  { %v6573_v7 = vpack.c.bf16 %v6457_v62, %v6457_v62  ;;  %v10966_v54 = vpop.f32.mrb[109].mxu0  ;;  %v6678_v19 = vrot.slane %v6671_v17, %v11860_v35 }
0x1065   :  { %v6411_v55 = vpop.f32.mrb[88].mxu1  ;;  %v6460_v18 = vpop.f32.mrb[110].mxu0  ;;  %v6721_v61 = vcombine.low %v6613_v5, %v6629_v40  ;;  %v6720_v22 = vrot.slane %v6713_v1, %v11860_v35 }
0x1066   :  { %v6580_v41 = vrot.slane %v6573_v7, %v11860_v35  ;;  %v6539_v42 = vpack.c.bf16 %v6411_v55, %v6411_v55  ;;  %v10960_v21 = vpop.f32.mrb[89].mxu1  ;;  %v10967_v59 = vpop.f32.mrb[111].mxu0  ;;  %v6695_v49 = vcombine.low %v6670_v10, %v6678_v19  ;;  %v11201_v19 = vld [vmem:[%s13331_s8 + $0x8] sm:$0xff]  }
0x1067   :  { %v6414_v3 = vpop.f32.mrb[90].mxu1  ;;  %v6728_v34 = vrot.slane %v6721_v61, %v11860_v35  ;;  %10971 = vmatpush3.bf16.msra.mxu1 %v11201_v19 }
0x1068   :  { %v6581_v12 = vcombine.low %v6572_v29, %v6580_v41  ;;  %v6582_v30 = vcombine.high %v6572_v29, %v6580_v41  ;;  %v6546_v57 = vrot.slane %v6539_v42, %v11860_v35  ;;  %v10961_v6 = vpop.f32.mrb[91].mxu1  ;;  %v6702_v42 = vrot.slane %v6695_v49, %v11873_v47 }
0x1069   :  { %v6745_v13 = vcombine.low %v6720_v22, %v6728_v34 }
0x106a   :  { %v6589_v51 = vrot.slane %v6581_v12, %v11873_v47  ;;  %v6596_v56 = vrot.slane %v6582_v30, %v11873_v47  ;;  %v6547_v60 = vcombine.low %v6538_v31, %v6546_v57  ;;  %v6548_v0 = vcombine.high %v6538_v31, %v6546_v57 }
0x106b   :  { %v6752_v3 = vrot.slane %v6745_v13, %v11873_v47 }
0x106c   :  { %v6597_v4 = vcombine.high %v6589_v51, %v11596_v9  ;;  %v6555_v58 = vrot.slane %v6547_v60, %v11873_v47  ;;  %v6562_v45 = vrot.slane %v6548_v0, %v11873_v47  ;;  %v6598_v33 = vcombine.high %v6596_v56, %v11596_v9 }
0x106d   :  { %v6636_v39 = vshrl.u32 %v6589_v51, 16  ;;  %v6652_v27 = vshrl.u32 %v6596_v56, 16 }
0x106e   :  { %v6563_v50 = vcombine.high %v6555_v58, %v11596_v9  ;;  %v6564_v8 = vcombine.high %v6562_v45, %v11596_v9  ;;  %v6633_v16 = vpack.i.b16 %v6589_v51, %v6555_v58  ;;  %v6635_v32 = vshrl.u32 %v6555_v58, 16 }
0x106f   :  { %v6644_v20 = vshrl.u32 %v6597_v4, 16  ;;  %v6649_v15 = vpack.i.b16 %v6596_v56, %v6562_v45  ;;  %v6651_v23 = vshrl.u32 %v6562_v45, 16  ;;  %v6660_v11 = vshrl.u32 %v6598_v33, 16 }
0x1070   :  { %v6637_v25 = vpack.i.b16 %v6636_v39, %v6635_v32  ;;  %v6641_v36 = vpack.i.b16 %v6597_v4, %v6563_v50  ;;  %v6643_v28 = vshrl.u32 %v6563_v50, 16  ;;  %v6657_v24 = vpack.i.b16 %v6598_v33, %v6564_v8  ;;  %v10025_v33 = vld [vmem:[%s13332_s14] ss:$0 sm:$0xff] }
0x1071   :  { %v6653_v5 = vpack.i.b16 %v6652_v27, %v6651_v23  ;;  %v6659_v38 = vshrl.u32 %v6564_v8, 16  ;;  %v6679_v62 = vcombine.low %v6633_v16, %v6649_v15 }
0x1072   :  { %v6645_v17 = vpack.i.b16 %v6644_v20, %v6643_v28  ;;  %v6687_v40 = vcombine.low %v6641_v36, %v6657_v24 }
0x1073   :  { %v6661_v7 = vpack.i.b16 %v6660_v11, %v6659_v38  ;;  %v6729_v54 = vcombine.low %v6637_v25, %v6653_v5  ;;  %v6686_v1 = vrot.slane %v6679_v62, %v11860_v35 }
0x1074   :  { %v6694_v55 = vrot.slane %v6687_v40, %v11860_v35  ;;  %v4435_v40 = vld [vmem:[%s13333_s19] sm:$0xff] }
0x1075   :  { %v6737_v18 = vcombine.low %v6645_v17, %v6661_v7  ;;  %v6736_v29 = vrot.slane %v6729_v54, %v11860_v35  ;;  %v4443_v7 = vld [vmem:[%s13333_s19 + $0x40] sm:$0xff]  ;;  %v4436_v54 = vld [vmem:[%s13333_s19 + $0x8] sm:$0xff] }
0x1076   :  { %v6703_v10 = vcombine.low %v6686_v1, %v6694_v55  ;;  %v10032_v1 = vcombine.high %v4435_v40, %v4443_v7  ;;  %v4444_v55 = vld [vmem:[%s13333_s19 + $0x48] sm:$0xff] }
0x1077   :  { %v6744_v41 = vrot.slane %v6737_v18, %v11860_v35  ;;  %v10031_v18 = vcombine.low %v4435_v40, %v4443_v7  ;;  %v10034_v19 = vcombine.high %v4436_v54, %v4444_v55  ;;  %v4455_v7 = vld [vmem:[%s13333_s19 + $0xa0] sm:$0xff] }
0x1078   :  { %v6710_v21 = vrot.slane %v6703_v10, %v11873_v47  ;;  %v10033_v10 = vcombine.low %v4436_v54, %v4444_v55  ;;  %7139 = vmatprep.subr.bf16.mxu0 %v10032_v1  ;;  %v4463_v54 = vld [vmem:[%s13333_s19 + $0xe0] sm:$0xff]  ;;  %v4456_v1 = vld [vmem:[%s13333_s19 + $0xa8] sm:$0xff] }
0x1079   :  { %v6753_v59 = vcombine.low %v6736_v29, %v6744_v41  ;;  %7182 = vmatprep.subr.bf16.mxu1 %v10034_v19  ;;  %7140 = vmatpush1.bf16.msra.mxu0 %v10031_v18  ;;  %v4451_v29 = vld [vmem:[%s13333_s19 + $0x80] sm:$0xff]  ;;  %v4464_v55 = vld [vmem:[%s13333_s19 + $0xe8] sm:$0xff]  ;;  %v10056_v19 = vcombine.high %v4455_v7, %v4463_v54 }
0x107a   :  { %v6712_v61 = vcombine.high %v6702_v42, %v6710_v21  ;;  %v6711_v31 = vcombine.low %v6702_v42, %v6710_v21  ;;  %v4459_v41 = vld [vmem:[%s13333_s19 + $0xc0] sm:$0xff]  ;;  %v4452_v42 = vld [vmem:[%s13333_s19 + $0x88] sm:$0xff] }
0x107b   :  { %v6760_v12 = vrot.slane %v6753_v59, %v11873_v47  ;;  %v10048_v21 = vcombine.high %v4451_v29, %v4459_v41  ;;  %v4460_v59 = vld [vmem:[%s13333_s19 + $0xc8] sm:$0xff] }
0x107c   :  { %v6766_v6 = vshrl.u32 %v6711_v31, 16  ;;  %v6772_v34 = vshrl.u32 %v6712_v61, 16 }
0x107d   :  { %v6762_v30 = vcombine.high %v6752_v3, %v6760_v12  ;;  %v6761_v57 = vcombine.low %v6752_v3, %v6760_v12  ;;  %v10050_v3 = vcombine.high %v4452_v42, %v4460_v59  ;;  %7141 = vmatprep.subr.bf16.mxu0 %v10048_v21  ;;  %v4437_v12 = vld [vmem:[%s13333_s19 + $0x10] sm:$0xff]  ;;  %v4442_v21 = vld [vmem:[%s13333_s19 + $0x38] sm:$0xff] }
0x107f   :  { %v6771_v22 = vpack.i.b16 %v6762_v30, %v6712_v61  ;;  %v6767_v51 = vshrl.u32 %v6761_v57, 16  ;;  %v6773_v35 = vshrl.u32 %v6762_v30, 16  ;;  %v6765_v56 = vpack.i.b16 %v6761_v57, %v6711_v31  ;;  %v4445_v30 = vld [vmem:[%s13333_s19 + $0x50] sm:$0xff]  ;;  %v4438_v57 = vld [vmem:[%s13333_s19 + $0x18] sm:$0xff] }
0x1080   :  { %v10047_v61 = vcombine.low %v4451_v29, %v4459_v41  ;;  %v10049_v31 = vcombine.low %v4452_v42, %v4460_v59  ;;  %v10058_v29 = vcombine.high %v4456_v1, %v4464_v55  ;;  %v4441_v41 = vld [vmem:[%s13333_s19 + $0x30] sm:$0xff]  ;;  %v4450_v59 = vld [vmem:[%s13333_s19 + $0x78] sm:$0xff] }
0x1081   :  { %6777 = vrot.lane.b32.xlu1 %v6771_v22, %s11604_s25  ;;  %v6768_v49 = vpack.i.b16 %v6767_v51, %v6766_v6  ;;  %v6774_v60 = vpack.i.b16 %v6773_v35, %v6772_v34  ;;  %v10035_v6 = vcombine.low %v4437_v12, %v4445_v30  ;;  %v10036_v34 = vcombine.high %v4437_v12, %v4445_v30  ;;  %v4446_v22 = vld [vmem:[%s13333_s19 + $0x58] sm:$0xff]  ;;  %v4449_v42 = vld [vmem:[%s13333_s19 + $0x70] sm:$0xff] }
0x1082   :  { %7142 = vmatpush1.bf16.msra.mxu0 %v10047_v61  ;;  %v10037_v51 = vcombine.low %v4438_v57, %v4446_v22  ;;  %v10038_v35 = vcombine.high %v4438_v57, %v4446_v22  ;;  %v10055_v61 = vcombine.low %v4455_v7, %v4463_v54  ;;  %v10046_v12 = vcombine.high %v4442_v21, %v4450_v59  ;;  %v4457_v30 = vld [vmem:[%s13333_s19 + $0xb0] sm:$0xff] }
0x1083   :  { %6775 = vrot.lane.b32.xlu0 %v6768_v49, %s11605_s28  ;;  %7225 = vmatprep.subr.bf16.mxu0 %v10036_v34  ;;  %v4465_v57 = vld [vmem:[%s13333_s19 + $0xf0] sm:$0xff]  ;;  %v4466_v34 = vld [vmem:[%s13333_s19 + $0xf8] sm:$0xff]  ;;  %v10043_v22 = vcombine.low %v4441_v41, %v4449_v42 }
0x1084   :  { %v11228_v7 = vld [vmem:[%s13336_s6 + $0x30] sm:$0xff]  }
0x1085   :  { %6779 = vrot.lane.b32.xlu1 %v6774_v60, %s11606_s1  ;;  %v11229_v54 = vld [vmem:[%s13336_s6 + $0xb0] sm:$0xff]  }
0x10f3   :  { %v6778_v0 = vpop.permute.xlu1 %6777 }
0x10f5   :  { %v6776_v13 = vpop.permute.xlu0 %6775 }
0x10f6   :  { %v6783_v47 = vsel %vm1372_vm2, %v6765_v56, %v6776_v13 }
0x10f7   :  { %v6780_v4 = vpop.permute.xlu1 %6779  ;;  %v6785_v58 = vsel %vm2527_vm4, %v6783_v47, %v6778_v0 }
0x10f8   :  { %v6787_v45 = vsel %vm2530_vm5, %v6785_v58, %v6780_v4 }
0x10f9   :  { %10973 = vmatmul.mubr.msk.bf16.vlgmr.msra.gmra.mrb[92].mxu1 %vm481_vm1, %v6787_v45  ;;  %v10029_v45 = vld [vmem:[%s13334_s24] ss:$0 sm:$0xff] }
0x10fa   :  { %7214 = vmatprep.mubr.bf16.mxu1 %v11596_v9  ;;  %7183 = vmatpush1.bf16.msra.mxu1 %v10033_v10 }
0x10fb   :  { %7184 = vmatprep.subr.bf16.mxu1 %v10050_v3  ;;  %v10044_v3 = vcombine.high %v4441_v41, %v4449_v42  ;;  %v4467_v41 = vld [vmem:[%s13337_s20] sm:$0xff] }
0x10fc   :  { %v6899_v42 = vrot.slane %v4467_v41, %v12312_v43 }
0x10fe   :  { %7185 = vmatpush1.bf16.msra.mxu1 %v10049_v31  ;;  %v10057_v31 = vcombine.low %v4456_v1, %v4464_v55  ;;  %v11230_v1 = vld [vmem:[%s13336_s6 + $0x78] sm:$0xff]  }
0x10ff   :  { %7268 = vmatprep.subr.bf16.mxu1 %v10038_v35  ;;  %v10060_v35 = vcombine.high %v4457_v30, %v4465_v57  ;;  %v11231_v55 = vld [vmem:[%s13336_s6 + $0xf8] sm:$0xff]  }
0x11cc   :  { %v6842_v39 = vpop.f32.mrb[92].mxu1 }
0x11cd   :  { %v6843_v50 = vadd.f32 %v10025_v33, %v6842_v39  ;;  %v10974_v8 = vpop.f32.mrb[93].mxu1 }
0x11ce   :  { %v6845_v16 = vpop.f32.mrb[94].mxu1  ;;  %v10030_v8 = vld [vmem:[%s13335_s30] ss:$0 sm:$0xff] }
0x11cf   :  { %v6846_v32 = vadd.f32 %v10025_v33, %v6845_v16  ;;  %v10975_v20 = vpop.f32.mrb[95].mxu1  ;;  %v6849_v27 = vadd.f32 %v6843_v50, %v12506_v2 }
0x11d0   :  { %v4461_v20 = vld [vmem:[%s13333_s19 + $0xd0] sm:$0xff] }
0x11d1   :  { %v6851_v15 = vsel %vm481_vm1, %v6849_v27, 0.0  ;;  %v6850_v23 = vadd.f32 %v6846_v32, %v12508_v37  ;;  %v4453_v32 = vld [vmem:[%s13333_s19 + $0x90] sm:$0xff] }
0x11d2   :  { %6852 = vadd.xlane.f32.xlu0 %v6851_v15  ;;  %v4462_v15 = vld [vmem:[%s13333_s19 + $0xd8] sm:$0xff] }
0x11d3   :  { %v6854_v25 = vsel %vm481_vm1, %v6850_v23, 0.0 }
0x11d4   :  { %6855 = vadd.xlane.f32.xlu1 %v6854_v25 }
0x125f   :  { %v6853_v36 = vpop.xlane.xlu0 %6852 }
0x1260   :  { %v6857_v28 = vmul.f32 0.03125, %v6853_v36 }
0x1261   :  { %v6856_v24 = vpop.xlane.xlu1 %6855 }
0x1262   :  { %v6859_v11 = vsub.f32 %v6849_v27, %v6857_v28  ;;  %v6858_v5 = vmul.f32 0.03125, %v6856_v24  ;;  %v4454_v27 = vld [vmem:[%s13333_s19 + $0x98] sm:$0xff]  ;;  %v10052_v28 = vcombine.high %v4453_v32, %v4461_v20 }
0x1263   :  { %v10054_v24 = vcombine.high %v4454_v27, %v4462_v15 }
0x1264   :  { %v6860_v38 = vsub.f32 %v6850_v23, %v6858_v5  ;;  %v6861_v62 = vmul.f32 %v6859_v11, %v6859_v11  ;;  %v4447_v5 = vld [vmem:[%s13333_s19 + $0x60] sm:$0xff] }
0x1266   :  { %v6863_v2 = vsel %vm481_vm1, %v6861_v62, 0.0  ;;  %v6862_v17 = vmul.f32 %v6860_v38, %v6860_v38  ;;  %v4448_v62 = vld [vmem:[%s13333_s19 + $0x68] sm:$0xff] }
0x1267   :  { %6864 = vadd.xlane.f32.xlu0 %v6863_v2  ;;  %v10051_v2 = vcombine.low %v4453_v32, %v4461_v20  ;;  %v11213_v32 = vld [vmem:[%s13336_s6 + $0x90] sm:$0xff]   ;;  %v11214_v20 = vld [vmem:[%s13336_s6 + $0x58] sm:$0xff]  }
0x1268   :  { %v6866_v37 = vsel %vm481_vm1, %v6862_v17, 0.0  ;;  %v10053_v17 = vcombine.low %v4454_v27, %v4462_v15  ;;  %v11215_v27 = vld [vmem:[%s13336_s6 + $0xd8] sm:$0xff]  }
0x1269   :  { %v11216_v15 = vld [vmem:[%s13336_s6 + $0x18] sm:$0xff]  }
0x126b   :  { %6867 = vadd.xlane.f32.xlu0 %v6866_v37 }
0x12f4   :  { %v6865_v56 = vpop.xlane.xlu0 %6864 }
0x12f5   :  { %v6869_v49 = vmul.f32 0.03125, %v6865_v56 }
0x12f7   :  { %v6871_v60 = vadd.f32 1e-05, %v6869_v49  ;;  %v10059_v49 = vcombine.low %v4457_v30, %v4465_v57 }
0x12f8   :  { %v6868_v0 = vpop.xlane.xlu0 %6867 }
0x12f9   :  { %11522 = vrsqrt.f32 %v6871_v60  ;;  %v6870_v13 = vmul.f32 0.03125, %v6868_v0  ;;  %v11202_v0 = vld [vmem:[%s13336_s6 + $0x40] sm:$0xff]  }
0x12fb   :  { %v6872_v47 = vadd.f32 1e-05, %v6870_v13  ;;  %v11203_v13 = vld [vmem:[%s13336_s6 + $0xc0] sm:$0xff]  }
0x12fd   :  { %11524 = vrsqrt.f32 %v6872_v47  ;;  %v11204_v47 = vld [vmem:[%s13336_s6] sm:$0xff]  }
0x1303   :  { %v11523_v4 = vpop.eup %11522 }
0x1304   :  { %v6875_v58 = vmul.f32 %v11523_v4, %v6859_v11  ;;  %v4439_v11 = vld [vmem:[%s13333_s19 + $0x20] sm:$0xff] }
0x1305   :  { %v10040_v37 = vcombine.high %v4439_v11, %v4447_v5  ;;  %v10039_v18 = vcombine.low %v4439_v11, %v4447_v5  ;;  %v11205_v4 = vld [vmem:[%s13336_s6 + $0x80] sm:$0xff]  }
0x1306   :  { %v6883_v39 = vmul.f32 %v10029_v45, %v6875_v58  ;;  %v11206_v58 = vld [vmem:[%s13336_s6 + $0x48] sm:$0xff]   ;;  %v11220_v11 = vld [vmem:[%s13336_s6 + $0x20] sm:$0xff]  }
0x1307   :  { %v11525_v33 = vpop.eup %11524  ;;  %v11221_v5 = vld [vmem:[%s13336_s6 + $0xa0] sm:$0xff]  }
0x1308   :  { %v6876_v50 = vmul.f32 %v11525_v33, %v6860_v38  ;;  %v12895_v23 = vadd.f32 %v10030_v8, %v6883_v39  ;;  %v4440_v38 = vld [vmem:[%s13333_s19 + $0x28] sm:$0xff] }
0x1309   :  { %v10042_v40 = vcombine.high %v4440_v38, %v4448_v62  ;;  %v10041_v10 = vcombine.low %v4440_v38, %v4448_v62  ;;  %v11208_v33 = vld [vmem:[%s13336_s6 + $0x8] sm:$0xff]  }
0x130a   :  { %v6884_v16 = vmul.f32 %v10029_v45, %v6876_v50  ;;  %v11207_v45 = vld [vmem:[%s13336_s6 + $0xc8] sm:$0xff]   ;;  %v11210_v50 = vld [vmem:[%s13336_s6 + $0x50] sm:$0xff]  }
0x130b   :  { %v11209_v39 = vld [vmem:[%s13336_s6 + $0x88] sm:$0xff]  }
0x130c   :  { %v12897_v25 = vadd.f32 %v10030_v8, %v6884_v16  ;;  %v11211_v8 = vld [vmem:[%s13336_s6 + $0xd0] sm:$0xff]   ;;  %v11222_v38 = vld [vmem:[%s13336_s6 + $0x68] sm:$0xff]  }
0x130d   :  { %v11212_v16 = vld [vmem:[%s13336_s6 + $0x10] sm:$0xff]   ;;  %v11223_v62 = vld [vmem:[%s13336_s6 + $0xe8] sm:$0xff]  }
0x130e   :  { %v12901_v36 = vpack.c.bf16 %v12897_v25, %v12895_v23 }
0x1310   :  { %10063 = vmatmul.mubr.msk.bf16.vlgmr.msra.gmra.mrb[112].mxu0 %vm481_vm1, %v12901_v36  ;;  %10064 = vmatmul.mubr.msk.bf16.vlgmr.msra.gmra.mrb[96].mxu1 %vm481_vm1, %v12901_v36 }
0x1311   :  { %7226 = vmatpush1.bf16.msra.mxu0 %v10035_v6  ;;  %7269 = vmatpush1.bf16.msra.mxu1 %v10037_v51  ;;  %v4458_v6 = vld [vmem:[%s13333_s19 + $0xb8] sm:$0xff]  ;;  %v10045_v51 = vcombine.low %v4442_v21, %v4450_v59  ;;  %v6907_v21 = vrot.slane %v4467_v41, %v12315_v14  ;;  %v6903_v59 = vrot.slane %v4467_v41, %v12319_v44 }
0x1312   :  { %7227 = vmatprep.subr.bf16.mxu0 %v10052_v28  ;;  %7270 = vmatprep.subr.bf16.mxu1 %v10054_v24  ;;  %v10062_v56 = vcombine.high %v4458_v6, %v4466_v34  ;;  %v10061_v60 = vcombine.low %v4458_v6, %v4466_v34  ;;  %v11218_v28 = vld [vmem:[%s13336_s6 + $0x60] sm:$0xff]  }
0x1313   :  { %7257 = vmatprep.mubr.bf16.mxu0 %v11596_v9  ;;  %7300 = vmatprep.mubr.bf16.mxu1 %v11596_v9  ;;  %v11219_v24 = vld [vmem:[%s13336_s6 + $0xe0] sm:$0xff]  }
0x1315   :  { %7228 = vmatpush1.bf16.msra.mxu0 %v10051_v2  ;;  %7271 = vmatpush1.bf16.msra.mxu1 %v10053_v17  ;;  %v11224_v2 = vld [vmem:[%s13336_s6 + $0x28] sm:$0xff]  }
0x1316   :  { %7311 = vmatprep.subr.bf16.mxu0 %v10040_v37  ;;  %7354 = vmatprep.subr.bf16.mxu1 %v10042_v40  ;;  %v11225_v17 = vld [vmem:[%s13336_s6 + $0xa8] sm:$0xff]   ;;  %v11226_v37 = vld [vmem:[%s13336_s6 + $0x70] sm:$0xff]  }
0x1317   :  { %v11227_v40 = vld [vmem:[%s13336_s6 + $0xf0] sm:$0xff]  }
0x1318   :  { %10065 = vmatmul.mubr.msk.bf16.vlgmr.msra.gmra.mrb[116].mxu0 %vm481_vm1, %v12901_v36  ;;  %10066 = vmatmul.mubr.msk.bf16.vlgmr.msra.gmra.mrb[100].mxu1 %vm481_vm1, %v12901_v36 }
0x1319   :  { %7312 = vmatpush1.bf16.msra.mxu0 %v10039_v18  ;;  %7355 = vmatpush1.bf16.msra.mxu1 %v10041_v10  ;;  %v11232_v18 = vld [vmem:[%s13336_s6 + $0x38] sm:$0xff]  }
0x131a   :  { %7313 = vmatprep.subr.bf16.mxu0 %v10056_v19  ;;  %7356 = vmatprep.subr.bf16.mxu1 %v10058_v29  ;;  %v11233_v10 = vld [vmem:[%s13336_s6 + $0xb8] sm:$0xff]   ;;  %v11234_v19 = vld [vmem:[%s13336_s6 + $0x140] sm:$0xff]  }
0x131b   :  { %7343 = vmatprep.mubr.bf16.mxu0 %v11596_v9  ;;  %7386 = vmatprep.mubr.bf16.mxu1 %v11596_v9  ;;  %v11235_v29 = vld [vmem:[%s13336_s6 + $0x1c0] sm:$0xff]  }
0x131d   :  { %7314 = vmatpush1.bf16.msra.mxu0 %v10055_v61  ;;  %7357 = vmatpush1.bf16.msra.mxu1 %v10057_v31  ;;  %v6911_v61 = vrot.slane %v4467_v41, %v12322_v63 }
0x131e   :  { %7397 = vmatprep.subr.bf16.mxu0 %v10044_v3  ;;  %7440 = vmatprep.subr.bf16.mxu1 %v10046_v12 }
0x1320   :  { %10067 = vmatmul.mubr.msk.bf16.vlgmr.msra.gmra.mrb[120].mxu0 %vm481_vm1, %v12901_v36  ;;  %10068 = vmatmul.mubr.msk.bf16.vlgmr.msra.gmra.mrb[104].mxu1 %vm481_vm1, %v12901_v36 }
0x1321   :  { %7398 = vmatpush1.bf16.msra.mxu0 %v10043_v22  ;;  %7441 = vmatpush1.bf16.msra.mxu1 %v10045_v51 }
0x1322   :  { %7399 = vmatprep.subr.bf16.mxu0 %v10060_v35  ;;  %7442 = vmatprep.subr.bf16.mxu1 %v10062_v56 }
0x1323   :  { %7429 = vmatprep.mubr.bf16.mxu0 %v11596_v9  ;;  %7472 = vmatprep.mubr.bf16.mxu1 %v11596_v9 }
0x1325   :  { %7400 = vmatpush1.bf16.msra.mxu0 %v10059_v49  ;;  %7443 = vmatpush1.bf16.msra.mxu1 %v10061_v60 }
0x1326   :  { %10541 = vmatprep.subr.bf16.mxu0 %v11202_v0  ;;  %10563 = vmatprep.subr.bf16.mxu1 %v11203_v13  ;;  %v6915_v13 = vrot.slane %v4467_v41, %v12329_v46 }
0x1328   :  { %10069 = vmatmul.mubr.msk.bf16.vlgmr.msra.gmra.mrb[124].mxu0 %vm481_vm1, %v12901_v36  ;;  %10070 = vmatmul.mubr.msk.bf16.vlgmr.msra.gmra.mrb[108].mxu1 %vm481_vm1, %v12901_v36  ;;  %v11217_v36 = vld [vmem:[%s13336_s6 + $0x98] sm:$0xff]  }
0x1329   :  { %10542 = vmatpush3.bf16.msra.mxu0 %v11204_v47  ;;  %10564 = vmatpush3.bf16.msra.mxu1 %v11205_v4  ;;  %v6923_v47 = vrot.slane %v4467_v41, %v12332_v48 }
0x132a   :  { %10543 = vmatprep.subr.bf16.mxu0 %v11206_v58  ;;  %10565 = vmatprep.subr.bf16.mxu1 %v11207_v45  ;;  %v6919_v45 = vrot.slane %v4467_v41, %v12335_v52 }
0x132d   :  { %10544 = vmatpush3.bf16.msra.mxu0 %v11208_v33  ;;  %10566 = vmatpush3.bf16.msra.mxu1 %v11209_v39  ;;  %v6927_v33 = vrot.slane %v4467_v41, %v12338_v53 }
0x132e   :  { %10545 = vmatprep.subr.bf16.mxu0 %v11210_v50  ;;  %10567 = vmatprep.subr.bf16.mxu1 %v11211_v8 }
0x1331   :  { %10546 = vmatpush3.bf16.msra.mxu0 %v11212_v16  ;;  %10568 = vmatpush3.bf16.msra.mxu1 %v11213_v32 }
0x1332   :  { %10547 = vmatprep.subr.bf16.mxu0 %v11214_v20  ;;  %10569 = vmatprep.subr.bf16.mxu1 %v11215_v27 }
0x1335   :  { %10548 = vmatpush3.bf16.msra.mxu0 %v11216_v15  ;;  %10570 = vmatpush3.bf16.msra.mxu1 %v11217_v36  ;;  %v12985_v36 = vld [vmem:[%s13337_s20 + $0x8] sm:$0xff] }
0x1336   :  { %10549 = vmatprep.subr.bf16.mxu0 %v11218_v28  ;;  %10571 = vmatprep.subr.bf16.mxu1 %v11219_v24 }
0x1339   :  { %10550 = vmatpush3.bf16.msra.mxu0 %v11220_v11  ;;  %10572 = vmatpush3.bf16.msra.mxu1 %v11221_v5 }
0x133a   :  { %10551 = vmatprep.subr.bf16.mxu0 %v11222_v38  ;;  %10573 = vmatprep.subr.bf16.mxu1 %v11223_v62 }
0x133d   :  { %10552 = vmatpush3.bf16.msra.mxu0 %v11224_v2  ;;  %10574 = vmatpush3.bf16.msra.mxu1 %v11225_v17  ;;  %v11236_v2 = vld [vmem:[%s13336_s6 + $0x100] sm:$0xff]  }
0x133e   :  { %10553 = vmatprep.subr.bf16.mxu0 %v11226_v37  ;;  %10575 = vmatprep.subr.bf16.mxu1 %v11227_v40  ;;  %v11237_v17 = vld [vmem:[%s13336_s6 + $0x180] sm:$0xff]  }
0x1341   :  { %10554 = vmatpush3.bf16.msra.mxu0 %v11228_v7  ;;  %10576 = vmatpush3.bf16.msra.mxu1 %v11229_v54 }
0x1342   :  { %10555 = vmatprep.subr.bf16.mxu0 %v11230_v1  ;;  %10577 = vmatprep.subr.bf16.mxu1 %v11231_v55  ;;  %v11238_v1 = vld [vmem:[%s13336_s6 + $0x148] sm:$0xff]  }
0x1343   :  { %v11239_v55 = vld [vmem:[%s13336_s6 + $0x1c8] sm:$0xff]  }
0x1345   :  { %10556 = vmatpush3.bf16.msra.mxu0 %v11232_v18  ;;  %10578 = vmatpush3.bf16.msra.mxu1 %v11233_v10  ;;  %v6931_v18 = vrot.slane %v12985_v36, %v12312_v43 }
0x1346   :  { %10585 = vmatprep.subr.bf16.mxu0 %v11234_v19  ;;  %10607 = vmatprep.subr.bf16.mxu1 %v11235_v29 }
0x13e3   :  { %v7173_v31 = vpop.f32.mrb[112].mxu0  ;;  %v7216_v3 = vpop.f32.mrb[96].mxu1 }
0x13e4   :  { %v7174_v12 = vadd.f32 %v7173_v31, %v6899_v42  ;;  %v7217_v30 = vadd.f32 %v7216_v3, %v6907_v21  ;;  %v7175_v57 = vpop.f32.mrb[113].mxu0  ;;  %v7218_v6 = vpop.f32.mrb[97].mxu1  ;;  %v6935_v3 = vrot.slane %v12985_v36, %v12319_v44 }
0x13e5   :  { %v7176_v34 = vadd.f32 %v7175_v57, %v6903_v59  ;;  %v7219_v22 = vadd.f32 %v7218_v6, %v6911_v61  ;;  %v7177_v51 = vpop.f32.mrb[114].mxu0  ;;  %v7220_v35 = vpop.f32.mrb[98].mxu1  ;;  %v11240_v57 = vld [vmem:[%s13336_s6 + $0x108] sm:$0xff]  }
0x13e6   :  { %v7178_v56 = vadd.f32 %v7177_v51, %v6899_v42  ;;  %v7221_v49 = vadd.f32 %v7220_v35, %v6907_v21  ;;  %v7179_v60 = vpop.f32.mrb[115].mxu0  ;;  %v7222_v0 = vpop.f32.mrb[99].mxu1  ;;  %v7483_v39 = vmax.f32 %v7174_v12, 0.0  ;;  %v7485_v50 = vmax.f32 %v7217_v30, 0.0  ;;  %v11241_v6 = vld [vmem:[%s13336_s6 + $0x188] sm:$0xff]  }
0x13e7   :  { %v7180_v4 = vadd.f32 %v7179_v60, %v6903_v59  ;;  %v7223_v58 = vadd.f32 %v7222_v0, %v6911_v61  ;;  %v7484_v32 = vmax.f32 %v7176_v34, 0.0  ;;  %v7486_v20 = vmax.f32 %v7219_v22, 0.0  ;;  %v11243_v60 = vld [vmem:[%s13336_s6 + $0x1d0] sm:$0xff]  }
0x13e8   :  { %v7499_v8 = vmax.f32 %v7178_v56, 0.0  ;;  %v7501_v16 = vmax.f32 %v7221_v49, 0.0  ;;  %v6939_v42 = vrot.slane %v12985_v36, %v12315_v14  ;;  %v6943_v34 = vrot.slane %v12985_v36, %v12322_v63  ;;  %v11242_v49 = vld [vmem:[%s13336_s6 + $0x150] sm:$0xff]  }
0x13e9   :  { %v7500_v27 = vmax.f32 %v7180_v4, 0.0  ;;  %v7502_v15 = vmax.f32 %v7223_v58, 0.0 }
0x13ea   :  { %v7515_v28 = vpack.c.bf16 %v7499_v8, %v7483_v39  ;;  %v7517_v24 = vpack.c.bf16 %v7501_v16, %v7485_v50  ;;  %v11244_v16 = vld [vmem:[%s13336_s6 + $0x110] sm:$0xff]  }
0x13eb   :  { %v7516_v11 = vpack.c.bf16 %v7500_v27, %v7484_v32  ;;  %v7518_v5 = vpack.c.bf16 %v7502_v15, %v7486_v20  ;;  %v7259_v38 = vpop.f32.mrb[116].mxu0  ;;  %v7302_v62 = vpop.f32.mrb[100].mxu1  ;;  %v11245_v32 = vld [vmem:[%s13336_s6 + $0x190] sm:$0xff]  }
0x13ec   :  { %v7260_v37 = vadd.f32 %v7259_v38, %v6915_v13  ;;  %v7303_v40 = vadd.f32 %v7302_v62, %v6923_v47  ;;  %v7261_v7 = vpop.f32.mrb[117].mxu0  ;;  %v7304_v54 = vpop.f32.mrb[101].mxu1 }
0x13ed   :  { %v7262_v10 = vadd.f32 %v7261_v7, %v6919_v45  ;;  %v7305_v19 = vadd.f32 %v7304_v54, %v6927_v33  ;;  %v7263_v29 = vpop.f32.mrb[118].mxu0  ;;  %v7306_v41 = vpop.f32.mrb[102].mxu1  ;;  %8337 = vmatprep.mubr.bf16.mxu0 %v7516_v11  ;;  %8378 = vmatprep.mubr.bf16.mxu1 %v7518_v5  ;;  %v11247_v11 = vld [vmem:[%s13336_s6 + $0x1d8] sm:$0xff]  }
0x13ee   :  { %v7264_v21 = vadd.f32 %v7263_v29, %v6915_v13  ;;  %v7307_v59 = vadd.f32 %v7306_v41, %v6923_v47  ;;  %v7265_v61 = vpop.f32.mrb[119].mxu0  ;;  %v7308_v31 = vpop.f32.mrb[103].mxu1  ;;  %8338 = vmatmul.mubr.bf16.vlgmr.msra.gmra.mrb[128].mxu0 %v7515_v28  ;;  %8379 = vmatmul.mubr.bf16.vlgmr.msra.gmra.mrb[112].mxu1 %v7517_v24  ;;  %v7487_v22 = vmax.f32 %v7260_v37, 0.0  ;;  %v7489_v51 = vmax.f32 %v7303_v40, 0.0  ;;  %v11246_v24 = vld [vmem:[%s13336_s6 + $0x158] sm:$0xff]  }
0x13ef   :  { %v7266_v12 = vadd.f32 %v7265_v61, %v6919_v45  ;;  %v7309_v30 = vadd.f32 %v7308_v31, %v6927_v33  ;;  %10586 = vmatpush3.bf16.msra.mxu0 %v11236_v2  ;;  %10608 = vmatpush3.bf16.msra.mxu1 %v11237_v17  ;;  %v7488_v0 = vmax.f32 %v7262_v10, 0.0  ;;  %v7490_v13 = vmax.f32 %v7305_v19, 0.0  ;;  %v11248_v29 = vld [vmem:[%s13336_s6 + $0x118] sm:$0xff]   ;;  %v11251_v61 = vld [vmem:[%s13336_s6 + $0x1e0] sm:$0xff]  }
0x13f0   :  { %v7503_v35 = vmax.f32 %v7264_v21, 0.0  ;;  %v7505_v56 = vmax.f32 %v7307_v59, 0.0  ;;  %10587 = vmatprep.subr.bf16.mxu0 %v11238_v1  ;;  %10609 = vmatprep.subr.bf16.mxu1 %v11239_v55  ;;  %v6947_v17 = vrot.slane %v12985_v36, %v12329_v46  ;;  %v6955_v1 = vrot.slane %v12985_v36, %v12332_v48  ;;  %v11249_v41 = vld [vmem:[%s13336_s6 + $0x198] sm:$0xff]   ;;  %v11250_v48 = vld [vmem:[%s13336_s6 + $0x160] sm:$0xff]  }
0x13f1   :  { %v7504_v47 = vmax.f32 %v7266_v12, 0.0  ;;  %v7506_v4 = vmax.f32 %v7309_v30, 0.0  ;;  %v6951_v55 = vrot.slane %v12985_v36, %v12335_v52  ;;  %v6959_v46 = vrot.slane %v12985_v36, %v12338_v53 }
0x13f2   :  { %v13003_v58 = vpack.c.bf16 %v7503_v35, %v7487_v22  ;;  %v13005_v45 = vpack.c.bf16 %v7505_v56, %v7489_v51  ;;  %v11252_v22 = vld [vmem:[%s13336_s6 + $0x120] sm:$0xff]  }
0x13f3   :  { %v7520_v33 = vpack.c.bf16 %v7504_v47, %v7488_v0  ;;  %v7522_v39 = vpack.c.bf16 %v7506_v4, %v7490_v13  ;;  %10588 = vmatpush3.bf16.msra.mxu0 %v11240_v57  ;;  %10610 = vmatpush3.bf16.msra.mxu1 %v11241_v6  ;;  %v7345_v50 = vpop.f32.mrb[120].mxu0  ;;  %v7388_v8 = vpop.f32.mrb[104].mxu1  ;;  %v11253_v51 = vld [vmem:[%s13336_s6 + $0x1a0] sm:$0xff]   ;;  %v11254_v0 = vld [vmem:[%s13336_s6 + $0x168] sm:$0xff]  }
0x13f4   :  { %v7346_v20 = vadd.f32 %v7345_v50, %v6931_v18  ;;  %v7389_v27 = vadd.f32 %v7388_v8, %v6939_v42  ;;  %v7347_v15 = vpop.f32.mrb[121].mxu0  ;;  %v7390_v28 = vpop.f32.mrb[105].mxu1  ;;  %10589 = vmatprep.subr.bf16.mxu0 %v11242_v49  ;;  %10611 = vmatprep.subr.bf16.mxu1 %v11243_v60  ;;  %v11255_v13 = vld [vmem:[%s13336_s6 + $0x1e8] sm:$0xff]  }
0x13f5   :  { %v7348_v5 = vadd.f32 %v7347_v15, %v6935_v3  ;;  %v7391_v38 = vadd.f32 %v7390_v28, %v6943_v34  ;;  %v7349_v62 = vpop.f32.mrb[122].mxu0  ;;  %v7392_v2 = vpop.f32.mrb[106].mxu1  ;;  %8419 = vmatprep.mubr.bf16.mxu0 %v7520_v33  ;;  %8460 = vmatprep.mubr.bf16.mxu1 %v7522_v39  ;;  %v11256_v15 = vld [vmem:[%s13336_s6 + $0x128] sm:$0xff]  }
0x13f6   :  { %v7350_v37 = vadd.f32 %v7349_v62, %v6931_v18  ;;  %v7393_v40 = vadd.f32 %v7392_v2, %v6939_v42  ;;  %v7351_v7 = vpop.f32.mrb[123].mxu0  ;;  %v7394_v54 = vpop.f32.mrb[107].mxu1  ;;  %v7491_v18 = vmax.f32 %v7346_v20, 0.0  ;;  %v7493_v42 = vmax.f32 %v7389_v27, 0.0  ;;  %v11257_v28 = vld [vmem:[%s13336_s6 + $0x1a8] sm:$0xff]   ;;  %v11258_v62 = vld [vmem:[%s13336_s6 + $0x170] sm:$0xff]  }
0x13f7   :  { %v7352_v10 = vadd.f32 %v7351_v7, %v6935_v3  ;;  %v7395_v19 = vadd.f32 %v7394_v54, %v6943_v34  ;;  %10590 = vmatpush3.bf16.msra.mxu0 %v11244_v16  ;;  %10612 = vmatpush3.bf16.msra.mxu1 %v11245_v32  ;;  %v7492_v52 = vmax.f32 %v7348_v5, 0.0  ;;  %v7494_v31 = vmax.f32 %v7391_v38, 0.0  ;;  %v11259_v2 = vld [vmem:[%s13336_s6 + $0x1f0] sm:$0xff]  }
0x13f8   :  { %v7507_v21 = vmax.f32 %v7350_v37, 0.0  ;;  %v7509_v59 = vmax.f32 %v7393_v40, 0.0  ;;  %10591 = vmatprep.subr.bf16.mxu0 %v11246_v24  ;;  %10613 = vmatprep.subr.bf16.mxu1 %v11247_v11 }
0x13f9   :  { %v7508_v3 = vmax.f32 %v7352_v10, 0.0  ;;  %v7510_v12 = vmax.f32 %v7395_v19, 0.0  ;;  %v11260_v19 = vld [vmem:[%s13336_s6 + $0x130] sm:$0xff]  }
0x13fa   :  { %v13023_v30 = vpack.c.bf16 %v7507_v21, %v7491_v18  ;;  %v13025_v57 = vpack.c.bf16 %v7509_v59, %v7493_v42  ;;  %v11264_v18 = vld [vmem:[%s13336_s6 + $0x138] sm:$0xff]   ;;  %v11266_v21 = vld [vmem:[%s13336_s6 + $0x240] sm:$0xff]  }
0x13fb   :  { %v13027_v53 = vpack.c.bf16 %v7508_v3, %v7492_v52  ;;  %v13029_v36 = vpack.c.bf16 %v7510_v12, %v7494_v31  ;;  %10592 = vmatpush3.bf16.msra.mxu0 %v11248_v29  ;;  %10614 = vmatpush3.bf16.msra.mxu1 %v11249_v41  ;;  %v7431_v6 = vpop.f32.mrb[124].mxu0  ;;  %v7474_v34 = vpop.f32.mrb[108].mxu1  ;;  %v11261_v29 = vld [vmem:[%s13336_s6 + $0x1b0] sm:$0xff]   ;;  %v11262_v41 = vld [vmem:[%s13336_s6 + $0x178] sm:$0xff]   ;;  %v11267_v59 = vld [vmem:[%s13336_s6 + $0x2c0] sm:$0xff]  }
0x13fc   :  { %v7432_v35 = vadd.f32 %v7431_v6, %v6947_v17  ;;  %v7475_v56 = vadd.f32 %v7474_v34, %v6955_v1  ;;  %v7433_v49 = vpop.f32.mrb[125].mxu0  ;;  %v7476_v60 = vpop.f32.mrb[109].mxu1  ;;  %10593 = vmatprep.subr.bf16.mxu0 %v11250_v48  ;;  %10615 = vmatprep.subr.bf16.mxu1 %v11251_v61  ;;  %v11265_v42 = vld [vmem:[%s13336_s6 + $0x1b8] sm:$0xff]   ;;  %v11268_v48 = vld [vmem:[%s13336_s6 + $0x200] sm:$0xff]   ;;  %v11270_v52 = vld [vmem:[%s13336_s6 + $0x248] sm:$0xff]  }
0x13fd   :  { %v7434_v47 = vadd.f32 %v7433_v49, %v6951_v55  ;;  %v7477_v4 = vadd.f32 %v7476_v60, %v6959_v46  ;;  %v7435_v33 = vpop.f32.mrb[126].mxu0  ;;  %v7478_v39 = vpop.f32.mrb[110].mxu1  ;;  %v11269_v61 = vld [vmem:[%s13336_s6 + $0x280] sm:$0xff]   ;;  %v11271_v31 = vld [vmem:[%s13336_s6 + $0x2c8] sm:$0xff]   ;;  %v11274_v6 = vld [vmem:[%s13336_s6 + $0x250] sm:$0xff]  }
0x13fe   :  { %v7436_v50 = vadd.f32 %v7435_v33, %v6947_v17  ;;  %v7479_v8 = vadd.f32 %v7478_v39, %v6955_v1  ;;  %v7437_v16 = vpop.f32.mrb[127].mxu0  ;;  %v7480_v32 = vpop.f32.mrb[111].mxu1  ;;  %v7495_v24 = vmax.f32 %v7432_v35, 0.0  ;;  %v7497_v11 = vmax.f32 %v7475_v56, 0.0  ;;  %v11272_v3 = vld [vmem:[%s13336_s6 + $0x208] sm:$0xff]   ;;  %v11278_v34 = vld [vmem:[%s13336_s6 + $0x258] sm:$0xff]  }
0x13ff   :  { %v7438_v20 = vadd.f32 %v7437_v16, %v6951_v55  ;;  %v7481_v27 = vadd.f32 %v7480_v32, %v6959_v46  ;;  %10594 = vmatpush3.bf16.msra.mxu0 %v11252_v22  ;;  %10616 = vmatpush3.bf16.msra.mxu1 %v11253_v51  ;;  %v7496_v17 = vmax.f32 %v7434_v47, 0.0  ;;  %v7498_v37 = vmax.f32 %v7477_v4, 0.0  ;;  %v11263_v46 = vld [vmem:[%s13336_s6 + $0x1f8] sm:$0xff]   ;;  %v11273_v12 = vld [vmem:[%s13336_s6 + $0x288] sm:$0xff]   ;;  %v11282_v35 = vld [vmem:[%s13336_s6 + $0x260] sm:$0xff]  }
0x1400   :  { %v7511_v5 = vmax.f32 %v7436_v50, 0.0  ;;  %v7513_v38 = vmax.f32 %v7479_v8, 0.0  ;;  %10595 = vmatprep.subr.bf16.mxu0 %v11254_v0  ;;  %10617 = vmatprep.subr.bf16.mxu1 %v11255_v13  ;;  %v11279_v22 = vld [vmem:[%s13336_s6 + $0x2d8] sm:$0xff]   ;;  %v11283_v56 = vld [vmem:[%s13336_s6 + $0x2e0] sm:$0xff]   ;;  %v11286_v0 = vld [vmem:[%s13336_s6 + $0x268] sm:$0xff]  }
0x1401   :  { %v7512_v40 = vmax.f32 %v7438_v20, 0.0  ;;  %v7514_v7 = vmax.f32 %v7481_v27, 0.0  ;;  %v11281_v51 = vld [vmem:[%s13336_s6 + $0x298] sm:$0xff]   ;;  %v11284_v49 = vld [vmem:[%s13336_s6 + $0x220] sm:$0xff]   ;;  %v11287_v13 = vld [vmem:[%s13336_s6 + $0x2e8] sm:$0xff]  }
0x1402   :  { %v13039_v54 = vpack.c.bf16 %v7511_v5, %v7495_v24  ;;  %v13041_v1 = vpack.c.bf16 %v7513_v38, %v7497_v11  ;;  %v11285_v60 = vld [vmem:[%s13336_s6 + $0x2a0] sm:$0xff]   ;;  %v11288_v47 = vld [vmem:[%s13336_s6 + $0x228] sm:$0xff]   ;;  %v11290_v33 = vld [vmem:[%s13336_s6 + $0x270] sm:$0xff]  }
0x1403   :  { %v13043_v55 = vpack.c.bf16 %v7512_v40, %v7496_v17  ;;  %v13045_v10 = vpack.c.bf16 %v7514_v7, %v7498_v37  ;;  %10596 = vmatpush3.bf16.msra.mxu0 %v11256_v15  ;;  %10618 = vmatpush3.bf16.msra.mxu1 %v11257_v28  ;;  %v11289_v4 = vld [vmem:[%s13336_s6 + $0x2a8] sm:$0xff]   ;;  %v11291_v39 = vld [vmem:[%s13336_s6 + $0x2f0] sm:$0xff]   ;;  %v11294_v16 = vld [vmem:[%s13336_s6 + $0x278] sm:$0xff]  }
0x1404   :  { %10597 = vmatprep.subr.bf16.mxu0 %v11258_v62  ;;  %10619 = vmatprep.subr.bf16.mxu1 %v11259_v2  ;;  %v11292_v50 = vld [vmem:[%s13336_s6 + $0x230] sm:$0xff]   ;;  %v11295_v32 = vld [vmem:[%s13336_s6 + $0x2f8] sm:$0xff]   ;;  %v11298_v15 = vld [vmem:[%s13336_s6 + $0x340] sm:$0xff]  }
0x1405   :  { %v11293_v8 = vld [vmem:[%s13336_s6 + $0x2b0] sm:$0xff]   ;;  %v11296_v20 = vld [vmem:[%s13336_s6 + $0x238] sm:$0xff]   ;;  %v11299_v28 = vld [vmem:[%s13336_s6 + $0x3c0] sm:$0xff]  }
0x1406   :  { %v11297_v27 = vld [vmem:[%s13336_s6 + $0x2b8] sm:$0xff]   ;;  %v11300_v24 = vld [vmem:[%s13336_s6 + $0x300] sm:$0xff]   ;;  %v11302_v5 = vld [vmem:[%s13336_s6 + $0x348] sm:$0xff]  }
0x1407   :  { %10598 = vmatpush3.bf16.msra.mxu0 %v11260_v19  ;;  %10620 = vmatpush3.bf16.msra.mxu1 %v11261_v29  ;;  %v11301_v11 = vld [vmem:[%s13336_s6 + $0x380] sm:$0xff]   ;;  %v11303_v38 = vld [vmem:[%s13336_s6 + $0x3c8] sm:$0xff]   ;;  %v11306_v17 = vld [vmem:[%s13336_s6 + $0x350] sm:$0xff]  }
0x1408   :  { %10599 = vmatprep.subr.bf16.mxu0 %v11262_v41  ;;  %10621 = vmatprep.subr.bf16.mxu1 %v11263_v46  ;;  %v11304_v62 = vld [vmem:[%s13336_s6 + $0x308] sm:$0xff]   ;;  %v11309_v37 = vld [vmem:[%s13336_s6 + $0x390] sm:$0xff]   ;;  %v11310_v40 = vld [vmem:[%s13336_s6 + $0x358] sm:$0xff]  }
0x1409   :  { %v11305_v2 = vld [vmem:[%s13336_s6 + $0x388] sm:$0xff]   ;;  %v11311_v7 = vld [vmem:[%s13336_s6 + $0x3d8] sm:$0xff]   ;;  %v11314_v19 = vld [vmem:[%s13336_s6 + $0x360] sm:$0xff]  }
0x140a   :  { %v11315_v29 = vld [vmem:[%s13336_s6 + $0x3e0] sm:$0xff]  }
0x140b   :  { %10600 = vmatpush3.bf16.msra.mxu0 %v11264_v18  ;;  %10622 = vmatpush3.bf16.msra.mxu1 %v11265_v42  ;;  %v11316_v41 = vld [vmem:[%s13336_s6 + $0x320] sm:$0xff]   ;;  %v11318_v18 = vld [vmem:[%s13336_s6 + $0x368] sm:$0xff]  }
0x140c   :  { %10629 = vmatprep.subr.bf16.mxu0 %v11266_v21  ;;  %10651 = vmatprep.subr.bf16.mxu1 %v11267_v59  ;;  %v11317_v46 = vld [vmem:[%s13336_s6 + $0x3a0] sm:$0xff]   ;;  %v11319_v42 = vld [vmem:[%s13336_s6 + $0x3e8] sm:$0xff]  }
0x140d   :  { %v11320_v21 = vld [vmem:[%s13336_s6 + $0x328] sm:$0xff]  }
0x140e   :  { %8420 = vmatmul.mubr.bf16.vlgmr.msra.gmra.mrb[132].mxu0 %v13003_v58  ;;  %8461 = vmatmul.mubr.bf16.vlgmr.msra.gmra.mrb[116].mxu1 %v13005_v45  ;;  %v11275_v58 = vld [vmem:[%s13336_s6 + $0x2d0] sm:$0xff]   ;;  %v11321_v59 = vld [vmem:[%s13336_s6 + $0x3a8] sm:$0xff]  }
0x140f   :  { %10630 = vmatpush3.bf16.msra.mxu0 %v11268_v48  ;;  %8501 = vmatprep.mubr.bf16.mxu0 %v13027_v53  ;;  %v11276_v45 = vld [vmem:[%s13336_s6 + $0x210] sm:$0xff]  }
0x1410   :  { %10652 = vmatpush3.bf16.msra.mxu1 %v11269_v61  ;;  %8542 = vmatprep.mubr.bf16.mxu1 %v13029_v36  ;;  %v11277_v53 = vld [vmem:[%s13336_s6 + $0x290] sm:$0xff]   ;;  %v11280_v36 = vld [vmem:[%s13336_s6 + $0x218] sm:$0xff]  }
0x1411   :  { %10631 = vmatprep.subr.bf16.mxu0 %v11270_v52  ;;  %10653 = vmatprep.subr.bf16.mxu1 %v11271_v31  ;;  %v11322_v48 = vld [vmem:[%s13336_s6 + $0x370] sm:$0xff]  }
0x1412   :  { %v11323_v61 = vld [vmem:[%s13336_s6 + $0x3f0] sm:$0xff]  }
0x1413   :  { %10632 = vmatpush3.bf16.msra.mxu0 %v11272_v3  ;;  %v11324_v52 = vld [vmem:[%s13336_s6 + $0x330] sm:$0xff]   ;;  %v11326_v3 = vld [vmem:[%s13336_s6 + $0x378] sm:$0xff]  }
0x1414   :  { %10654 = vmatpush3.bf16.msra.mxu1 %v11273_v12  ;;  %10633 = vmatprep.subr.bf16.mxu0 %v11274_v6  ;;  %v11325_v31 = vld [vmem:[%s13336_s6 + $0x3b0] sm:$0xff]   ;;  %v11327_v12 = vld [vmem:[%s13336_s6 + $0x3f8] sm:$0xff]  }
0x1415   :  { %10655 = vmatprep.subr.bf16.mxu1 %v11275_v58  ;;  %v11328_v6 = vld [vmem:[%s13336_s6 + $0x338] sm:$0xff]  }
0x1416   :  { %v11329_v58 = vld [vmem:[%s13336_s6 + $0x3b8] sm:$0xff]  }
0x1417   :  { %10634 = vmatpush3.bf16.msra.mxu0 %v11276_v45 }
0x1418   :  { %10656 = vmatpush3.bf16.msra.mxu1 %v11277_v53  ;;  %10635 = vmatprep.subr.bf16.mxu0 %v11278_v34  ;;  %v10071_v34 = vld [vmem:[%s13338_s2] ss:$0 sm:$0xff] }
0x1419   :  { %10657 = vmatprep.subr.bf16.mxu1 %v11279_v22 }
0x141b   :  { %10636 = vmatpush3.bf16.msra.mxu0 %v11280_v36 }
0x141c   :  { %10658 = vmatpush3.bf16.msra.mxu1 %v11281_v51  ;;  %10637 = vmatprep.subr.bf16.mxu0 %v11282_v35 }
0x141d   :  { %10659 = vmatprep.subr.bf16.mxu1 %v11283_v56 }
0x141f   :  { %10638 = vmatpush3.bf16.msra.mxu0 %v11284_v49 }
0x1420   :  { %10660 = vmatpush3.bf16.msra.mxu1 %v11285_v60  ;;  %10639 = vmatprep.subr.bf16.mxu0 %v11286_v0 }
0x1421   :  { %10661 = vmatprep.subr.bf16.mxu1 %v11287_v13 }
0x1423   :  { %10640 = vmatpush3.bf16.msra.mxu0 %v11288_v47 }
0x1424   :  { %10662 = vmatpush3.bf16.msra.mxu1 %v11289_v4  ;;  %10641 = vmatprep.subr.bf16.mxu0 %v11290_v33 }
0x1425   :  { %10663 = vmatprep.subr.bf16.mxu1 %v11291_v39 }
0x1427   :  { %10642 = vmatpush3.bf16.msra.mxu0 %v11292_v50 }
0x1428   :  { %10664 = vmatpush3.bf16.msra.mxu1 %v11293_v8  ;;  %10643 = vmatprep.subr.bf16.mxu0 %v11294_v16 }
0x1429   :  { %10665 = vmatprep.subr.bf16.mxu1 %v11295_v32 }
0x142b   :  { %10644 = vmatpush3.bf16.msra.mxu0 %v11296_v20 }
0x142c   :  { %10666 = vmatpush3.bf16.msra.mxu1 %v11297_v27  ;;  %10673 = vmatprep.subr.bf16.mxu0 %v11298_v15 }
0x142d   :  { %10695 = vmatprep.subr.bf16.mxu1 %v11299_v28 }
0x142e   :  { %8502 = vmatmul.mubr.bf16.vlgmr.msra.gmra.mrb[136].mxu0 %v13023_v30  ;;  %v11307_v30 = vld [vmem:[%s13336_s6 + $0x3d0] sm:$0xff]  }
0x142f   :  { %8543 = vmatmul.mubr.bf16.vlgmr.msra.gmra.mrb[120].mxu1 %v13025_v57  ;;  %10674 = vmatpush3.bf16.msra.mxu0 %v11300_v24  ;;  %v11308_v57 = vld [vmem:[%s13336_s6 + $0x310] sm:$0xff]  }
0x1430   :  { %8583 = vmatprep.mubr.bf16.mxu0 %v13043_v55  ;;  %10696 = vmatpush3.bf16.msra.mxu1 %v11301_v11  ;;  %v11312_v55 = vld [vmem:[%s13336_s6 + $0x318] sm:$0xff]  }
0x1431   :  { %8624 = vmatprep.mubr.bf16.mxu1 %v13045_v10  ;;  %10675 = vmatprep.subr.bf16.mxu0 %v11302_v5  ;;  %v11313_v10 = vld [vmem:[%s13336_s6 + $0x398] sm:$0xff]  }
0x1432   :  { %10697 = vmatprep.subr.bf16.mxu1 %v11303_v38 }
0x1433   :  { %10676 = vmatpush3.bf16.msra.mxu0 %v11304_v62 }
0x1434   :  { %10698 = vmatpush3.bf16.msra.mxu1 %v11305_v2  ;;  %10677 = vmatprep.subr.bf16.mxu0 %v11306_v17 }
0x1435   :  { %10699 = vmatprep.subr.bf16.mxu1 %v11307_v30 }
0x1437   :  { %10678 = vmatpush3.bf16.msra.mxu0 %v11308_v57 }
0x1438   :  { %10700 = vmatpush3.bf16.msra.mxu1 %v11309_v37  ;;  %10679 = vmatprep.subr.bf16.mxu0 %v11310_v40 }
0x1439   :  { %10701 = vmatprep.subr.bf16.mxu1 %v11311_v7 }
0x143b   :  { %10680 = vmatpush3.bf16.msra.mxu0 %v11312_v55 }
0x143c   :  { %10702 = vmatpush3.bf16.msra.mxu1 %v11313_v10  ;;  %10681 = vmatprep.subr.bf16.mxu0 %v11314_v19 }
0x143d   :  { %10703 = vmatprep.subr.bf16.mxu1 %v11315_v29 }
0x143f   :  { %10682 = vmatpush3.bf16.msra.mxu0 %v11316_v41 }
0x1440   :  { %10704 = vmatpush3.bf16.msra.mxu1 %v11317_v46  ;;  %10683 = vmatprep.subr.bf16.mxu0 %v11318_v18 }
0x1441   :  { %10705 = vmatprep.subr.bf16.mxu1 %v11319_v42 }
0x1443   :  { %10684 = vmatpush3.bf16.msra.mxu0 %v11320_v21 }
0x1444   :  { %10706 = vmatpush3.bf16.msra.mxu1 %v11321_v59  ;;  %10685 = vmatprep.subr.bf16.mxu0 %v11322_v48 }
0x1445   :  { %10707 = vmatprep.subr.bf16.mxu1 %v11323_v61 }
0x1447   :  { %10686 = vmatpush3.bf16.msra.mxu0 %v11324_v52 }
0x1448   :  { %10708 = vmatpush3.bf16.msra.mxu1 %v11325_v31  ;;  %10687 = vmatprep.subr.bf16.mxu0 %v11326_v3 }
0x1449   :  { %10709 = vmatprep.subr.bf16.mxu1 %v11327_v12 }
0x144b   :  { %10688 = vmatpush3.bf16.msra.mxu0 %v11328_v6 }
0x144c   :  { %10710 = vmatpush3.bf16.msra.mxu1 %v11329_v58 }
0x144e   :  { %8584 = vmatmul.mubr.bf16.vlgmr.msra.gmra.mrb[140].mxu0 %v13039_v54 }
0x144f   :  { %8625 = vmatmul.mubr.bf16.vlgmr.msra.gmra.mrb[124].mxu1 %v13041_v1  ;;  %8873 = vmatprep.mubr.bf16.mxu0 %v11596_v9 }
0x1450   :  { %8914 = vmatprep.mubr.bf16.mxu1 %v11596_v9 }
0x14c1   :  { %v10557_v45 = vpop.f32.mrb[128].mxu0  ;;  %v10579_v53 = vpop.f32.mrb[112].mxu1 }
0x14c2   :  { %v10558_v22 = vpop.f32.mrb[129].mxu0  ;;  %v10580_v36 = vpop.f32.mrb[113].mxu1 }
0x14c3   :  { %v10559_v51 = vadd.f32 %v10558_v22, %v10557_v45  ;;  %v10581_v35 = vadd.f32 %v10580_v36, %v10579_v53  ;;  %v10560_v56 = vpop.f32.mrb[130].mxu0  ;;  %v10582_v49 = vpop.f32.mrb[114].mxu1 }
0x14c4   :  { %v10561_v60 = vpop.f32.mrb[131].mxu0  ;;  %v10583_v0 = vpop.f32.mrb[115].mxu1 }
0x14c5   :  { %v8340_v13 = vadd.f32 %v10559_v51, %v10071_v34  ;;  %v10562_v47 = vadd.f32 %v10561_v60, %v10560_v56  ;;  %v10584_v54 = vadd.f32 %v10583_v0, %v10582_v49 }
0x14c7   :  { %v8381_v4 = vadd.f32 %v10581_v35, %v8340_v13  ;;  %v8343_v1 = vadd.f32 %v10562_v47, %v10071_v34 }
0x14c9   :  { %v8384_v33 = vadd.f32 %v10584_v54, %v8343_v1 }
0x14e1   :  { %v10601_v39 = vpop.f32.mrb[132].mxu0  ;;  %v10623_v50 = vpop.f32.mrb[116].mxu1 }
0x14e2   :  { %v10602_v8 = vpop.f32.mrb[133].mxu0  ;;  %v10624_v16 = vpop.f32.mrb[117].mxu1 }
0x14e3   :  { %v10603_v32 = vadd.f32 %v10602_v8, %v10601_v39  ;;  %v10625_v20 = vadd.f32 %v10624_v16, %v10623_v50  ;;  %v10604_v27 = vpop.f32.mrb[134].mxu0  ;;  %v10626_v15 = vpop.f32.mrb[118].mxu1 }
0x14e4   :  { %v10605_v28 = vpop.f32.mrb[135].mxu0  ;;  %v10627_v24 = vpop.f32.mrb[119].mxu1 }
0x14e5   :  { %v8422_v11 = vadd.f32 %v10603_v32, %v8381_v4  ;;  %v10606_v5 = vadd.f32 %v10605_v28, %v10604_v27  ;;  %v10628_v38 = vadd.f32 %v10627_v24, %v10626_v15  ;;  %v8677_v32 = vld [vmem:[%s13339_s7] sm:$0x1]  ;;  %v11332_v27 = vld [vmem:[%s13340_s10 + $0x4] ss:$16 sps:$4 sm:$0xff]   ;;  %v11335_v15 = vld [vmem:[%s13340_s10 + $0xc] ss:$16 sps:$4 sm:$0xff]  }
0x14e6   :  { %v11330_v28 = vld [vmem:[%s13340_s10] ss:$16 sps:$4 sm:$0xff]   ;;  %v11333_v24 = vld [vmem:[%s13340_s10 + $0x8] ss:$16 sps:$4 sm:$0xff]   ;;  %8841 = vmatprep.subr.bf16.mxu0 %v11332_v27  ;;  %8882 = vmatprep.subr.bf16.mxu1 %v11335_v15 }
0x14e7   :  { %v8463_v62 = vadd.f32 %v10625_v20, %v8422_v11  ;;  %v8425_v2 = vadd.f32 %v10606_v5, %v8384_v33  ;;  %v8678_v20 = vld [vmem:[%s13339_s7 + $0x1] sm:$0x1]  ;;  %8842 = vmatpush1.bf16.msra.mxu0 %v11330_v28  ;;  %8883 = vmatpush1.bf16.msra.mxu1 %v11333_v24  ;;  %v11338_v11 = vld [vmem:[%s13340_s10 + $0x24] ss:$16 sps:$4 sm:$0xff]   ;;  %v11341_v5 = vld [vmem:[%s13340_s10 + $0x2c] ss:$16 sps:$4 sm:$0xff]  }
0x14e8   :  { %8843 = vmatprep.subr.bf16.mxu0 %v11338_v11  ;;  %8884 = vmatprep.subr.bf16.mxu1 %v11341_v5  ;;  %v11351_v15 = vld [vmem:[%s13341_s11 + $0x28] ss:$16 sps:$4 sm:$0xff]   ;;  %v11356_v24 = vld [vmem:[%s13346_s23 + $0x4] ss:$8 sps:$4 sm:$0xff]  }
0x14e9   :  { %v8466_v17 = vadd.f32 %v10628_v38, %v8425_v2  ;;  %v11336_v38 = vld [vmem:[%s13340_s10 + $0x20] ss:$16 sps:$4 sm:$0xff]   ;;  %v11344_v2 = vld [vmem:[%s13341_s11 + $0x4] ss:$16 sps:$4 sm:$0xff]  }
0x14ea   :  { %v11359_v11 = vld [vmem:[%s13346_s23 + $0x104] ss:$8 sps:$4 sm:$0xff]  }
0x14eb   :  { %8844 = vmatpush1.bf16.msra.mxu0 %v11336_v38 }
0x14ec   :  { %8975 = vmatprep.subr.bf16.mxu0 %v11344_v2  ;;  %v11354_v2 = vld [vmem:[%s13346_s23] ss:$8 sps:$4 sm:$0xff]  }
0x1501   :  { %v10645_v30 = vpop.f32.mrb[136].mxu0 }
0x1502   :  { %v10667_v57 = vpop.f32.mrb[120].mxu1  ;;  %v10646_v37 = vpop.f32.mrb[137].mxu0 }
0x1503   :  { %v10647_v40 = vadd.f32 %v10646_v37, %v10645_v30  ;;  %v10668_v7 = vpop.f32.mrb[121].mxu1  ;;  %v10648_v55 = vpop.f32.mrb[138].mxu0  ;;  %v11607_v30 = vmov 1966171168  }
0x1504   :  { %v10669_v10 = vadd.f32 %v10668_v7, %v10667_v57  ;;  %v10670_v19 = vpop.f32.mrb[122].mxu1  ;;  %v10649_v29 = vpop.f32.mrb[139].mxu0  ;;  %v8704_v57 = vunpack.c.l.s4 %v11607_v30  ;;  %v10202_v7 = vld [vmem:[%s13342_s15] ss:$0 sm:$0xff] }
0x1505   :  { %v8504_v41 = vadd.f32 %v10647_v40, %v8463_v62  ;;  %v10650_v46 = vadd.f32 %v10649_v29, %v10648_v55  ;;  %v10671_v18 = vpop.f32.mrb[123].mxu1  ;;  %v11339_v62 = vld [vmem:[%s13340_s10 + $0x28] ss:$16 sps:$4 sm:$0xff]  }
0x1506   :  { %v10672_v42 = vadd.f32 %v10671_v18, %v10670_v19  ;;  %8885 = vmatpush1.bf16.msra.mxu1 %v11339_v62  ;;  %v8705_v37 = vunpack.c.0.s8 %v8704_v57  ;;  %v10203_v19 = vld [vmem:[%s13343_s16] ss:$0 sm:$0xff]  ;;  %v11362_v57 = vld [vmem:[%s13346_s23 + $0x14] ss:$8 sps:$4 sm:$0xff]  }
0x1507   :  { %v8545_v21 = vadd.f32 %v10669_v10, %v8504_v41  ;;  %v8507_v59 = vadd.f32 %v10650_v46, %v8466_v17  ;;  %v11347_v17 = vld [vmem:[%s13341_s11 + $0xc] ss:$16 sps:$4 sm:$0xff]  }
0x1508   :  { %9016 = vmatprep.subr.bf16.mxu1 %v11347_v17  ;;  %v13157_v40 = vsub.s32 %v8705_v37, %v11848_v26  ;;  %v11357_v17 = vld [vmem:[%s13346_s23 + $0x100] ss:$8 sps:$4 sm:$0xff]   ;;  %v11365_v37 = vld [vmem:[%s13346_s23 + $0x114] ss:$8 sps:$4 sm:$0xff]  }
0x1509   :  { %v8548_v48 = vadd.f32 %v10672_v42, %v8507_v59 }
0x150a   :  { %v8709_v10 = vrot.slane %v10202_v7, %v13157_v40  ;;  %v8741_v42 = vrot.slane %v10203_v19, %v13157_v40  ;;  %v11363_v7 = vld [vmem:[%s13346_s23 + $0x110] ss:$8 sps:$4 sm:$0xff]   ;;  %v11366_v19 = vld [vmem:[%s13346_s23 + $0x20] ss:$8 sps:$4 sm:$0xff]  }
0x1521   :  { %v10689_v61 = vpop.f32.mrb[140].mxu0 }
0x1522   :  { %v10711_v52 = vpop.f32.mrb[124].mxu1  ;;  %v10690_v31 = vpop.f32.mrb[141].mxu0 }
0x1523   :  { %v10691_v3 = vadd.f32 %v10690_v31, %v10689_v61  ;;  %v10712_v12 = vpop.f32.mrb[125].mxu1  ;;  %v10692_v6 = vpop.f32.mrb[142].mxu0  ;;  %v8717_v61 = vrot.slane %v8709_v10, %v13157_v40 }
0x1524   :  { %v10713_v58 = vadd.f32 %v10712_v12, %v10711_v52  ;;  %v10714_v45 = vpop.f32.mrb[126].mxu1  ;;  %v10693_v53 = vpop.f32.mrb[143].mxu0  ;;  %v8742_v52 = vcombine.high %v8741_v42, %v8741_v42 }
0x1525   :  { %v8586_v34 = vadd.f32 %v10691_v3, %v8545_v21  ;;  %v10694_v22 = vadd.f32 %v10693_v53, %v10692_v6  ;;  %v10715_v36 = vpop.f32.mrb[127].mxu1  ;;  %v8710_v21 = vcombine.high %v8709_v10, %v8709_v10  ;;  %v8749_v3 = vrot.slane %v8741_v42, %v13157_v40  ;;  %v11371_v10 = vld [vmem:[%s13346_s23 + $0x124] ss:$8 sps:$4 sm:$0xff]   ;;  %v11375_v42 = vld [vmem:[%s13346_s23 + $0x130] ss:$8 sps:$4 sm:$0xff]  }
0x1526   :  { %v10716_v51 = vadd.f32 %v10715_v36, %v10714_v45  ;;  %v10200_v36 = vld [vmem:[%s13344_s18] ss:$0 sm:$0xff] }
0x1527   :  { %v8627_v35 = vadd.f32 %v10713_v58, %v8586_v34  ;;  %v8589_v56 = vadd.f32 %v10694_v22, %v8548_v48  ;;  %v8724_v31 = vrot.slane %v8710_v21, %v13157_v40  ;;  %v8756_v58 = vrot.slane %v8742_v52, %v13157_v40  ;;  %v11380_v21 = vld [vmem:[%s13346_s23 + $0x44] ss:$8 sps:$4 sm:$0xff]   ;;  %v11389_v52 = vld [vmem:[%s13346_s23 + $0x154] ss:$8 sps:$4 sm:$0xff]  }
0x1529   :  { %v8630_v49 = vadd.f32 %v10716_v51, %v8589_v56  ;;  %v8633_v60 = vadd.f32 %v8627_v35, %v12895_v23 }
0x152b   :  { %v8635_v0 = vsel %vm481_vm1, %v8633_v60, 0.0  ;;  %v8634_v13 = vadd.f32 %v8630_v49, %v12897_v25  ;;  %v10201_v49 = vld [vmem:[%s13345_s22] ss:$0 sm:$0xff] }
0x152c   :  { %8636 = vadd.xlane.f32.xlu1 %v8635_v0 }
0x152d   :  { %v8638_v47 = vsel %vm481_vm1, %v8634_v13, 0.0 }
0x152e   :  { %8639 = vadd.xlane.f32.xlu0 %v8638_v47 }
0x15b9   :  { %v8637_v54 = vpop.xlane.xlu1 %8636 }
0x15ba   :  { %v8641_v4 = vmul.f32 0.03125, %v8637_v54 }
0x15bb   :  { %v8640_v1 = vpop.xlane.xlu0 %8639 }
0x15bc   :  { %v13134_v33 = vsub.f32 %v8633_v60, %v8641_v4  ;;  %v8642_v23 = vmul.f32 0.03125, %v8640_v1 }
0x15be   :  { %v13136_v39 = vsub.f32 %v8634_v13, %v8642_v23  ;;  %v8645_v25 = vmul.f32 %v13134_v33, %v13134_v33 }
0x15c0   :  { %v8647_v50 = vsel %vm481_vm1, %v8645_v25, 0.0  ;;  %v8646_v8 = vmul.f32 %v13136_v39, %v13136_v39 }
0x15c1   :  { %8648 = vadd.xlane.f32.xlu1 %v8647_v50  ;;  %v11342_v50 = vld [vmem:[%s13341_s11] ss:$16 sps:$4 sm:$0xff]  }
0x15c2   :  { %v8650_v16 = vsel %vm481_vm1, %v8646_v8, 0.0  ;;  %v11345_v8 = vld [vmem:[%s13341_s11 + $0x8] ss:$16 sps:$4 sm:$0xff]  }
0x15c3   :  { %8651 = vadd.xlane.f32.xlu0 %v8650_v16  ;;  %v11350_v16 = vld [vmem:[%s13341_s11 + $0x24] ss:$16 sps:$4 sm:$0xff]  }
0x15d2   :  { %8682 = vperm.xlu1 %11064, %v8677_v32   ;;  %v11353_v32 = vld [vmem:[%s13341_s11 + $0x2c] ss:$16 sps:$4 sm:$0xff]  }
0x15d9   :  { %8691 = vperm.xlu0 %11065, %v8678_v20  }
0x164e   :  { %v8649_v55 = vpop.xlane.xlu1 %8648 }
0x164f   :  { %v8653_v29 = vmul.f32 0.03125, %v8649_v55  ;;  %v11368_v55 = vld [vmem:[%s13346_s23 + $0x24] ss:$8 sps:$4 sm:$0xff]  }
0x1650   :  { %v8652_v41 = vpop.xlane.xlu0 %8651 }
0x1651   :  { %v8655_v46 = vadd.f32 1e-05, %v8653_v29  ;;  %v8654_v18 = vmul.f32 0.03125, %v8652_v41  ;;  %v11369_v29 = vld [vmem:[%s13346_s23 + $0x120] ss:$8 sps:$4 sm:$0xff]  }
0x1652   :  { %v8683_v59 = vpop.permute.xlu1 %8682  ;;  %v11374_v41 = vld [vmem:[%s13346_s23 + $0x34] ss:$8 sps:$4 sm:$0xff]  }
0x1653   :  { %11526 = vrsqrt.f32 %v8655_v46  ;;  %v8656_v48 = vadd.f32 1e-05, %v8654_v18  ;;  %v8688_v26 = vrot.slane %v8683_v59, %v12312_v43  ;;  %v11377_v46 = vld [vmem:[%s13346_s23 + $0x134] ss:$8 sps:$4 sm:$0xff]   ;;  %v11372_v18 = vld [vmem:[%s13346_s23 + $0x30] ss:$8 sps:$4 sm:$0xff]  }
0x1654   :  { %v11383_v59 = vld [vmem:[%s13346_s23 + $0x144] ss:$8 sps:$4 sm:$0xff]  }
0x1655   :  { %11528 = vrsqrt.f32 %v8656_v48  ;;  %v8727_v12 = vmul.f32 %v8717_v61, %v8688_v26  ;;  %v11378_v48 = vld [vmem:[%s13346_s23 + $0x40] ss:$8 sps:$4 sm:$0xff]   ;;  %v11386_v26 = vld [vmem:[%s13346_s23 + $0x54] ss:$8 sps:$4 sm:$0xff]  }
0x1656   :  { %v11381_v61 = vld [vmem:[%s13346_s23 + $0x140] ss:$8 sps:$4 sm:$0xff]  }
0x1657   :  { %v8759_v34 = vadd.f32 %v8749_v3, %v8727_v12  ;;  %v11387_v3 = vld [vmem:[%s13346_s23 + $0x150] ss:$8 sps:$4 sm:$0xff]   ;;  %v11392_v12 = vld [vmem:[%s13346_s23 + $0x64] ss:$8 sps:$4 sm:$0xff]  }
0x1658   :  { %v8692_v6 = vpop.permute.xlu0 %8691 }
0x1659   :  { %v8697_v45 = vrot.slane %v8692_v6, %v12312_v43  ;;  %v11395_v6 = vld [vmem:[%s13346_s23 + $0x164] ss:$8 sps:$4 sm:$0xff]  }
0x165b   :  { %v8728_v53 = vmul.f32 %v8724_v31, %v8697_v45  ;;  %v11384_v31 = vld [vmem:[%s13346_s23 + $0x50] ss:$8 sps:$4 sm:$0xff]   ;;  %v11393_v45 = vld [vmem:[%s13346_s23 + $0x160] ss:$8 sps:$4 sm:$0xff]  }
0x165d   :  { %v11527_v22 = vpop.eup %11526  ;;  %v8760_v51 = vadd.f32 %v8756_v58, %v8728_v53  ;;  %v11390_v58 = vld [vmem:[%s13346_s23 + $0x60] ss:$8 sps:$4 sm:$0xff]   ;;  %v11398_v53 = vld [vmem:[%s13346_s23 + $0x74] ss:$8 sps:$4 sm:$0xff]  }
0x165e   :  { %v8659_v35 = vmul.f32 %v11527_v22, %v13134_v33  ;;  %v11396_v22 = vld [vmem:[%s13346_s23 + $0x70] ss:$8 sps:$4 sm:$0xff]  }
0x165f   :  { %v11529_v56 = vpop.eup %11528  ;;  %v8773_v60 = vcombine.low %v8759_v34, %v8760_v51  ;;  %v11401_v34 = vld [vmem:[%s13346_s23 + $0x174] ss:$8 sps:$4 sm:$0xff]   ;;  %v11404_v51 = vld [vmem:[%s13346_s23 + $0x84] ss:$8 sps:$4 sm:$0xff]  }
0x1660   :  { %v8667_v0 = vmul.f32 %v10200_v36, %v8659_v35  ;;  %v8660_v13 = vmul.f32 %v11529_v56, %v13136_v39  ;;  %v11348_v39 = vld [vmem:[%s13341_s11 + $0x20] ss:$16 sps:$4 sm:$0xff]   ;;  %v11407_v35 = vld [vmem:[%s13346_s23 + $0x184] ss:$8 sps:$4 sm:$0xff]  }
0x1661   :  { %v8780_v47 = vrot.slane %v8773_v60, %v13157_v40  ;;  %v11402_v56 = vld [vmem:[%s13346_s23 + $0x80] ss:$8 sps:$4 sm:$0xff]   ;;  %v11410_v60 = vld [vmem:[%s13346_s23 + $0x94] ss:$8 sps:$4 sm:$0xff]  }
0x1662   :  { %v8675_v54 = vadd.f32 %v10201_v49, %v8667_v0  ;;  %v8668_v4 = vmul.f32 %v10200_v36, %v8660_v13  ;;  %v11399_v36 = vld [vmem:[%s13346_s23 + $0x170] ss:$8 sps:$4 sm:$0xff]   ;;  %v11413_v0 = vld [vmem:[%s13346_s23 + $0x194] ss:$8 sps:$4 sm:$0xff]  }
0x1663   :  { %v8787_v1 = vrot.slane %v8780_v47, %v13157_v40  ;;  %v11408_v13 = vld [vmem:[%s13346_s23 + $0x90] ss:$8 sps:$4 sm:$0xff]  }
0x1664   :  { %v8761_v23 = vpack.c.bf16 %v8675_v54, %v8675_v54  ;;  %v8676_v25 = vadd.f32 %v10201_v49, %v8668_v4  ;;  %v11405_v49 = vld [vmem:[%s13346_s23 + $0x180] ss:$8 sps:$4 sm:$0xff]   ;;  %v11411_v47 = vld [vmem:[%s13346_s23 + $0x190] ss:$8 sps:$4 sm:$0xff]   ;;  %v11416_v54 = vld [vmem:[%s13346_s23 + $0xa4] ss:$8 sps:$4 sm:$0xff]  }
0x1665   :  { %v8789_v33 = vpack.c.bf16 %v8787_v1, %v8787_v1  ;;  %v11419_v4 = vld [vmem:[%s13346_s23 + $0x1a4] ss:$8 sps:$4 sm:$0xff]   ;;  %v11414_v1 = vld [vmem:[%s13346_s23 + $0xa0] ss:$8 sps:$4 sm:$0xff]  }
0x1666   :  { %v8762_v20 = vpack.c.bf16 %v8676_v25, %v8676_v25  ;;  %v8925_v27 = vunpack.c.l.b16 %v8761_v23  ;;  %v11417_v23 = vld [vmem:[%s13346_s23 + $0x1a0] ss:$8 sps:$4 sm:$0xff]   ;;  %v11420_v25 = vld [vmem:[%s13346_s23 + $0xb0] ss:$8 sps:$4 sm:$0xff]  }
0x1667   :  { %10212 = vmatmul.mubr.msk.bf16.vlgmr.msra.gmra.mrb[144].mxu0 %vm481_vm1, %v8789_v33  ;;  %10213 = vmatmul.mubr.msk.bf16.vlgmr.msra.gmra.mrb[128].mxu1 %vm481_vm1, %v8789_v33  ;;  %v11425_v33 = vld [vmem:[%s13346_s23 + $0x1b4] ss:$8 sps:$4 sm:$0xff]  }
0x1668   :  { %8976 = vmatpush1.bf16.msra.mxu0 %v11342_v50  ;;  %9017 = vmatpush1.bf16.msra.mxu1 %v11345_v8  ;;  %v8926_v28 = vunpack.c.l.b16 %v8762_v20  ;;  %v8927_v5 = vrot.slane %v8925_v27, 7  ;;  %v11422_v50 = vld [vmem:[%s13346_s23 + $0xb4] ss:$8 sps:$4 sm:$0xff]   ;;  %v11423_v8 = vld [vmem:[%s13346_s23 + $0x1b0] ss:$8 sps:$4 sm:$0xff]  }
0x1669   :  { %8977 = vmatprep.subr.bf16.mxu0 %v11350_v16  ;;  %9018 = vmatprep.subr.bf16.mxu1 %v11353_v32  ;;  %v11426_v16 = vld [vmem:[%s13346_s23 + $0xc0] ss:$8 sps:$4 sm:$0xff]   ;;  %v11428_v32 = vld [vmem:[%s13346_s23 + $0xc4] ss:$8 sps:$4 sm:$0xff]  }
0x166a   :  { %9007 = vmatprep.mubr.bf16.mxu0 %v11596_v9  ;;  %9048 = vmatprep.mubr.bf16.mxu1 %v11596_v9  ;;  %v8928_v38 = vrot.slane %v8926_v28, 6  ;;  %v11360_v9 = vld [vmem:[%s13346_s23 + $0x10] ss:$8 sps:$4 sm:$0xff]   ;;  %v11429_v20 = vld [vmem:[%s13346_s23 + $0x1c0] ss:$8 sps:$4 sm:$0xff]  }
0x166b   :  { %v11431_v27 = vld [vmem:[%s13346_s23 + $0x1c4] ss:$8 sps:$4 sm:$0xff]   ;;  %v11432_v28 = vld [vmem:[%s13346_s23 + $0xd0] ss:$8 sps:$4 sm:$0xff]  }
0x166c   :  { %8978 = vmatpush1.bf16.msra.mxu0 %v11348_v39  ;;  %9019 = vmatpush1.bf16.msra.mxu1 %v11351_v15  ;;  %v8930_v62 = vsel %vm8929_vm6, %v8928_v38, %v8927_v5  ;;  %v11434_v39 = vld [vmem:[%s13346_s23 + $0xd4] ss:$8 sps:$4 sm:$0xff]   ;;  %v11443_v5 = vld [vmem:[%s13346_s23 + $0x1e4] ss:$8 sps:$4 sm:$0xff]   ;;  %v11438_v38 = vld [vmem:[%s13346_s23 + $0xe0] ss:$8 sps:$4 sm:$0xff]  }
0x166d   :  { %v8931_v30 = vpack.c.b16 %v8930_v62, %v8930_v62  ;;  %9495 = vmatprep.subr.bf16.mxu1 %v11356_v24  ;;  %9536 = vmatprep.subr.bf16.mxu0 %v11359_v11  ;;  %v11437_v15 = vld [vmem:[%s13346_s23 + $0x1d4] ss:$8 sps:$4 sm:$0xff]   ;;  %v11435_v24 = vld [vmem:[%s13346_s23 + $0x1d0] ss:$8 sps:$4 sm:$0xff]   ;;  %v11440_v11 = vld [vmem:[%s13346_s23 + $0xe4] ss:$8 sps:$4 sm:$0xff]  }
0x166e   :  { %v11441_v62 = vld [vmem:[%s13346_s23 + $0x1e0] ss:$8 sps:$4 sm:$0xff]  }
0x166f   :  { %10222 = vmatmul.mubr.msk.bf16.vlgmr.msra.gmra.mrb[148].mxu0 %vm481_vm1, %v8931_v30  ;;  %10223 = vmatmul.mubr.msk.bf16.vlgmr.msra.gmra.mrb[132].mxu1 %vm481_vm1, %v8931_v30  ;;  %v11447_v30 = vld [vmem:[%s13346_s23 + $0x1f0] ss:$8 sps:$4 sm:$0xff]  }
0x1670   :  { %9496 = vmatpush1.bf16.msra.mxu1 %v11354_v2  ;;  %9537 = vmatpush1.bf16.msra.mxu0 %v11357_v17  ;;  %v11444_v2 = vld [vmem:[%s13346_s23 + $0xf0] ss:$8 sps:$4 sm:$0xff]   ;;  %v11446_v17 = vld [vmem:[%s13346_s23 + $0xf4] ss:$8 sps:$4 sm:$0xff]  }
0x1671   :  { %9497 = vmatprep.subr.bf16.mxu1 %v11362_v57  ;;  %9538 = vmatprep.subr.bf16.mxu0 %v11365_v37  ;;  %v11449_v57 = vld [vmem:[%s13346_s23 + $0x1f4] ss:$8 sps:$4 sm:$0xff]   ;;  %v9599_v37 = vld [vmem:[%s11788_s9 + $0x80] sm:$0xff] }
0x1674   :  { %9498 = vmatpush1.bf16.msra.mxu1 %v11360_v9  ;;  %9539 = vmatpush1.bf16.msra.mxu0 %v11363_v7  ;;  %v9600_v9 = vld [vmem:[%s11788_s9 + $0x88] sm:$0xff] }
0x1675   :  { %9499 = vmatprep.subr.bf16.mxu1 %v11368_v55  ;;  %9540 = vmatprep.subr.bf16.mxu0 %v11371_v10  ;;  %v10976_v7 = vpack.c.bf16 %v9600_v9, %v9599_v37  ;;  %v9589_v9 = vld [vmem:[%s11788_s9 + $0x30] sm:$0xff] }
0x1678   :  { %9500 = vmatpush1.bf16.msra.mxu1 %v11366_v19  ;;  %9541 = vmatpush1.bf16.msra.mxu0 %v11369_v29 }
0x1679   :  { %9501 = vmatprep.subr.bf16.mxu1 %v11374_v41  ;;  %9542 = vmatprep.subr.bf16.mxu0 %v11377_v46 }
0x167c   :  { %9502 = vmatpush1.bf16.msra.mxu1 %v11372_v18  ;;  %9543 = vmatpush1.bf16.msra.mxu0 %v11375_v42 }
0x167d   :  { %9503 = vmatprep.subr.bf16.mxu1 %v11380_v21  ;;  %9544 = vmatprep.subr.bf16.mxu0 %v11383_v59  ;;  %v9057_v21 = vld [vmem:[%s13347_s26] sm:$0xf] }
0x167e   :  { %v9062_v59 = vrot.slane %v9057_v21, %v12312_v43 }
0x1680   :  { %9504 = vmatpush1.bf16.msra.mxu1 %v11378_v48  ;;  %9545 = vmatpush1.bf16.msra.mxu0 %v11381_v61  ;;  %v9070_v48 = vrot.slane %v9057_v21, %v12315_v14 }
0x1681   :  { %9505 = vmatprep.subr.bf16.mxu1 %v11386_v26  ;;  %9546 = vmatprep.subr.bf16.mxu0 %v11389_v52  ;;  %v9066_v52 = vrot.slane %v9057_v21, %v12319_v44 }
0x1684   :  { %9506 = vmatpush1.bf16.msra.mxu1 %v11384_v31  ;;  %9547 = vmatpush1.bf16.msra.mxu0 %v11387_v3  ;;  %v9074_v31 = vrot.slane %v9057_v21, %v12322_v63 }
0x1685   :  { %9507 = vmatprep.subr.bf16.mxu1 %v11392_v12  ;;  %9548 = vmatprep.subr.bf16.mxu0 %v11395_v6 }
0x1688   :  { %9508 = vmatpush1.bf16.msra.mxu1 %v11390_v58  ;;  %9549 = vmatpush1.bf16.msra.mxu0 %v11393_v45 }
0x1689   :  { %9509 = vmatprep.subr.bf16.mxu1 %v11398_v53  ;;  %9550 = vmatprep.subr.bf16.mxu0 %v11401_v34 }
0x168c   :  { %9510 = vmatpush1.bf16.msra.mxu1 %v11396_v22  ;;  %9551 = vmatpush1.bf16.msra.mxu0 %v11399_v36 }
0x168d   :  { %9511 = vmatprep.subr.bf16.mxu1 %v11404_v51  ;;  %9552 = vmatprep.subr.bf16.mxu0 %v11407_v35 }
0x1690   :  { %9512 = vmatpush1.bf16.msra.mxu1 %v11402_v56  ;;  %9553 = vmatpush1.bf16.msra.mxu0 %v11405_v49 }
0x1691   :  { %9513 = vmatprep.subr.bf16.mxu1 %v11410_v60  ;;  %9554 = vmatprep.subr.bf16.mxu0 %v11413_v0  ;;  %v9583_v60 = vld [vmem:[%s11788_s9] sm:$0xff]  ;;  %v9584_v0 = vld [vmem:[%s11788_s9 + $0x8] sm:$0xff] }
0x1694   :  { %9514 = vmatpush1.bf16.msra.mxu1 %v11408_v13  ;;  %9555 = vmatpush1.bf16.msra.mxu0 %v11411_v47 }
0x1695   :  { %9515 = vmatprep.subr.bf16.mxu1 %v11416_v54  ;;  %9556 = vmatprep.subr.bf16.mxu0 %v11419_v4 }
0x1698   :  { %9516 = vmatpush1.bf16.msra.mxu1 %v11414_v1  ;;  %9557 = vmatpush1.bf16.msra.mxu0 %v11417_v23  ;;  %v9601_v23 = vld [vmem:[%s11788_s9 + $0x90] sm:$0xff] }
0x1699   :  { %9517 = vmatprep.subr.bf16.mxu1 %v11422_v50  ;;  %9558 = vmatprep.subr.bf16.mxu0 %v11425_v33 }
0x169c   :  { %9518 = vmatpush1.bf16.msra.mxu1 %v11420_v25  ;;  %9559 = vmatpush1.bf16.msra.mxu0 %v11423_v8  ;;  %v9602_v25 = vld [vmem:[%s11788_s9 + $0x98] sm:$0xff] }
0x169d   :  { %9519 = vmatprep.subr.bf16.mxu1 %v11428_v32  ;;  %9560 = vmatprep.subr.bf16.mxu0 %v11431_v27  ;;  %v10978_v32 = vpack.c.bf16 %v9584_v0, %v9583_v60 }
0x16a0   :  { %9520 = vmatpush1.bf16.msra.mxu1 %v11426_v16  ;;  %9561 = vmatpush1.bf16.msra.mxu0 %v11429_v20 }
0x16a1   :  { %9521 = vmatprep.subr.bf16.mxu1 %v11434_v39  ;;  %9562 = vmatprep.subr.bf16.mxu0 %v11437_v15  ;;  %v10980_v39 = vpack.c.bf16 %v9602_v25, %v9601_v23  ;;  %v9585_v15 = vld [vmem:[%s11788_s9 + $0x10] sm:$0xff] }
0x16a4   :  { %9522 = vmatpush1.bf16.msra.mxu1 %v11432_v28  ;;  %9563 = vmatpush1.bf16.msra.mxu0 %v11435_v24  ;;  %v9586_v28 = vld [vmem:[%s11788_s9 + $0x18] sm:$0xff]  ;;  %v9603_v24 = vld [vmem:[%s11788_s9 + $0xa0] sm:$0xff] }
0x16a5   :  { %9523 = vmatprep.subr.bf16.mxu1 %v11440_v11  ;;  %9564 = vmatprep.subr.bf16.mxu0 %v11443_v5  ;;  %v9604_v11 = vld [vmem:[%s11788_s9 + $0xa8] sm:$0xff]  ;;  %v10982_v5 = vpack.c.bf16 %v9586_v28, %v9585_v15 }
0x16a8   :  { %9524 = vmatpush1.bf16.msra.mxu1 %v11438_v38  ;;  %9565 = vmatpush1.bf16.msra.mxu0 %v11441_v62  ;;  %v10984_v38 = vpack.c.bf16 %v9604_v11, %v9603_v24  ;;  %v9587_v62 = vld [vmem:[%s11788_s9 + $0x20] sm:$0xff] }
0x16a9   :  { %9525 = vmatprep.subr.bf16.mxu1 %v11446_v17  ;;  %9566 = vmatprep.subr.bf16.mxu0 %v11449_v57  ;;  %v9605_v17 = vld [vmem:[%s11788_s9 + $0xb0] sm:$0xff] }
0x16ac   :  { %9526 = vmatpush1.bf16.msra.mxu1 %v11444_v2  ;;  %9567 = vmatpush1.bf16.msra.mxu0 %v11447_v30  ;;  %v9588_v2 = vld [vmem:[%s11788_s9 + $0x28] sm:$0xff]  ;;  %v9606_v30 = vld [vmem:[%s11788_s9 + $0xb8] sm:$0xff] }
0x16ad   :  { %10977 = vmatprep.subr.bf16.mxu1 %v10976_v7  ;;  %v10986_v57 = vpack.c.bf16 %v9588_v2, %v9587_v62  ;;  %v10988_v37 = vpack.c.bf16 %v9606_v30, %v9605_v17  ;;  %v9590_v7 = vld [vmem:[%s11788_s9 + $0x38] sm:$0xff] }
0x173a   :  { %v8875_v55 = vpop.f32.mrb[144].mxu0  ;;  %v8916_v10 = vpop.f32.mrb[128].mxu1 }
0x173b   :  { %v8877_v19 = vpop.f32.mrb[145].mxu0  ;;  %v8918_v29 = vpop.f32.mrb[129].mxu1 }
0x173c   :  { %v8879_v41 = vpop.f32.mrb[146].mxu0  ;;  %v8920_v46 = vpop.f32.mrb[130].mxu1 }
0x173d   :  { %v8880_v18 = vpop.f32.mrb[147].mxu0  ;;  %v8921_v42 = vpop.f32.mrb[131].mxu1  ;;  %v9591_v41 = vld [vmem:[%s11788_s9 + $0x40] sm:$0xff]  ;;  %v9592_v46 = vld [vmem:[%s11788_s9 + $0x48] sm:$0xff] }
0x173e   :  { %v9609_v18 = vld [vmem:[%s11788_s9 + $0xd0] sm:$0xff]  ;;  %v9610_v42 = vld [vmem:[%s11788_s9 + $0xd8] sm:$0xff]  ;;  %v10994_v21 = vpack.c.bf16 %v9592_v46, %v9591_v41 }
0x1742   :  { %v9009_v61 = vpop.f32.mrb[148].mxu0  ;;  %v9050_v26 = vpop.f32.mrb[132].mxu1 }
0x1743   :  { %v9010_v3 = vadd.f32 %v9009_v61, %v8875_v55  ;;  %v9051_v12 = vadd.f32 %v9050_v26, %v8916_v10  ;;  %v9011_v6 = vpop.f32.mrb[149].mxu0  ;;  %v9052_v58 = vpop.f32.mrb[133].mxu1  ;;  %v9607_v55 = vld [vmem:[%s11788_s9 + $0xc0] sm:$0xff]  ;;  %v9608_v10 = vld [vmem:[%s11788_s9 + $0xc8] sm:$0xff]  ;;  %v9594_v61 = vld [vmem:[%s11788_s9 + $0x58] sm:$0xff] }
0x1744   :  { %v9012_v45 = vadd.f32 %v9011_v6, %v8877_v19  ;;  %v9053_v53 = vadd.f32 %v9052_v58, %v8918_v29  ;;  %v9013_v34 = vpop.f32.mrb[150].mxu0  ;;  %v9054_v22 = vpop.f32.mrb[134].mxu1  ;;  %v10990_v19 = vpack.c.bf16 %v9590_v7, %v9589_v9  ;;  %v10992_v29 = vpack.c.bf16 %v9608_v10, %v9607_v55  ;;  %v9596_v6 = vld [vmem:[%s11788_s9 + $0x68] sm:$0xff] }
0x1745   :  { %v9079_v36 = vadd.f32 %v9062_v59, %v9010_v3  ;;  %v9081_v51 = vadd.f32 %v9070_v48, %v9051_v12  ;;  %v9014_v35 = vpop.f32.mrb[151].mxu0  ;;  %v9055_v14 = vpop.f32.mrb[135].mxu1  ;;  %v10996_v59 = vpack.c.bf16 %v9610_v42, %v9609_v18  ;;  %v9593_v48 = vld [vmem:[%s11788_s9 + $0x50] sm:$0xff]  ;;  %v9595_v12 = vld [vmem:[%s11788_s9 + $0x60] sm:$0xff] }
0x1746   :  { %v9080_v56 = vadd.f32 %v9066_v52, %v9012_v45  ;;  %v9082_v49 = vadd.f32 %v9074_v31, %v9053_v53  ;;  %v10998_v26 = vpack.c.bf16 %v9594_v61, %v9593_v48  ;;  %v9611_v52 = vld [vmem:[%s11788_s9 + $0xe0] sm:$0xff]  ;;  %v9612_v31 = vld [vmem:[%s11788_s9 + $0xe8] sm:$0xff]  ;;  %v11002_v58 = vpack.c.bf16 %v9596_v6, %v9595_v12  ;;  %v9613_v45 = vld [vmem:[%s11788_s9 + $0xf0] sm:$0xff] }
0x1747   :  { %vm9083_vm7 = vcmp.ge.f32.partialorder %v9079_v36, 0.0  ;;  %v9087_v63 = vmul.f32 0.01, %v9079_v36  ;;  %vm9085_vm8 = vcmp.ge.f32.partialorder %v9081_v51, 0.0  ;;  %v9089_v13 = vmul.f32 0.01, %v9081_v51 }
0x1748   :  { %v9088_v47 = vmul.f32 0.01, %v9080_v56  ;;  %v9090_v54 = vmul.f32 0.01, %v9082_v49  ;;  %vm9084_vm9 = vcmp.ge.f32.partialorder %v9080_v56, 0.0  ;;  %vm9086_vm10 = vcmp.ge.f32.partialorder %v9082_v49, 0.0 }
0x1749   :  { %v9091_v4 = vsel %vm9083_vm7, %v9079_v36, %v9087_v63  ;;  %v9093_v1 = vsel %vm9085_vm8, %v9081_v51, %v9089_v13  ;;  %v11000_v3 = vpack.c.bf16 %v9612_v31, %v9611_v52  ;;  %v9614_v53 = vld [vmem:[%s11788_s9 + $0xf8] sm:$0xff]  ;;  %v9597_v22 = vld [vmem:[%s11788_s9 + $0x70] sm:$0xff]  ;;  %v9163_v35 = vld [vmem:[%s11783_s4] sm:$0x3] }
0x174a   :  { %v9092_v50 = vsel %vm9084_vm9, %v9080_v56, %v9088_v47  ;;  %v9094_v8 = vsel %vm9086_vm10, %v9082_v49, %v9090_v54  ;;  %v9095_v20 = vpack.c.bf16 %v9091_v4, %v9091_v4  ;;  %v9097_v27 = vpack.c.bf16 %v9093_v1, %v9093_v1  ;;  %v9598_v36 = vld [vmem:[%s11788_s9 + $0x78] sm:$0xff]  ;;  %s11608_s9 = smov [#allocation2]  }
0x174b   :  { %v9096_v33 = vpack.c.bf16 %v9092_v50, %v9092_v50  ;;  %v9098_v16 = vpack.c.bf16 %v9094_v8, %v9094_v8  ;;  %v11004_v34 = vpack.c.bf16 %v9614_v53, %v9613_v45  ;;  %v11006_v51 = vpack.c.bf16 %v9598_v36, %v9597_v22 }
0x174c   :  { %v9168_v14 = vrot.slane %v9163_v35, %v12312_v43  ;;  %v9172_v56 = vrot.slane %v9163_v35, %v12319_v44 }
0x174d   :  { %9527 = vmatprep.mubr.bf16.mxu1 %v9096_v33  ;;  %9568 = vmatprep.mubr.bf16.mxu0 %v9098_v16 }
0x174e   :  { %9528 = vmatmul.mubr.bf16.vlgmr.msra.gmra.mrb[136].mxu1 %v9095_v20  ;;  %9569 = vmatmul.mubr.bf16.vlgmr.msra.gmra.mrb[152].mxu0 %v9097_v27  ;;  %v10288_v20 = vld [vmem:[%s11793_s12] ss:$0 sm:$0xff]  ;;  %s9737_s12 = sshll.u32 %s11608_s9, 4  ;;  %s9738_s12 = int_to_ptr.vmem [resolvable:$true] %s9737_s12 }
0x174f   :  { %10979 = vmatpush3.bf16.msra.mxu1 %v10978_v32  ;;  %s11534_s4 = scalar_lea.vmem %s9738_s12, 32  ;;  %p11539_p1 = scmp.lt.s32.totalorder %s9738_s12, %s9738_s12 }
0x1750   :  { %10981 = vmatprep.subr.bf16.mxu1 %v10980_v39  ;;  %p11535_p0 = scmp.ne.s32.totalorder %s9738_s12, %s11534_s4  ;;  %p11540_p2 = scmp.lt.s32.totalorder %s11534_s4, %s11534_s4 }
0x1752   :  { %p11541_p3 = por %p11540_p2, %p11539_p1 }
0x1753   :  { %10983 = vmatpush3.bf16.msra.mxu1 %v10982_v5 }
0x1754   :  { %10985 = vmatprep.subr.bf16.mxu1 %v10984_v38  ;;  %p11542_p4 = pnand %p11541_p3, %p11535_p0 }
0x1757   :  { %10987 = vmatpush3.bf16.msra.mxu1 %v10986_v57 }
0x1758   :  { %10989 = vmatprep.subr.bf16.mxu1 %v10988_v37 }
0x175b   :  { %10991 = vmatpush3.bf16.msra.mxu1 %v10990_v19 }
0x175c   :  { %10993 = vmatprep.subr.bf16.mxu1 %v10992_v29 }
0x175f   :  { %10995 = vmatpush3.bf16.msra.mxu1 %v10994_v21 }
0x1760   :  { %10997 = vmatprep.subr.bf16.mxu1 %v10996_v59 }
0x1763   :  { %10999 = vmatpush3.bf16.msra.mxu1 %v10998_v26 }
0x1764   :  { %11001 = vmatprep.subr.bf16.mxu1 %v11000_v3 }
0x1767   :  { %11003 = vmatpush3.bf16.msra.mxu1 %v11002_v58 }
0x1768   :  { %11005 = vmatprep.subr.bf16.mxu1 %v11004_v34 }
0x176b   :  { %11007 = vmatpush3.bf16.msra.mxu1 %v11006_v51 }
0x1821   :  { %v9529_v49 = vpop.f32.mrb[136].mxu1  ;;  %v9570_v60 = vpop.f32.mrb[152].mxu0 }
0x1822   :  { %v9530_v0 = vadd.f32 %v9529_v49, %v9168_v14  ;;  %v9531_v63 = vpop.f32.mrb[137].mxu1  ;;  %v9572_v13 = vpop.f32.mrb[153].mxu0 }
0x1823   :  { %v9532_v47 = vadd.f32 %v9531_v63, %v9172_v56  ;;  %v9533_v54 = vpop.f32.mrb[138].mxu1  ;;  %v9574_v4 = vpop.f32.mrb[154].mxu0 }
0x1824   :  { %v9571_v1 = vadd.f32 %v9570_v60, %v9530_v0  ;;  %v9534_v23 = vpop.f32.mrb[139].mxu1  ;;  %v9575_v25 = vpop.f32.mrb[155].mxu0 }
0x1825   :  { %v9573_v50 = vadd.f32 %v9572_v13, %v9532_v47 }
0x1826   :  { %v9579_v8 = vmul.f32 0.01, %v9571_v1  ;;  %vm9577_vm11 = vcmp.ge.f32.partialorder %v9571_v1, 0.0 }
0x1827   :  { %v9580_v33 = vmul.f32 0.01, %v9573_v50  ;;  %vm9578_vm12 = vcmp.ge.f32.partialorder %v9573_v50, 0.0 }
0x1828   :  { %v9581_v44 = vsel %vm9577_vm11, %v9571_v1, %v9579_v8 }
0x1829   :  { %v9582_v43 = vsel %vm9578_vm12, %v9573_v50, %v9580_v33 }
0x182a   :  { %9686 = vmatprep.mubr.f32.mxu1 %v9582_v43 }
0x182b   :  { %9687 = vmatmul.mubr.f32.vlgmr.msra.gmra.mrb[140].mxu1 %v9581_v44 }
0x18fe   :  { %v10749_v16 = vpop.f32.mrb[140].mxu1 }
0x18ff   :  { %v10750_v32 = vpop.f32.mrb[141].mxu1 }
0x1900   :  { %v10751_v27 = vadd.f32 %v10750_v32, %v10749_v16 }
0x1902   :  { %v9689_v39 = vadd.f32 %v10751_v27, %v10288_v20 }
0x1904   :  { %v9693_v15 = vsel %vm9692_vm13, %v9689_v39, -inf }
0x1905   :  { %9694 = vmax.xlane.f32.xlu1 %v9693_v15 }
0x1992   :  { %v9695_v28 = vpop.xlane.xlu1 %9694 }
0x1993   :  { %v9696_v24 = vsub.f32 %v9689_v39, %v9695_v28 }
0x1995   :  { %v9697_v11 = vmul.f32 1.442695, %v9696_v24 }
0x1997   :  { %11530 = vpow2.f32 %v9697_v11 }
0x19a1   :  { %v11531_v5 = vpop.eup %11530 }
0x19a2   :  { %v9699_v38 = vsel %vm9692_vm13, %v11531_v5, 0.0 }
0x19a3   :  { %9700 = vadd.xlane.f32.xlu0 %v9699_v38 }
0x1a30   :  { %v9701_v62 = vpop.xlane.xlu0 %9700 }
0x1a31   :  { %11532 = vrcp.f32 %v9701_v62 }
0x1a3b   :  { %v11533_v2 = vpop.eup %11532 }
0x1a3c   :  { %v9703_v17 = vmul.f32 %v11533_v2, %v11531_v5 }
0x1a3e   :  { %v9711_v30 = vrot.slane %v9703_v17, %v13157_v40 }
0x1a40   :  { %v9712_v57 = vcombine.high %v9711_v30, %v9711_v30  ;;  %v9719_v37 = vrot.slane %v9711_v30, %v13157_v40 }
0x1a42   :  { %v9726_v9 = vrot.slane %v9712_v57, %v13157_v40  ;;  %9730 = vst.msk [vmem:[#allocation2] sm:$0x1] %vm9729_vm14, %v9719_v37 }
0x1a44   :  { %9731 = vst.msk [vmem:[#allocation2 + $0x1] sm:$0x1] %vm9729_vm14, %v9726_v9 }
0x1a45   :  { %11545 = shalt.err (!%p11542_p4)
}
0x1a46   :  { %s11546_s0 = scalar_lea.hbm %s11798_s27, 32 }
0x1a47   :  { %p11547_p5 = scmp.ne.s32.totalorder %s11798_s27, %s11546_s0  ;;  %p11550_p6 = scmp.lt.u32.totalorder %s11546_s0, %s11798_s27 }
0x1a49   :  { %p11552_p7 = pnand %p11550_p6, %p11547_p5 }
0x1a4b   :  { %11555 = shalt.err (!%p11552_p7)
}
0x1a4c   :  { %s11609_s5 = smov 1  }
0x1a4d   :  { %9743 = dma.vmem_to_hbm [thread:$0]  %s9738_s12, 32, %s11798_s27, [#allocation3], %s11604_s25, %s11604_s25, %s11609_s5  }
0x1a4e   :  { %11556 = dma.done.wait [#allocation3], 32  }
0x1a4f   :  { %11557 = vsyncadd [#allocation3], 4294967264 }
0x1a50   :  { %9747 = vsyncpa [#allocation3], 1 }

</bundles_post_ra>
